<compile_context>
chip_gen: v7x
topology: tpu7x:2x2x1
jax: 0.10.0
libtpu: 0.0.40
codegen_flags: <defaults>
</compile_context>

<pallas_src>
import functools

import jax
import jax.numpy as jnp
from jax import lax
from jax.experimental import pallas as pl
from jax.experimental.pallas import tpu as pltpu


# --------------------------------------------------------------------------
# Kernels
# --------------------------------------------------------------------------

def _se_fused_kernel(x_ref, w1_ref, b1_ref, w2_ref, b2_ref, o_ref):
    """Fast path: x_ref block is (tb, C, T), T on the lane axis."""
    x = x_ref[...]
    # Time "mean": raw sum here, the 1/T is folded into w1 by the wrapper.
    m = jnp.sum(x, axis=-1, dtype=jnp.float32)                        # (tb, C)
    h = jnp.dot(m, w1_ref[...], preferred_element_type=jnp.float32) + b1_ref[...]
    h = jnp.maximum(h, 0.0)                                           # ReLU
    g = jnp.dot(h, w2_ref[...], preferred_element_type=jnp.float32) + b2_ref[...]
    g = jax.nn.sigmoid(g)                                             # (tb, C)
    # Gate: lane broadcast over T, done in the input dtype (no f32 copy of x).
    o_ref[...] = x * g.astype(o_ref.dtype)[:, :, None]


def _make_gate_kernel(T, tt):
    """Chunked pass 1: accumulate time sums over T chunks, finalize the gate."""
    needs_mask = (T % tt) != 0

    def gate_kernel(x_ref, w1_ref, b1_ref, w2_ref, b2_ref, g_ref):
        t = pl.program_id(1)

        @pl.when(t == 0)
        def _init():
            g_ref[...] = jnp.zeros_like(g_ref)

        x = x_ref[...]                                                 # (tb, C, tt)
        if needs_mask:
            # Mask the padded tail of the last (partial) T chunk.
            col = t * tt + lax.broadcasted_iota(jnp.int32, x.shape, 2)
            x = jnp.where(col < T, x, jnp.zeros((), x.dtype))
        g_ref[...] += jnp.sum(x, axis=-1, dtype=jnp.float32, keepdims=True)

        @pl.when(t == pl.num_programs(1) - 1)
        def _finalize():
            m = g_ref[...][:, :, 0]                                    # (tb, C) raw sum
            h = jnp.dot(m, w1_ref[...], preferred_element_type=jnp.float32) + b1_ref[...]
            h = jnp.maximum(h, 0.0)
            g = jnp.dot(h, w2_ref[...], preferred_element_type=jnp.float32) + b2_ref[...]
            g_ref[...] = jax.nn.sigmoid(g)[:, :, None]

    return gate_kernel


def _apply_gate_kernel(x_ref, g_ref, o_ref):
    """Chunked pass 2: gated copy. g_ref is (tb, C, 1), broadcasts over T."""
    o_ref[...] = x_ref[...] * g_ref[...].astype(o_ref.dtype)


# --------------------------------------------------------------------------
# Provisioning helpers
# --------------------------------------------------------------------------

def _largest_divisor_leq(n, k):
    k = max(1, min(int(k), int(n)))
    while n % k:
        k -= 1
    return k


def _tpu_vmem_capacity_bytes():
    try:
        cap = int(pltpu.get_tpu_info().vmem_capacity_bytes)
        if cap > 0:
            return cap
    except Exception:
        pass
    return 64 << 20  # conservative fallback (v7x per-TensorCore VMEM)


def _num_tensorcores():
    # v7x packs 2 TensorCores per chip; v5e/v6e have 1. Only split the grid
    # when there is actually more than one core to shard "parallel" axes over.
    try:
        kind = jax.devices()[0].device_kind.lower()
    except Exception:
        return 1
    return 2 if "v7" in kind else 1


# --------------------------------------------------------------------------
# Wrapper
# --------------------------------------------------------------------------

def se_connect(x, w1, b1, w2, b2, *, tb_max=64, force_chunk_t=None):
    """SE_Connect forward. x: (B, C, T); w1: (C//s, C); b1: (C//s,); w2: (C, C//s); b2: (C,)."""
    B, C, T = x.shape
    Cs = w1.shape[0]
    itemsize = jnp.dtype(x.dtype).itemsize

    # Excitation parameters: (in, out) layout for the in-kernel dots, f32, with
    # the 1/T of the time mean folded into the first weight.
    w1_t = w1.T.astype(jnp.float32) * (1.0 / T)       # (C, Cs)
    w2_t = w2.T.astype(jnp.float32)                   # (Cs, C)
    b1r = b1.reshape(1, Cs).astype(jnp.float32)
    b2r = b2.reshape(1, C).astype(jnp.float32)

    # VMEM provisioning: stay well below physical capacity (64 MiB/TC on v7x,
    # 128 MiB on v5e/v6e) so compiler scratch / semaphores / weights still fit.
    vmem_cap = _tpu_vmem_capacity_bytes()
    cap = int(vmem_cap * 0.8)
    weight_bytes = sum(int(a.size) * a.dtype.itemsize for a in (w1_t, b1r, w2_t, b2r))
    budget = max(cap - 2 * weight_bytes - (2 << 20), 4 << 20)
    per_row = 4 * C * T * itemsize                    # (in + out) x double-buffer
    num_tc = _num_tensorcores()

    weight_specs = [pl.BlockSpec(memory_space=pltpu.MemorySpace.VMEM)] * 4

    if force_chunk_t is None and per_row <= budget:
        # ---- Fast path: one fused kernel, full (C, T) slab per batch row. ----
        tb = _largest_divisor_leq(B, min(tb_max, budget // per_row))
        if num_tc > 1:
            # >= 2 grid steps per TensorCore so writeback/prefetch can overlap.
            min_steps = 2 * num_tc
            if B // tb < min_steps and B >= min_steps:
                tb = _largest_divisor_leq(B, max(1, B // min_steps))
        grid = (B // tb,)
        vmem_limit = int(min(cap, max(tb * per_row + 2 * weight_bytes + (4 << 20),
                                      16 << 20)))
        return pl.pallas_call(
            _se_fused_kernel,
            out_shape=jax.ShapeDtypeStruct((B, C, T), x.dtype),
            grid=grid,
            in_specs=[pl.BlockSpec((tb, C, T), lambda b: (b, 0, 0))] + weight_specs,
            out_specs=pl.BlockSpec((tb, C, T), lambda b: (b, 0, 0)),
            compiler_params=pltpu.CompilerParams(
                dimension_semantics=("parallel",),
                vmem_limit_bytes=vmem_limit),
        )(x, w1_t, b1r, w2_t, b2r)

    # ---- Chunked fallback: T too long for a full (C, T) slab (or forced). ----
    if force_chunk_t is not None:
        tt = max(1, int(force_chunk_t))
    else:
        tt = max(1, budget // (4 * C * itemsize))
    if tt >= T:
        tt = T
    else:
        tt = max(128, (tt // 128) * 128)              # lane-aligned chunks
        if tt >= T:
            tt = T

    per_row_c = 4 * C * tt * itemsize
    tb = _largest_divisor_leq(B, min(tb_max, max(1, budget // per_row_c)))
    if num_tc > 1:
        min_steps = 2 * num_tc
        if B // tb < min_steps and B >= min_steps:
            tb = _largest_divisor_leq(B, max(1, B // min_steps))
    nb, nt = B // tb, pl.cdiv(T, tt)
    vmem_limit = int(min(cap, max(tb * per_row_c + 2 * weight_bytes + (8 << 20),
                                  16 << 20)))

    # Pass 1: per-batch gate g = sigmoid(W2 relu(W1 mean_t(x) + b1) + b2) as (B, C, 1) f32.
    gate = pl.pallas_call(
        _make_gate_kernel(T, tt),
        out_shape=jax.ShapeDtypeStruct((B, C, 1), jnp.float32),
        grid=(nb, nt),
        in_specs=[pl.BlockSpec((tb, C, tt), lambda b, t: (b, 0, t))] + weight_specs,
        out_specs=pl.BlockSpec((tb, C, 1), lambda b, t: (b, 0, 0)),
        compiler_params=pltpu.CompilerParams(
            dimension_semantics=("parallel", "arbitrary"),
            vmem_limit_bytes=vmem_limit),
    )(x, w1_t, b1r, w2_t, b2r)

    # Pass 2: gated copy over T chunks; both grid axes independent.
    return pl.pallas_call(
        _apply_gate_kernel,
        out_shape=jax.ShapeDtypeStruct((B, C, T), x.dtype),
        grid=(nb, nt),
        in_specs=[pl.BlockSpec((tb, C, tt), lambda b, t: (b, 0, t)),
                  pl.BlockSpec((tb, C, 1), lambda b, t: (b, 0, 0))],
        out_specs=pl.BlockSpec((tb, C, tt), lambda b, t: (b, 0, t)),
        compiler_params=pltpu.CompilerParams(
            dimension_semantics=("parallel", "parallel"),
            vmem_limit_bytes=vmem_limit),
    )(x, gate)


def se_connect_ref(x, w1, b1, w2, b2):
    """Pure-JAX reference matching the PyTorch forward exactly."""
    m = x.mean(axis=2)
    h = jax.nn.relu(m @ w1.T + b1)
    g = jax.nn.sigmoid(h @ w2.T + b2)
    return x * g[:, :, None]


if __name__ == "__main__":
    root = jax.random.PRNGKey(0)
    key1, key2 = jax.random.split(root, 2)

    def make_inputs(key, B, C, T, s):
        Cs = C // s
        kx, kw1, kb1, kw2, kb2 = jax.random.split(key, 5)
        x = jax.random.normal(kx, (B, C, T), dtype=jnp.float32)
        # nn.Linear-style parameters: weight is (out_features, in_features).
        w1 = jax.random.normal(kw1, (Cs, C), dtype=jnp.float32) * (1.0 / jnp.sqrt(C))
        b1 = jax.random.normal(kb1, (Cs,), dtype=jnp.float32) * 0.1
        w2 = jax.random.normal(kw2, (C, Cs), dtype=jnp.float32) * (1.0 / jnp.sqrt(Cs))
        b2 = jax.random.normal(kb2, (C,), dtype=jnp.float32) * 0.1
        return x, w1, b1, w2, b2

    # 1) Fused fast path (full (C, T) slab per batch row fits VMEM).
    x, w1, b1, w2, b2 = make_inputs(key1, B=16, C=128, T=24, s=2)
    out = jax.block_until_ready(jax.jit(se_connect)(x, w1, b1, w2, b2))
    ref = se_connect_ref(x, w1, b1, w2, b2)
    assert out.shape == x.shape
    assert jnp.allclose(out, ref, atol=1e-4, rtol=1e-4), "fused path mismatch"

    # 2) T-chunked fallback (forced), including a partial last chunk (200 % 128 != 0).
    x2, w1b, b1b, w2b, b2b = make_inputs(key2, B=4, C=128, T=200, s=2)
    chunked = jax.jit(functools.partial(se_connect, force_chunk_t=128))
    out2 = jax.block_until_ready(chunked(x2, w1b, b1b, w2b, b2b))
    ref2 = se_connect_ref(x2, w1b, b1b, w2b, b2b)
    assert out2.shape == x2.shape
    assert jnp.allclose(out2, ref2, atol=1e-4, rtol=1e-4), "chunked path mismatch"

    print("KERNEL_OK")
</pallas_src>

<mosaic_0001>
module attributes {stable_mosaic.version = 11 : i64} {
  func.func @_se_fused_kernel(%arg0: i32, %arg1: memref<16x128x24xf32, #tpu.memory_space<vmem>>, %arg2: memref<128x64xf32, #tpu.memory_space<vmem>>, %arg3: memref<1x64xf32, #tpu.memory_space<vmem>>, %arg4: memref<64x128xf32, #tpu.memory_space<vmem>>, %arg5: memref<1x128xf32, #tpu.memory_space<vmem>>, %arg6: memref<16x128x24xf32, #tpu.memory_space<vmem>>) attributes {dimension_semantics = [#tpu.dimension_semantics<parallel>], iteration_bounds = array<i64: 1>, scalar_prefetch = 0 : i64, scratch_operands = 0 : i64, tpu.core_type = #tpu.core_type<tc>, window_params = [{transform_indices = @transform_0, window_bounds = array<i64: 16, 128, 24>}, {pipeline_mode = #tpu.pipeline_mode<synchronous>, transform_indices = @transform_1, window_bounds = array<i64: 128, 64>}, {pipeline_mode = #tpu.pipeline_mode<synchronous>, transform_indices = @transform_2, window_bounds = array<i64: 1, 64>}, {pipeline_mode = #tpu.pipeline_mode<synchronous>, transform_indices = @transform_3, window_bounds = array<i64: 64, 128>}, {pipeline_mode = #tpu.pipeline_mode<synchronous>, transform_indices = @transform_4, window_bounds = array<i64: 1, 128>}, {transform_indices = @transform_5, window_bounds = array<i64: 16, 128, 24>}]} {
    %c0 = arith.constant 0 : index
    %c0_0 = arith.constant 0 : index
    %c0_1 = arith.constant 0 : index
    %0 = vector.load %arg1[%c0, %c0_0, %c0_1] : memref<16x128x24xf32, #tpu.memory_space<vmem>>, vector<16x128x24xf32>
    %cst = arith.constant dense<0.000000e+00> : vector<16x128xf32>
    %1 = vector.multi_reduction <add>, %0, %cst [2] : vector<16x128x24xf32> to vector<16x128xf32>
    %c0_2 = arith.constant 0 : index
    %c0_3 = arith.constant 0 : index
    %2 = vector.load %arg2[%c0_2, %c0_3] : memref<128x64xf32, #tpu.memory_space<vmem>>, vector<128x64xf32>
    %cst_4 = arith.constant dense<0.000000e+00> : vector<16x64xf32>
    %3 = tpu.matmul %1, %2, %cst_4 {dimension_numbers = #tpu.dot_dimension_numbers<[1], [0], [0], [1], [0, 0, 1, 1], [], []>} : vector<16x128xf32>, vector<128x64xf32>, vector<16x64xf32> -> vector<16x64xf32>
    %c0_5 = arith.constant 0 : index
    %c0_6 = arith.constant 0 : index
    %4 = vector.load %arg3[%c0_5, %c0_6] : memref<1x64xf32, #tpu.memory_space<vmem>>, vector<1x64xf32>
    %5 = vector.broadcast %4 : vector<1x64xf32> to vector<16x64xf32>
    %6 = arith.addf %3, %5 : vector<16x64xf32>
    %cst_7 = arith.constant 0.000000e+00 : f32
    %7 = vector.broadcast %cst_7 : f32 to vector<16x64xf32>
    %8 = arith.maximumf %6, %7 : vector<16x64xf32>
    %c0_8 = arith.constant 0 : index
    %c0_9 = arith.constant 0 : index
    %9 = vector.load %arg4[%c0_8, %c0_9] : memref<64x128xf32, #tpu.memory_space<vmem>>, vector<64x128xf32>
    %cst_10 = arith.constant dense<0.000000e+00> : vector<16x128xf32>
    %10 = tpu.matmul %8, %9, %cst_10 {dimension_numbers = #tpu.dot_dimension_numbers<[1], [0], [0], [1], [0, 0, 1, 1], [], []>} : vector<16x64xf32>, vector<64x128xf32>, vector<16x128xf32> -> vector<16x128xf32>
    %c0_11 = arith.constant 0 : index
    %c0_12 = arith.constant 0 : index
    %11 = vector.load %arg5[%c0_11, %c0_12] : memref<1x128xf32, #tpu.memory_space<vmem>>, vector<1x128xf32>
    %12 = vector.broadcast %11 : vector<1x128xf32> to vector<16x128xf32>
    %13 = arith.addf %10, %12 : vector<16x128xf32>
    %14 = arith.negf %13 : vector<16x128xf32>
    %15 = math.exp %14 : vector<16x128xf32>
    %cst_13 = arith.constant 1.000000e+00 : f32
    %16 = vector.broadcast %cst_13 : f32 to vector<16x128xf32>
    %17 = arith.addf %16, %15 : vector<16x128xf32>
    %18 = arith.divf %16, %17 : vector<16x128xf32>
    %19 = vector.shape_cast %18 : vector<16x128xf32> to vector<16x128x1xf32>
    %20 = vector.broadcast %19 : vector<16x128x1xf32> to vector<16x128x24xf32>
    %21 = arith.mulf %0, %20 : vector<16x128x24xf32>
    %c0_14 = arith.constant 0 : index
    %c0_15 = arith.constant 0 : index
    %c0_16 = arith.constant 0 : index
    %22 = vector.load %arg6[%c0_14, %c0_15, %c0_16] : memref<16x128x24xf32, #tpu.memory_space<vmem>>, vector<16x128x24xf32>
    tpu.vector_store %arg6[%c0_14, %c0_15, %c0_16], %21 {strides = array<i32>} : memref<16x128x24xf32, #tpu.memory_space<vmem>>, vector<16x128x24xf32>,
    return
  }
  func.func @transform_0(%arg0: i32) -> (i32, i32, i32) {
    %c0_i32 = arith.constant 0 : i32
    %c0_i32_0 = arith.constant 0 : i32
    %c0_i32_1 = arith.constant 0 : i32
    return %arg0, %c0_i32, %c0_i32_0 : i32, i32, i32
  }
  func.func @transform_1(%arg0: i32) -> (i32, i32) {
    %c0_i32 = arith.constant 0 : i32
    %c0_i32_0 = arith.constant 0 : i32
    %c0_i32_1 = arith.constant 0 : i32
    return %c0_i32, %c0_i32_0 : i32, i32
  }
  func.func @transform_2(%arg0: i32) -> (i32, i32) {
    %c0_i32 = arith.constant 0 : i32
    %c0_i32_0 = arith.constant 0 : i32
    %c0_i32_1 = arith.constant 0 : i32
    return %c0_i32, %c0_i32_0 : i32, i32
  }
  func.func @transform_3(%arg0: i32) -> (i32, i32) {
    %c0_i32 = arith.constant 0 : i32
    %c0_i32_0 = arith.constant 0 : i32
    %c0_i32_1 = arith.constant 0 : i32
    return %c0_i32, %c0_i32_0 : i32, i32
  }
  func.func @transform_4(%arg0: i32) -> (i32, i32) {
    %c0_i32 = arith.constant 0 : i32
    %c0_i32_0 = arith.constant 0 : i32
    %c0_i32_1 = arith.constant 0 : i32
    return %c0_i32, %c0_i32_0 : i32, i32
  }
  func.func @transform_5(%arg0: i32) -> (i32, i32, i32) {
    %c0_i32 = arith.constant 0 : i32
    %c0_i32_0 = arith.constant 0 : i32
    %c0_i32_1 = arith.constant 0 : i32
    return %arg0, %c0_i32, %c0_i32_0 : i32, i32, i32
  }
}

</mosaic_0001>

<bundles_post_ra>
// kernel: se_connect.1
= control target key start
LH: loop header
LB: loop body
LE: loop exit
PB: predicated region body
PF: predicated region fallthrough
CT: control target
= control target key end

     0   :  { %vm8940_vm0 = vcmask 195584   ;;  %vm1335_vm1 = vcmask 130112   ;;  %vm1342_vm2 = vcmask 195712   ;;  %vm1349_vm3 = vcmask 261312   ;;  %s8921_s0 = inlined_call_operand.vmem [shape: f32[16,128,24], index: 0, kind: input, shape index: {}]   ;;  %s8922_s1 = inlined_call_operand.vmem [shape: f32[128,64], index: 1, kind: input, shape index: {}]   ;;  %s8923_s3 = inlined_call_operand.vmem [shape: f32[64,128], index: 3, kind: input, shape index: {}]   ;;  %s8924_s2 = inlined_call_operand.vmem [shape: f32[1,64], index: 2, kind: input, shape index: {}]   ;;  %s8925_s4 = inlined_call_operand.vmem [shape: f32[1,128], index: 4, kind: input, shape index: {}]   ;;  %s8926_s5 = inlined_call_operand.vmem [shape: f32[16,128,24], index: 5, kind: output, shape index: {}]  }
   0x1   :  { %v22_v0 = vld [vmem:[%s8921_s0 + $0x10] sm:$0xff]  ;;  %v20_v1 = vld [vmem:[%s8921_s0] sm:$0xff]  ;;  %v23_v2 = vld [vmem:[%s8921_s0 + $0x18] sm:$0xff]  ;;  %vm1356_vm4 = vcmask 326912   ;;  %vm1363_vm5 = vcmask 392512   ;;  %vm1370_vm6 = vcmask 458112  }
   0x2   :  { %v283_v3 = vsel %vm8940_vm0, %v22_v0, 0.0  ;;  %v277_v4 = vsel %vm8940_vm0, %v20_v1, 0.0  ;;  %v21_v5 = vld [vmem:[%s8921_s0 + $0x8] sm:$0xff]  ;;  %v286_v6 = vsel %vm8940_vm0, %v23_v2, 0.0  ;;  %v24_v9 = vld [vmem:[%s8921_s0 + $0x20] sm:$0xff]  ;;  %v27_v12 = vld [vmem:[%s8921_s0 + $0x38] sm:$0xff] }
   0x3   :  { %284 = vadd.xlane.f32.xlu1 %v283_v3  ;;  %278 = vadd.xlane.f32.xlu0 %v277_v4  ;;  %v280_v7 = vsel %vm8940_vm0, %v21_v5, 0.0  ;;  %v25_v8 = vld [vmem:[%s8921_s0 + $0x28] sm:$0xff]  ;;  %v289_v11 = vsel %vm8940_vm0, %v24_v9, 0.0  ;;  %v26_v13 = vld [vmem:[%s8921_s0 + $0x30] sm:$0xff]  ;;  %v298_v14 = vsel %vm8940_vm0, %v27_v12, 0.0  ;;  %v28_v17 = vld [vmem:[%s8921_s0 + $0x40] sm:$0xff] }
   0x4   :  { %v292_v10 = vsel %vm8940_vm0, %v25_v8, 0.0  ;;  %v295_v15 = vsel %vm8940_vm0, %v26_v13, 0.0  ;;  %v29_v16 = vld [vmem:[%s8921_s0 + $0x48] sm:$0xff]  ;;  %v301_v19 = vsel %vm8940_vm0, %v28_v17, 0.0  ;;  %v31_v20 = vld [vmem:[%s8921_s0 + $0x58] sm:$0xff]  ;;  %v30_v21 = vld [vmem:[%s8921_s0 + $0x50] sm:$0xff] }
   0x5   :  { %v304_v18 = vsel %vm8940_vm0, %v29_v16, 0.0  ;;  %v310_v22 = vsel %vm8940_vm0, %v31_v20, 0.0  ;;  %v307_v23 = vsel %vm8940_vm0, %v30_v21, 0.0  ;;  %v33_v24 = vld [vmem:[%s8921_s0 + $0x68] sm:$0xff]  ;;  %v32_v25 = vld [vmem:[%s8921_s0 + $0x60] sm:$0xff]  ;;  %v35_v28 = vld [vmem:[%s8921_s0 + $0x78] sm:$0xff] }
   0x6   :  { %v316_v26 = vsel %vm8940_vm0, %v33_v24, 0.0  ;;  %v313_v27 = vsel %vm8940_vm0, %v32_v25, 0.0  ;;  %v34_v29 = vld [vmem:[%s8921_s0 + $0x70] sm:$0xff]  ;;  %v322_v30 = vsel %vm8940_vm0, %v35_v28, 0.0  ;;  %v37_v32 = vld [vmem:[%s8921_s0 + $0x88] sm:$0xff]  ;;  %v36_v33 = vld [vmem:[%s8921_s0 + $0x80] sm:$0xff] }
   0x7   :  { %287 = vadd.xlane.f32.xlu1 %v286_v6  ;;  %281 = vadd.xlane.f32.xlu0 %v280_v7  ;;  %v319_v31 = vsel %vm8940_vm0, %v34_v29, 0.0  ;;  %v328_v34 = vsel %vm8940_vm0, %v37_v32, 0.0  ;;  %v325_v35 = vsel %vm8940_vm0, %v36_v33, 0.0  ;;  %v39_v36 = vld [vmem:[%s8921_s0 + $0x98] sm:$0xff]  ;;  %v38_v37 = vld [vmem:[%s8921_s0 + $0x90] sm:$0xff]  ;;  %v41_v40 = vld [vmem:[%s8921_s0 + $0xa8] sm:$0xff] }
   0x8   :  { %v334_v38 = vsel %vm8940_vm0, %v39_v36, 0.0  ;;  %v331_v39 = vsel %vm8940_vm0, %v38_v37, 0.0  ;;  %v40_v41 = vld [vmem:[%s8921_s0 + $0xa0] sm:$0xff]  ;;  %v340_v42 = vsel %vm8940_vm0, %v41_v40, 0.0  ;;  %v43_v44 = vld [vmem:[%s8921_s0 + $0xb8] sm:$0xff]  ;;  %v42_v45 = vld [vmem:[%s8921_s0 + $0xb0] sm:$0xff] }
   0x9   :  { %v337_v43 = vsel %vm8940_vm0, %v40_v41, 0.0  ;;  %v346_v46 = vsel %vm8940_vm0, %v43_v44, 0.0  ;;  %v343_v47 = vsel %vm8940_vm0, %v42_v45, 0.0  ;;  %v45_v48 = vld [vmem:[%s8921_s0 + $0xc8] sm:$0xff]  ;;  %v44_v49 = vld [vmem:[%s8921_s0 + $0xc0] sm:$0xff]  ;;  %v47_v52 = vld [vmem:[%s8921_s0 + $0xd8] sm:$0xff] }
   0xa   :  { %v352_v50 = vsel %vm8940_vm0, %v45_v48, 0.0  ;;  %v349_v51 = vsel %vm8940_vm0, %v44_v49, 0.0  ;;  %v46_v53 = vld [vmem:[%s8921_s0 + $0xd0] sm:$0xff]  ;;  %v358_v54 = vsel %vm8940_vm0, %v47_v52, 0.0  ;;  %v49_v56 = vld [vmem:[%s8921_s0 + $0xe8] sm:$0xff]  ;;  %v48_v57 = vld [vmem:[%s8921_s0 + $0xe0] sm:$0xff] }
   0xb   :  { %293 = vadd.xlane.f32.xlu1 %v292_v10  ;;  %290 = vadd.xlane.f32.xlu0 %v289_v11  ;;  %v355_v55 = vsel %vm8940_vm0, %v46_v53, 0.0  ;;  %v364_v58 = vsel %vm8940_vm0, %v49_v56, 0.0  ;;  %v361_v59 = vsel %vm8940_vm0, %v48_v57, 0.0  ;;  %v51_v60 = vld [vmem:[%s8921_s0 + $0xf8] sm:$0xff]  ;;  %v50_v61 = vld [vmem:[%s8921_s0 + $0xf0] sm:$0xff]  ;;  %v53_v0 = vld [vmem:[%s8921_s0 + $0x108] sm:$0xff] }
   0xc   :  { %v370_v62 = vsel %vm8940_vm0, %v51_v60, 0.0  ;;  %v367_v63 = vsel %vm8940_vm0, %v50_v61, 0.0  ;;  %v52_v1 = vld [vmem:[%s8921_s0 + $0x100] sm:$0xff]  ;;  %v376_v2 = vsel %vm8940_vm0, %v53_v0, 0.0  ;;  %v55_v4 = vld [vmem:[%s8921_s0 + $0x118] sm:$0xff]  ;;  %v54_v5 = vld [vmem:[%s8921_s0 + $0x110] sm:$0xff] }
   0xd   :  { %v373_v3 = vsel %vm8940_vm0, %v52_v1, 0.0  ;;  %v382_v6 = vsel %vm8940_vm0, %v55_v4, 0.0  ;;  %v379_v7 = vsel %vm8940_vm0, %v54_v5, 0.0  ;;  %v57_v8 = vld [vmem:[%s8921_s0 + $0x128] sm:$0xff]  ;;  %v56_v9 = vld [vmem:[%s8921_s0 + $0x120] sm:$0xff]  ;;  %v59_v12 = vld [vmem:[%s8921_s0 + $0x138] sm:$0xff] }
   0xe   :  { %v388_v10 = vsel %vm8940_vm0, %v57_v8, 0.0  ;;  %v385_v11 = vsel %vm8940_vm0, %v56_v9, 0.0  ;;  %v58_v13 = vld [vmem:[%s8921_s0 + $0x130] sm:$0xff]  ;;  %v61_v16 = vld [vmem:[%s8921_s0 + $0x148] sm:$0xff]  ;;  %v60_v17 = vld [vmem:[%s8921_s0 + $0x140] sm:$0xff]  ;;  %vm1377_vm7 = vcmask 523712  }
   0xf   :  { %299 = vadd.xlane.f32.xlu1 %v298_v14  ;;  %296 = vadd.xlane.f32.xlu0 %v295_v15  ;;  %v394_v14 = vsel %vm8940_vm0, %v59_v12, 0.0  ;;  %v391_v15 = vsel %vm8940_vm0, %v58_v13, 0.0  ;;  %v63_v20 = vld [vmem:[%s8921_s0 + $0x158] sm:$0xff]  ;;  %v62_v21 = vld [vmem:[%s8921_s0 + $0x150] sm:$0xff]  ;;  %v65_v24 = vld [vmem:[%s8921_s0 + $0x168] sm:$0xff]  ;;  %vm1384_vm8 = vcmask 589312  }
  0x10   :  { %v64_v25 = vld [vmem:[%s8921_s0 + $0x160] sm:$0xff]  ;;  %v67_v28 = vld [vmem:[%s8921_s0 + $0x178] sm:$0xff]  ;;  %v66_v29 = vld [vmem:[%s8921_s0 + $0x170] sm:$0xff]  ;;  %vm1391_vm9 = vcmask 654912   ;;  %vm8933_vm10 = vcmask 720512   ;;  %vm1405_vm11 = vcmask 786112  }
  0x11   :  { %v69_v32 = vld [vmem:[%s8921_s0 + $0x188] sm:$0xff]  ;;  %v68_v33 = vld [vmem:[%s8921_s0 + $0x180] sm:$0xff]  ;;  %v71_v36 = vld [vmem:[%s8921_s0 + $0x198] sm:$0xff]  ;;  %vm8927_vm12 = vcmask 851712   ;;  %vm1419_vm13 = vcmask 917312   ;;  %vm1426_vm14 = vcmask 982912  }
  0x12   :  { %v70_v37 = vld [vmem:[%s8921_s0 + $0x190] sm:$0xff]  ;;  %v73_v40 = vld [vmem:[%s8921_s0 + $0x1a8] sm:$0xff]  ;;  %v72_v41 = vld [vmem:[%s8921_s0 + $0x1a0] sm:$0xff]  ;;  %vm1433_vm15 = vcmask 1048512  }
  0x13   :  { %305 = vadd.xlane.f32.xlu1 %v304_v18  ;;  %302 = vadd.xlane.f32.xlu0 %v301_v19  ;;  %v400_v18 = vsel %vm8940_vm0, %v61_v16, 0.0  ;;  %v397_v19 = vsel %vm8940_vm0, %v60_v17, 0.0  ;;  %v75_v44 = vld [vmem:[%s8921_s0 + $0x1b8] sm:$0xff]  ;;  %v74_v45 = vld [vmem:[%s8921_s0 + $0x1b0] sm:$0xff]  ;;  %v77_v48 = vld [vmem:[%s8921_s0 + $0x1c8] sm:$0xff] }
  0x14   :  { %v76_v49 = vld [vmem:[%s8921_s0 + $0x1c0] sm:$0xff]  ;;  %v79_v52 = vld [vmem:[%s8921_s0 + $0x1d8] sm:$0xff]  ;;  %v78_v53 = vld [vmem:[%s8921_s0 + $0x1d0] sm:$0xff] }
  0x15   :  { %v81_v56 = vld [vmem:[%s8921_s0 + $0x1e8] sm:$0xff]  ;;  %v80_v57 = vld [vmem:[%s8921_s0 + $0x1e0] sm:$0xff]  ;;  %v83_v60 = vld [vmem:[%s8921_s0 + $0x1f8] sm:$0xff] }
  0x16   :  { %v82_v61 = vld [vmem:[%s8921_s0 + $0x1f0] sm:$0xff]  ;;  %v85_v0 = vld [vmem:[%s8921_s0 + $0x208] sm:$0xff]  ;;  %v84_v1 = vld [vmem:[%s8921_s0 + $0x200] sm:$0xff] }
  0x17   :  { %311 = vadd.xlane.f32.xlu1 %v310_v22  ;;  %308 = vadd.xlane.f32.xlu0 %v307_v23  ;;  %v406_v22 = vsel %vm8940_vm0, %v63_v20, 0.0  ;;  %v403_v23 = vsel %vm8940_vm0, %v62_v21, 0.0  ;;  %v87_v4 = vld [vmem:[%s8921_s0 + $0x218] sm:$0xff]  ;;  %v86_v5 = vld [vmem:[%s8921_s0 + $0x210] sm:$0xff]  ;;  %v89_v8 = vld [vmem:[%s8921_s0 + $0x228] sm:$0xff] }
  0x18   :  { %v88_v9 = vld [vmem:[%s8921_s0 + $0x220] sm:$0xff]  ;;  %v91_v13 = vld [vmem:[%s8921_s0 + $0x238] sm:$0xff] }
  0x19   :  { %v481_v12 = vsel %vm8940_vm0, %v88_v9, 0.0  ;;  %v490_v16 = vsel %vm8940_vm0, %v91_v13, 0.0  ;;  %v92_v20 = vld [vmem:[%s8921_s0 + $0x240] sm:$0xff] }
  0x1a   :  { %v100_v9 = vld [vmem:[%s8921_s0 + $0x280] sm:$0xff] }
  0x1b   :  { %317 = vadd.xlane.f32.xlu1 %v316_v26  ;;  %314 = vadd.xlane.f32.xlu0 %v313_v27  ;;  %v412_v26 = vsel %vm8940_vm0, %v65_v24, 0.0  ;;  %v409_v27 = vsel %vm8940_vm0, %v64_v25, 0.0 }
  0x1f   :  { %323 = vadd.xlane.f32.xlu1 %v322_v30  ;;  %320 = vadd.xlane.f32.xlu0 %v319_v31  ;;  %v418_v30 = vsel %vm8940_vm0, %v67_v28, 0.0  ;;  %v415_v31 = vsel %vm8940_vm0, %v66_v29, 0.0  ;;  %v95_v28 = vld [vmem:[%s8921_s0 + $0x258] sm:$0xff] }
  0x23   :  { %329 = vadd.xlane.f32.xlu1 %v328_v34  ;;  %326 = vadd.xlane.f32.xlu0 %v325_v35  ;;  %v424_v34 = vsel %vm8940_vm0, %v69_v32, 0.0  ;;  %v421_v35 = vsel %vm8940_vm0, %v68_v33, 0.0  ;;  %v94_v33 = vld [vmem:[%s8921_s0 + $0x250] sm:$0xff] }
  0x27   :  { %335 = vadd.xlane.f32.xlu1 %v334_v38  ;;  %332 = vadd.xlane.f32.xlu0 %v331_v39  ;;  %v430_v38 = vsel %vm8940_vm0, %v71_v36, 0.0  ;;  %v427_v39 = vsel %vm8940_vm0, %v70_v37, 0.0  ;;  %v502_v36 = vsel %vm8940_vm0, %v95_v28, 0.0 }
  0x2b   :  { %341 = vadd.xlane.f32.xlu1 %v340_v42  ;;  %338 = vadd.xlane.f32.xlu0 %v337_v43  ;;  %v436_v42 = vsel %vm8940_vm0, %v73_v40, 0.0  ;;  %v433_v43 = vsel %vm8940_vm0, %v72_v41, 0.0  ;;  %v97_v41 = vld [vmem:[%s8921_s0 + $0x268] sm:$0xff] }
  0x2f   :  { %347 = vadd.xlane.f32.xlu1 %v346_v46  ;;  %344 = vadd.xlane.f32.xlu0 %v343_v47  ;;  %v442_v46 = vsel %vm8940_vm0, %v75_v44, 0.0  ;;  %v439_v47 = vsel %vm8940_vm0, %v74_v45, 0.0 }
  0x33   :  { %353 = vadd.xlane.f32.xlu1 %v352_v50  ;;  %350 = vadd.xlane.f32.xlu0 %v349_v51  ;;  %v448_v50 = vsel %vm8940_vm0, %v77_v48, 0.0  ;;  %v445_v51 = vsel %vm8940_vm0, %v76_v49, 0.0 }
  0x37   :  { %359 = vadd.xlane.f32.xlu1 %v358_v54  ;;  %356 = vadd.xlane.f32.xlu0 %v355_v55  ;;  %v454_v54 = vsel %vm8940_vm0, %v79_v52, 0.0  ;;  %v451_v55 = vsel %vm8940_vm0, %v78_v53, 0.0 }
  0x3b   :  { %365 = vadd.xlane.f32.xlu1 %v364_v58  ;;  %362 = vadd.xlane.f32.xlu0 %v361_v59  ;;  %v460_v58 = vsel %vm8940_vm0, %v81_v56, 0.0  ;;  %v457_v59 = vsel %vm8940_vm0, %v80_v57, 0.0 }
  0x3f   :  { %371 = vadd.xlane.f32.xlu1 %v370_v62  ;;  %368 = vadd.xlane.f32.xlu0 %v367_v63  ;;  %v466_v62 = vsel %vm8940_vm0, %v83_v60, 0.0  ;;  %v463_v63 = vsel %vm8940_vm0, %v82_v61, 0.0 }
  0x43   :  { %377 = vadd.xlane.f32.xlu1 %v376_v2  ;;  %374 = vadd.xlane.f32.xlu0 %v373_v3  ;;  %v472_v2 = vsel %vm8940_vm0, %v85_v0, 0.0  ;;  %v469_v3 = vsel %vm8940_vm0, %v84_v1, 0.0 }
  0x47   :  { %383 = vadd.xlane.f32.xlu1 %v382_v6  ;;  %380 = vadd.xlane.f32.xlu0 %v379_v7  ;;  %v478_v6 = vsel %vm8940_vm0, %v87_v4, 0.0  ;;  %v475_v7 = vsel %vm8940_vm0, %v86_v5, 0.0 }
  0x4b   :  { %389 = vadd.xlane.f32.xlu1 %v388_v10  ;;  %386 = vadd.xlane.f32.xlu0 %v385_v11  ;;  %v1324_v10 = vlaneseq  ;;  %v484_v11 = vsel %vm8940_vm0, %v89_v8, 0.0  ;;  %v101_v8 = vld [vmem:[%s8921_s0 + $0x288] sm:$0xff] }
  0x4f   :  { %395 = vadd.xlane.f32.xlu1 %v394_v14  ;;  %392 = vadd.xlane.f32.xlu0 %v391_v15  ;;  %v90_v14 = vld [vmem:[%s8921_s0 + $0x230] sm:$0xff]  ;;  %v5133_v15 = vand.u32 127, %v1324_v10 }
  0x50   :  { %v487_v17 = vsel %vm8940_vm0, %v90_v14, 0.0 }
  0x51   :  { %v1344_v21 = vadd.s32 4294967272, %v5133_v15  ;;  %v1358_v29 = vadd.s32 4294967256, %v5133_v15  ;;  %v1365_v44 = vadd.s32 4294967248, %v5133_v15  ;;  %v1386_v60 = vadd.s32 4294967224, %v5133_v15 }
  0x52   :  { %v1379_v0 = vadd.s32 4294967232, %v5133_v15  ;;  %v1393_v14 = vadd.s32 4294967216, %v5133_v15 }
  0x53   :  { %401 = vadd.xlane.f32.xlu1 %v400_v18  ;;  %398 = vadd.xlane.f32.xlu0 %v397_v19  ;;  %v5137_v18 = vshrl.u32 %v1324_v10, 7  ;;  %v93_v19 = vld [vmem:[%s8921_s0 + $0x248] sm:$0xff]  ;;  %v1400_v10 = vadd.s32 4294967208, %v5133_v15 }
  0x55   :  { %8941 = vst [vmem:[#allocation2_spill] sm:$0xff] %v5137_v18  ;;  %v5174_v40 = vsub.s32 %v1358_v29, %v5137_v18  ;;  %v5199_v57 = vsub.s32 %v1365_v44, %v5137_v18  ;;  %v5229_v13 = vsub.s32 %v1379_v0, %v5137_v18  ;;  %v5247_v29 = vsub.s32 %v1400_v10, %v5137_v18  ;;  %v108_v10 = vld [vmem:[%s8921_s0 + $0x2c0] sm:$0xff] }
  0x57   :  { %407 = vadd.xlane.f32.xlu1 %v406_v22  ;;  %404 = vadd.xlane.f32.xlu0 %v403_v23  ;;  %v1330_v22 = vadd.s32 4294967288, %v5133_v15  ;;  %v1337_v23 = vadd.s32 4294967280, %v5133_v15 }
  0x59   :  { %v5162_v32 = vsub.s32 %v1330_v22, %v5137_v18 }
  0x5b   :  { %413 = vadd.xlane.f32.xlu1 %v412_v26  ;;  %410 = vadd.xlane.f32.xlu0 %v409_v27  ;;  %v496_v26 = vsel %vm8940_vm0, %v93_v19, 0.0  ;;  %v493_v27 = vsel %vm8940_vm0, %v92_v20, 0.0  ;;  %v517_v19 = vsel %vm8940_vm0, %v100_v9, 0.0  ;;  %v109_v9 = vld [vmem:[%s8921_s0 + $0x2c8] sm:$0xff] }
  0x5f   :  { %419 = vadd.xlane.f32.xlu1 %v418_v30  ;;  %416 = vadd.xlane.f32.xlu0 %v415_v31  ;;  %v5156_v30 = vsub.s32 %v5133_v15, %v5137_v18  ;;  %v5159_v31 = vsub.s32 %v1344_v21, %v5137_v18 }
  0x63   :  { %425 = vadd.xlane.f32.xlu1 %v424_v34  ;;  %422 = vadd.xlane.f32.xlu0 %v421_v35  ;;  %v1351_v34 = vadd.s32 4294967264, %v5133_v15  ;;  %v5169_v35 = vsub.s32 %v1337_v23, %v5137_v18  ;;  %v103_v23 = vld [vmem:[%s8921_s0 + $0x298] sm:$0xff] }
  0x65   :  { %v5188_v48 = vsub.s32 %v1351_v34, %v5137_v18 }
  0x67   :  { %431 = vadd.xlane.f32.xlu1 %v430_v38  ;;  %428 = vadd.xlane.f32.xlu0 %v427_v39  ;;  %v499_v39 = vsel %vm8940_vm0, %v94_v33, 0.0  ;;  %v5250_v33 = vsub.s32 %v1393_v14, %v5137_v18 }
  0x6b   :  { %437 = vadd.xlane.f32.xlu1 %v436_v42  ;;  %434 = vadd.xlane.f32.xlu0 %v433_v43  ;;  %v96_v42 = vld [vmem:[%s8921_s0 + $0x260] sm:$0xff]  ;;  %v1372_v43 = vadd.s32 4294967240, %v5133_v15 }
  0x6c   :  { %v505_v52 = vsel %vm8940_vm0, %v96_v42, 0.0 }
  0x6d   :  { %v5196_v56 = vsub.s32 %v1372_v43, %v5137_v18 }
  0x6f   :  { %443 = vadd.xlane.f32.xlu1 %v442_v46  ;;  %440 = vadd.xlane.f32.xlu0 %v439_v47 }
  0x73   :  { %449 = vadd.xlane.f32.xlu1 %v448_v50  ;;  %446 = vadd.xlane.f32.xlu0 %v445_v51  ;;  %v508_v51 = vsel %vm8940_vm0, %v97_v41, 0.0 }
  0x77   :  { %455 = vadd.xlane.f32.xlu1 %v454_v54  ;;  %452 = vadd.xlane.f32.xlu0 %v451_v55 }
  0x7b   :  { %461 = vadd.xlane.f32.xlu1 %v460_v58  ;;  %458 = vadd.xlane.f32.xlu0 %v457_v59  ;;  %v99_v58 = vld [vmem:[%s8921_s0 + $0x278] sm:$0xff]  ;;  %v98_v59 = vld [vmem:[%s8921_s0 + $0x270] sm:$0xff] }
  0x7f   :  { %467 = vadd.xlane.f32.xlu1 %v466_v62  ;;  %464 = vadd.xlane.f32.xlu0 %v463_v63 }
  0x83   :  { %473 = vadd.xlane.f32.xlu1 %v472_v2  ;;  %470 = vadd.xlane.f32.xlu0 %v469_v3  ;;  %v514_v2 = vsel %vm8940_vm0, %v99_v58, 0.0  ;;  %v511_v3 = vsel %vm8940_vm0, %v98_v59, 0.0 }
  0x87   :  { %479 = vadd.xlane.f32.xlu1 %v478_v6  ;;  %476 = vadd.xlane.f32.xlu0 %v475_v7  ;;  %v5217_v7 = vsub.s32 %v1386_v60, %v5137_v18 }
  0x8b   :  { %485 = vadd.xlane.f32.xlu1 %v484_v11  ;;  %482 = vadd.xlane.f32.xlu0 %v481_v12 }
  0x8f   :  { %491 = vadd.xlane.f32.xlu1 %v490_v16  ;;  %488 = vadd.xlane.f32.xlu0 %v487_v17  ;;  %v520_v17 = vsel %vm8940_vm0, %v101_v8, 0.0 }
  0x90   :  { %v285_v24 = vpop.xlane.xlu1 %284  ;;  %v279_v25 = vpop.xlane.xlu0 %278 }
  0x91   :  { %v1329_v45 = vrot.slane %v279_v25, %v5156_v30  ;;  %v1341_v49 = vrot.slane %v285_v24, %v5169_v35  ;;  %v102_v24 = vld [vmem:[%s8921_s0 + $0x290] sm:$0xff]  ;;  %v1414_v25 = vadd.s32 4294967192, %v5133_v15 }
  0x93   :  { %497 = vadd.xlane.f32.xlu1 %v496_v26  ;;  %494 = vadd.xlane.f32.xlu0 %v493_v27  ;;  %v1407_v26 = vadd.s32 4294967200, %v5133_v15  ;;  %v5257_v42 = vsub.s32 %v1414_v25, %v5137_v18 }
  0x94   :  { %v288_v37 = vpop.xlane.xlu1 %287  ;;  %v282_v38 = vpop.xlane.xlu0 %281 }
  0x95   :  { %v1348_v46 = vrot.slane %v288_v37, %v5159_v31  ;;  %v1334_v47 = vrot.slane %v282_v38, %v5162_v32  ;;  %v523_v37 = vsel %vm8940_vm0, %v102_v24, 0.0  ;;  %v5260_v43 = vsub.s32 %v1407_v26, %v5137_v18 }
  0x97   :  { %v1336_v50 = vsel %vm1335_vm1, %v1334_v47, %v1329_v45  ;;  %503 = vadd.xlane.f32.xlu1 %v502_v36  ;;  %500 = vadd.xlane.f32.xlu0 %v499_v39  ;;  %v526_v36 = vsel %vm8940_vm0, %v103_v23, 0.0  ;;  %v104_v47 = vld [vmem:[%s8921_s0 + $0x2a0] sm:$0xff]  ;;  %v110_v23 = vld [vmem:[%s8921_s0 + $0x2d0] sm:$0xff] }
  0x98   :  { %v1343_v53 = vsel %vm1342_vm2, %v1341_v49, %v1336_v50  ;;  %v294_v54 = vpop.xlane.xlu1 %293  ;;  %v291_v55 = vpop.xlane.xlu0 %290  ;;  %v1428_v49 = vadd.s32 4294967176, %v5133_v15  ;;  %v1421_v50 = vadd.s32 4294967184, %v5133_v15  ;;  %v529_v58 = vsel %vm8940_vm0, %v104_v47, 0.0 }
  0x99   :  { %v1362_v61 = vrot.slane %v294_v54, %v5174_v40  ;;  %v1350_v62 = vsel %vm1349_vm3, %v1348_v46, %v1343_v53  ;;  %v1355_v63 = vrot.slane %v291_v55, %v5188_v48  ;;  %v105_v46 = vld [vmem:[%s8921_s0 + $0x2a8] sm:$0xff] }
  0x9a   :  { %v532_v55 = vsel %vm8940_vm0, %v105_v46, 0.0  ;;  %v5279_v15 = vsub.s32 %v1428_v49, %v5137_v18 }
  0x9b   :  { %v1357_v1 = vsel %vm1356_vm4, %v1355_v63, %v1350_v62  ;;  %509 = vadd.xlane.f32.xlu1 %v508_v51  ;;  %506 = vadd.xlane.f32.xlu0 %v505_v52  ;;  %v107_v62 = vld [vmem:[%s8921_s0 + $0x2b8] sm:$0xff]  ;;  %v106_v63 = vld [vmem:[%s8921_s0 + $0x2b0] sm:$0xff] }
  0x9c   :  { %v300_v4 = vpop.xlane.xlu1 %299  ;;  %v1364_v5 = vsel %vm1363_vm5, %v1362_v61, %v1357_v1  ;;  %v297_v6 = vpop.xlane.xlu0 %296  ;;  %8942 = vst [vmem:[#allocation3_spill] sm:$0xff] %v5279_v15  ;;  %v5282_v61 = vsub.s32 %v1421_v50, %v5137_v18 }
  0x9d   :  { %v1376_v11 = vrot.slane %v300_v4, %v5196_v56  ;;  %v1369_v12 = vrot.slane %v297_v6, %v5199_v57  ;;  %v538_v4 = vsel %vm8940_vm0, %v107_v62, 0.0 }
  0x9f   :  { %v1371_v16 = vsel %vm1370_vm6, %v1369_v12, %v1364_v5  ;;  %515 = vadd.xlane.f32.xlu1 %v514_v2  ;;  %512 = vadd.xlane.f32.xlu0 %v511_v3  ;;  %v535_v5 = vsel %vm8940_vm0, %v106_v63, 0.0 }
  0xa0   :  { %v306_v20 = vpop.xlane.xlu1 %305  ;;  %v1378_v21 = vsel %vm1377_vm7, %v1376_v11, %v1371_v16  ;;  %v303_v22 = vpop.xlane.xlu0 %302 }
  0xa1   :  { %v1390_v27 = vrot.slane %v306_v20, %v5217_v7  ;;  %v1383_v28 = vrot.slane %v303_v22, %v5229_v13  ;;  %v111_v22 = vld [vmem:[%s8921_s0 + $0x2d8] sm:$0xff] }
  0xa3   :  { %v1385_v34 = vsel %vm1384_vm8, %v1383_v28, %v1378_v21  ;;  %521 = vadd.xlane.f32.xlu1 %v520_v17  ;;  %518 = vadd.xlane.f32.xlu0 %v517_v19  ;;  %v544_v17 = vsel %vm8940_vm0, %v109_v9, 0.0  ;;  %v541_v19 = vsel %vm8940_vm0, %v108_v10, 0.0  ;;  %v547_v28 = vsel %vm8940_vm0, %v110_v23, 0.0 }
  0xa4   :  { %v312_v38 = vpop.xlane.xlu1 %311  ;;  %v1392_v39 = vsel %vm1391_vm9, %v1390_v27, %v1385_v34  ;;  %v309_v41 = vpop.xlane.xlu0 %308  ;;  %v550_v27 = vsel %vm8940_vm0, %v111_v22, 0.0 }
  0xa5   :  { %v1404_v44 = vrot.slane %v312_v38, %v5247_v29  ;;  %v1397_v45 = vrot.slane %v309_v41, %v5250_v33  ;;  %v112_v38 = vld [vmem:[%s8921_s0 + $0x2e0] sm:$0xff] }
  0xa6   :  { %v553_v47 = vsel %vm8940_vm0, %v112_v38, 0.0 }
  0xa7   :  { %v1399_v51 = vsel %vm8933_vm10, %v1397_v45, %v1392_v39  ;;  %527 = vadd.xlane.f32.xlu1 %v526_v36  ;;  %524 = vadd.xlane.f32.xlu0 %v523_v37  ;;  %v113_v37 = vld [vmem:[%s8921_s0 + $0x2e8] sm:$0xff] }
  0xa8   :  { %v318_v52 = vpop.xlane.xlu1 %317  ;;  %v1406_v53 = vsel %vm1405_vm11, %v1404_v44, %v1399_v51  ;;  %v315_v54 = vpop.xlane.xlu0 %314  ;;  %v556_v46 = vsel %vm8940_vm0, %v113_v37, 0.0  ;;  %v115_v51 = vld [vmem:[%s8921_s0 + $0x2f8] sm:$0xff] }
  0xa9   :  { %v1418_v59 = vrot.slane %v318_v52, %v5257_v42  ;;  %v1411_v60 = vrot.slane %v315_v54, %v5260_v43  ;;  %v114_v52 = vld [vmem:[%s8921_s0 + $0x2f0] sm:$0xff] }
  0xab   :  { %v1413_v0 = vsel %vm8927_vm12, %v1411_v60, %v1406_v53  ;;  %533 = vadd.xlane.f32.xlu1 %v532_v55  ;;  %530 = vadd.xlane.f32.xlu0 %v529_v58  ;;  %v559_v60 = vsel %vm8940_vm0, %v114_v52, 0.0 }
  0xac   :  { %v324_v1 = vpop.xlane.xlu1 %323  ;;  %v1420_v2 = vsel %vm1419_vm13, %v1418_v59, %v1413_v0  ;;  %v321_v3 = vpop.xlane.xlu0 %320  ;;  %v562_v59 = vsel %vm8940_vm0, %v115_v51, 0.0  ;;  %v117_v0 = vld [vmem:[%s8921_s0 + $0x308] sm:$0xff] }
  0xad   :  { %v1432_v6 = vrot.slane %v324_v1, %v5279_v15  ;;  %v1425_v8 = vrot.slane %v321_v3, %v5282_v61  ;;  %v116_v1 = vld [vmem:[%s8921_s0 + $0x300] sm:$0xff] }
  0xaf   :  { %v1427_v11 = vsel %vm1426_vm14, %v1425_v8, %v1420_v2  ;;  %539 = vadd.xlane.f32.xlu1 %v538_v4  ;;  %536 = vadd.xlane.f32.xlu0 %v535_v5  ;;  %v565_v8 = vsel %vm8940_vm0, %v116_v1, 0.0 }
  0xb0   :  { %v5304_v12 = vsel %vm1433_vm15, %v1432_v6, %v1427_v11  ;;  %v330_v14 = vpop.xlane.xlu1 %329  ;;  %v327_v16 = vpop.xlane.xlu0 %326  ;;  %v568_v6 = vsel %vm8940_vm0, %v117_v0, 0.0  ;;  %v119_v11 = vld [vmem:[%s8921_s0 + $0x318] sm:$0xff] }
  0xb1   :  { %v1442_v20 = vrot.slane %v330_v14, %v5162_v32  ;;  %v1438_v21 = vrot.slane %v327_v16, %v5156_v30  ;;  %v118_v14 = vld [vmem:[%s8921_s0 + $0x310] sm:$0xff] }
  0xb2   :  { %v571_v22 = vsel %vm8940_vm0, %v118_v14, 0.0 }
  0xb3   :  { %v1443_v24 = vsel %vm1335_vm1, %v1442_v20, %v1438_v21  ;;  %545 = vadd.xlane.f32.xlu1 %v544_v17  ;;  %542 = vadd.xlane.f32.xlu0 %v541_v19  ;;  %v574_v21 = vsel %vm8940_vm0, %v119_v11, 0.0 }
  0xb4   :  { %v336_v25 = vpop.xlane.xlu1 %335  ;;  %v333_v26 = vpop.xlane.xlu0 %332 }
  0xb5   :  { %v1452_v34 = vrot.slane %v336_v25, %v5159_v31  ;;  %v1447_v36 = vrot.slane %v333_v26, %v5169_v35  ;;  %v121_v25 = vld [vmem:[%s8921_s0 + $0x328] sm:$0xff]  ;;  %v120_v26 = vld [vmem:[%s8921_s0 + $0x320] sm:$0xff] }
  0xb6   :  { %v580_v37 = vsel %vm8940_vm0, %v121_v25, 0.0  ;;  %v577_v38 = vsel %vm8940_vm0, %v120_v26, 0.0 }
  0xb7   :  { %v1448_v39 = vsel %vm1342_vm2, %v1447_v36, %v1443_v24  ;;  %551 = vadd.xlane.f32.xlu1 %v550_v27  ;;  %548 = vadd.xlane.f32.xlu0 %v547_v28 }
  0xb8   :  { %v342_v41 = vpop.xlane.xlu1 %341  ;;  %v1453_v44 = vsel %vm1349_vm3, %v1452_v34, %v1448_v39  ;;  %v339_v45 = vpop.xlane.xlu0 %338 }
  0xb9   :  { %v1462_v49 = vrot.slane %v342_v41, %v5174_v40  ;;  %v1457_v50 = vrot.slane %v339_v45, %v5188_v48  ;;  %v122_v45 = vld [vmem:[%s8921_s0 + $0x330] sm:$0xff] }
  0xba   :  { %v583_v52 = vsel %vm8940_vm0, %v122_v45, 0.0 }
  0xbb   :  { %v1458_v53 = vsel %vm1356_vm4, %v1457_v50, %v1453_v44  ;;  %557 = vadd.xlane.f32.xlu1 %v556_v46  ;;  %554 = vadd.xlane.f32.xlu0 %v553_v47  ;;  %v123_v44 = vld [vmem:[%s8921_s0 + $0x338] sm:$0xff] }
  0xbc   :  { %v348_v54 = vpop.xlane.xlu1 %347  ;;  %v1463_v55 = vsel %vm1363_vm5, %v1462_v49, %v1458_v53  ;;  %v345_v58 = vpop.xlane.xlu0 %344  ;;  %v586_v51 = vsel %vm8940_vm0, %v123_v44, 0.0 }
  0xbd   :  { %v1472_v62 = vrot.slane %v348_v54, %v5196_v56  ;;  %v1467_v63 = vrot.slane %v345_v58, %v5199_v57  ;;  %v124_v58 = vld [vmem:[%s8921_s0 + $0x340] sm:$0xff] }
  0xbe   :  { %v589_v1 = vsel %vm8940_vm0, %v124_v58, 0.0 }
  0xbf   :  { %v1468_v2 = vsel %vm1370_vm6, %v1467_v63, %v1463_v55  ;;  %563 = vadd.xlane.f32.xlu1 %v562_v59  ;;  %560 = vadd.xlane.f32.xlu0 %v559_v60  ;;  %v125_v55 = vld [vmem:[%s8921_s0 + $0x348] sm:$0xff] }
  0xc0   :  { %v354_v3 = vpop.xlane.xlu1 %353  ;;  %v1473_v4 = vsel %vm1377_vm7, %v1472_v62, %v1468_v2  ;;  %v351_v5 = vpop.xlane.xlu0 %350  ;;  %v592_v0 = vsel %vm8940_vm0, %v125_v55, 0.0 }
  0xc1   :  { %v1482_v9 = vrot.slane %v354_v3, %v5217_v7  ;;  %v1477_v10 = vrot.slane %v351_v5, %v5229_v13  ;;  %v127_v5 = vld [vmem:[%s8921_s0 + $0x358] sm:$0xff] }
  0xc3   :  { %v1478_v16 = vsel %vm1384_vm8, %v1477_v10, %v1473_v4  ;;  %569 = vadd.xlane.f32.xlu1 %v568_v6  ;;  %566 = vadd.xlane.f32.xlu0 %v565_v8  ;;  %v126_v6 = vld [vmem:[%s8921_s0 + $0x350] sm:$0xff] }
  0xc4   :  { %v360_v17 = vpop.xlane.xlu1 %359  ;;  %v1483_v19 = vsel %vm1391_vm9, %v1482_v9, %v1478_v16  ;;  %v357_v20 = vpop.xlane.xlu0 %356  ;;  %v595_v11 = vsel %vm8940_vm0, %v126_v6, 0.0 }
  0xc5   :  { %v1492_v23 = vrot.slane %v360_v17, %v5247_v29  ;;  %v1487_v24 = vrot.slane %v357_v20, %v5250_v33  ;;  %v129_v17 = vld [vmem:[%s8921_s0 + $0x368] sm:$0xff] }
  0xc7   :  { %v1488_v27 = vsel %vm8933_vm10, %v1487_v24, %v1483_v19  ;;  %575 = vadd.xlane.f32.xlu1 %v574_v21  ;;  %572 = vadd.xlane.f32.xlu0 %v571_v22  ;;  %v128_v19 = vld [vmem:[%s8921_s0 + $0x360] sm:$0xff]  ;;  %v604_v24 = vsel %vm8940_vm0, %v129_v17, 0.0 }
  0xc8   :  { %v366_v28 = vpop.xlane.xlu1 %365  ;;  %v1493_v34 = vsel %vm1405_vm11, %v1492_v23, %v1488_v27  ;;  %v363_v36 = vpop.xlane.xlu0 %362  ;;  %v601_v25 = vsel %vm8940_vm0, %v128_v19, 0.0 }
  0xc9   :  { %v1502_v39 = vrot.slane %v366_v28, %v5257_v42  ;;  %v1497_v41 = vrot.slane %v363_v36, %v5260_v43  ;;  %v131_v28 = vld [vmem:[%s8921_s0 + $0x378] sm:$0xff] }
  0xcb   :  { %v1498_v46 = vsel %vm8927_vm12, %v1497_v41, %v1493_v34  ;;  %581 = vadd.xlane.f32.xlu1 %v580_v37  ;;  %578 = vadd.xlane.f32.xlu0 %v577_v38  ;;  %vm8928_vm12 = vcmask 1041409   ;;  %v130_v34 = vld [vmem:[%s8921_s0 + $0x370] sm:$0xff]  ;;  %v610_v41 = vsel %vm8940_vm0, %v131_v28, 0.0 }
  0xcc   :  { %v372_v47 = vpop.xlane.xlu1 %371  ;;  %v1503_v49 = vsel %vm1419_vm13, %v1502_v39, %v1498_v46  ;;  %v369_v50 = vpop.xlane.xlu0 %368  ;;  %v607_v44 = vsel %vm8940_vm0, %v130_v34, 0.0 }
  0xcd   :  { %v1512_v53 = vrot.slane %v372_v47, %v5279_v15  ;;  %v1507_v54 = vrot.slane %v369_v50, %v5282_v61  ;;  %v133_v47 = vld [vmem:[%s8921_s0 + $0x388] sm:$0xff] }
  0xcf   :  { %v1508_v59 = vsel %vm1426_vm14, %v1507_v54, %v1503_v49  ;;  %587 = vadd.xlane.f32.xlu1 %v586_v51  ;;  %584 = vadd.xlane.f32.xlu0 %v583_v52  ;;  %v132_v49 = vld [vmem:[%s8921_s0 + $0x380] sm:$0xff]  ;;  %v616_v54 = vsel %vm8940_vm0, %v133_v47, 0.0 }
  0xd0   :  { %v1513_v60 = vsel %vm1433_vm15, %v1512_v53, %v1508_v59  ;;  %v378_v62 = vpop.xlane.xlu1 %377  ;;  %v375_v63 = vpop.xlane.xlu0 %374  ;;  %v613_v55 = vsel %vm8940_vm0, %v132_v49, 0.0 }
  0xd1   :  { %v5405_v2 = vsel %vm8928_vm12, %v1513_v60, %v5304_v12  ;;  %v1521_v3 = vrot.slane %v378_v62, %v5162_v32  ;;  %v1517_v4 = vrot.slane %v375_v63, %v5156_v30  ;;  %v598_v12 = vsel %vm8940_vm0, %v127_v5, 0.0  ;;  %v135_v60 = vld [vmem:[%s8921_s0 + $0x398] sm:$0xff]  ;;  %v134_v62 = vld [vmem:[%s8921_s0 + $0x390] sm:$0xff] }
  0xd2   :  { %v619_v5 = vsel %vm8940_vm0, %v134_v62, 0.0  ;;  %vm8943_vm12 = vcmask 851712  }
  0xd3   :  { %v1522_v8 = vsel %vm1335_vm1, %v1521_v3, %v1517_v4  ;;  %593 = vadd.xlane.f32.xlu1 %v592_v0  ;;  %590 = vadd.xlane.f32.xlu0 %v589_v1  ;;  %v622_v4 = vsel %vm8940_vm0, %v135_v60, 0.0 }
  0xd4   :  { %v384_v9 = vpop.xlane.xlu1 %383  ;;  %v381_v10 = vpop.xlane.xlu0 %380 }
  0xd5   :  { %v1531_v14 = vrot.slane %v384_v9, %v5159_v31  ;;  %v1526_v16 = vrot.slane %v381_v10, %v5169_v35  ;;  %v137_v9 = vld [vmem:[%s8921_s0 + $0x3a8] sm:$0xff]  ;;  %v136_v10 = vld [vmem:[%s8921_s0 + $0x3a0] sm:$0xff] }
  0xd6   :  { %v628_v17 = vsel %vm8940_vm0, %v137_v9, 0.0  ;;  %v625_v19 = vsel %vm8940_vm0, %v136_v10, 0.0 }
  0xd7   :  { %v1527_v20 = vsel %vm1342_vm2, %v1526_v16, %v1522_v8  ;;  %599 = vadd.xlane.f32.xlu1 %v598_v12  ;;  %596 = vadd.xlane.f32.xlu0 %v595_v11 }
  0xd8   :  { %v390_v21 = vpop.xlane.xlu1 %389  ;;  %v1532_v22 = vsel %vm1349_vm3, %v1531_v14, %v1527_v20  ;;  %v387_v23 = vpop.xlane.xlu0 %386 }
  0xd9   :  { %v1541_v26 = vrot.slane %v390_v21, %v5174_v40  ;;  %v1536_v27 = vrot.slane %v387_v23, %v5188_v48  ;;  %v138_v23 = vld [vmem:[%s8921_s0 + $0x3b0] sm:$0xff] }
  0xda   :  { %v631_v34 = vsel %vm8940_vm0, %v138_v23, 0.0 }
  0xdb   :  { %v1537_v36 = vsel %vm1356_vm4, %v1536_v27, %v1532_v22  ;;  %605 = vadd.xlane.f32.xlu1 %v604_v24  ;;  %602 = vadd.xlane.f32.xlu0 %v601_v25  ;;  %v139_v22 = vld [vmem:[%s8921_s0 + $0x3b8] sm:$0xff] }
  0xdc   :  { %v396_v37 = vpop.xlane.xlu1 %395  ;;  %v1542_v38 = vsel %vm1363_vm5, %v1541_v26, %v1537_v36  ;;  %v393_v39 = vpop.xlane.xlu0 %392  ;;  %v634_v28 = vsel %vm8940_vm0, %v139_v22, 0.0 }
  0xdd   :  { %v1551_v45 = vrot.slane %v396_v37, %v5196_v56  ;;  %v1546_v46 = vrot.slane %v393_v39, %v5199_v57  ;;  %v140_v39 = vld [vmem:[%s8921_s0 + $0x3c0] sm:$0xff] }
  0xde   :  { %v637_v49 = vsel %vm8940_vm0, %v140_v39, 0.0 }
  0xdf   :  { %v1547_v50 = vsel %vm1370_vm6, %v1546_v46, %v1542_v38  ;;  %611 = vadd.xlane.f32.xlu1 %v610_v41  ;;  %608 = vadd.xlane.f32.xlu0 %v607_v44  ;;  %v141_v38 = vld [vmem:[%s8921_s0 + $0x3c8] sm:$0xff] }
  0xe0   :  { %v402_v51 = vpop.xlane.xlu1 %401  ;;  %v1552_v52 = vsel %vm1377_vm7, %v1551_v45, %v1547_v50  ;;  %v399_v53 = vpop.xlane.xlu0 %398  ;;  %v640_v47 = vsel %vm8940_vm0, %v141_v38, 0.0 }
  0xe1   :  { %v1561_v58 = vrot.slane %v402_v51, %v5217_v7  ;;  %v1556_v59 = vrot.slane %v399_v53, %v5229_v13  ;;  %v143_v53 = vld [vmem:[%s8921_s0 + $0x3d8] sm:$0xff] }
  0xe3   :  { %v1557_v63 = vsel %vm1384_vm8, %v1556_v59, %v1552_v52  ;;  %617 = vadd.xlane.f32.xlu1 %v616_v54  ;;  %614 = vadd.xlane.f32.xlu0 %v613_v55  ;;  %v142_v54 = vld [vmem:[%s8921_s0 + $0x3d0] sm:$0xff] }
  0xe4   :  { %v408_v0 = vpop.xlane.xlu1 %407  ;;  %v1562_v1 = vsel %vm1391_vm9, %v1561_v58, %v1557_v63  ;;  %v405_v3 = vpop.xlane.xlu0 %404  ;;  %v643_v60 = vsel %vm8940_vm0, %v142_v54, 0.0 }
  0xe5   :  { %v1571_v6 = vrot.slane %v408_v0, %v5247_v29  ;;  %v1566_v8 = vrot.slane %v405_v3, %v5250_v33  ;;  %v145_v0 = vld [vmem:[%s8921_s0 + $0x3e8] sm:$0xff] }
  0xe7   :  { %v1567_v12 = vsel %vm8933_vm10, %v1566_v8, %v1562_v1  ;;  %623 = vadd.xlane.f32.xlu1 %v622_v4  ;;  %620 = vadd.xlane.f32.xlu0 %v619_v5  ;;  %v144_v1 = vld [vmem:[%s8921_s0 + $0x3e0] sm:$0xff]  ;;  %v652_v8 = vsel %vm8940_vm0, %v145_v0, 0.0 }
  0xe8   :  { %v414_v11 = vpop.xlane.xlu1 %413  ;;  %v1572_v14 = vsel %vm1405_vm11, %v1571_v6, %v1567_v12  ;;  %v411_v16 = vpop.xlane.xlu0 %410  ;;  %v649_v9 = vsel %vm8940_vm0, %v144_v1, 0.0 }
  0xe9   :  { %v1581_v20 = vrot.slane %v414_v11, %v5257_v42  ;;  %v1576_v21 = vrot.slane %v411_v16, %v5260_v43  ;;  %v147_v11 = vld [vmem:[%s8921_s0 + $0x3f8] sm:$0xff] }
  0xeb   :  { %v1577_v24 = vsel %vm8943_vm12, %v1576_v21, %v1572_v14  ;;  %629 = vadd.xlane.f32.xlu1 %v628_v17  ;;  %626 = vadd.xlane.f32.xlu0 %v625_v19  ;;  %vm8929_vm12 = vcmask 1042434   ;;  %v146_v14 = vld [vmem:[%s8921_s0 + $0x3f0] sm:$0xff]  ;;  %v658_v21 = vsel %vm8940_vm0, %v147_v11, 0.0 }
  0xec   :  { %v420_v25 = vpop.xlane.xlu1 %419  ;;  %v1582_v26 = vsel %vm1419_vm13, %v1581_v20, %v1577_v24  ;;  %v417_v27 = vpop.xlane.xlu0 %416  ;;  %v655_v22 = vsel %vm8940_vm0, %v146_v14, 0.0 }
  0xed   :  { %v1591_v36 = vrot.slane %v420_v25, %v5279_v15  ;;  %v1586_v37 = vrot.slane %v417_v27, %v5282_v61  ;;  %v149_v25 = vld [vmem:[%s8921_s0 + $0x408] sm:$0xff] }
  0xef   :  { %v1587_v41 = vsel %vm1426_vm14, %v1586_v37, %v1582_v26  ;;  %635 = vadd.xlane.f32.xlu1 %v634_v28  ;;  %632 = vadd.xlane.f32.xlu0 %v631_v34  ;;  %v148_v26 = vld [vmem:[%s8921_s0 + $0x400] sm:$0xff]  ;;  %v664_v37 = vsel %vm8940_vm0, %v149_v25, 0.0 }
  0xf0   :  { %v1592_v44 = vsel %vm1433_vm15, %v1591_v36, %v1587_v41  ;;  %v426_v45 = vpop.xlane.xlu1 %425  ;;  %v423_v46 = vpop.xlane.xlu0 %422  ;;  %v661_v38 = vsel %vm8940_vm0, %v148_v26, 0.0 }
  0xf1   :  { %v5504_v50 = vsel %vm8929_vm12, %v1592_v44, %v5405_v2  ;;  %v1600_v51 = vrot.slane %v426_v45, %v5162_v32  ;;  %v1596_v52 = vrot.slane %v423_v46, %v5156_v30  ;;  %v646_v2 = vsel %vm8940_vm0, %v143_v53, 0.0  ;;  %v151_v44 = vld [vmem:[%s8921_s0 + $0x418] sm:$0xff]  ;;  %v150_v45 = vld [vmem:[%s8921_s0 + $0x410] sm:$0xff] }
  0xf2   :  { %v667_v53 = vsel %vm8940_vm0, %v150_v45, 0.0  ;;  %vm8944_vm12 = vcmask 851712  }
  0xf3   :  { %v1601_v55 = vsel %vm1335_vm1, %v1600_v51, %v1596_v52  ;;  %641 = vadd.xlane.f32.xlu1 %v640_v47  ;;  %638 = vadd.xlane.f32.xlu0 %v637_v49  ;;  %v670_v52 = vsel %vm8940_vm0, %v151_v44, 0.0 }
  0xf4   :  { %v432_v58 = vpop.xlane.xlu1 %431  ;;  %v429_v59 = vpop.xlane.xlu0 %428 }
  0xf5   :  { %v1610_v62 = vrot.slane %v432_v58, %v5159_v31  ;;  %v1605_v63 = vrot.slane %v429_v59, %v5169_v35  ;;  %v153_v58 = vld [vmem:[%s8921_s0 + $0x428] sm:$0xff]  ;;  %v152_v59 = vld [vmem:[%s8921_s0 + $0x420] sm:$0xff] }
  0xf6   :  { %v676_v0 = vsel %vm8940_vm0, %v153_v58, 0.0  ;;  %v673_v1 = vsel %vm8940_vm0, %v152_v59, 0.0 }
  0xf7   :  { %v1606_v3 = vsel %vm1342_vm2, %v1605_v63, %v1601_v55  ;;  %647 = vadd.xlane.f32.xlu1 %v646_v2  ;;  %644 = vadd.xlane.f32.xlu0 %v643_v60 }
  0xf8   :  { %v438_v4 = vpop.xlane.xlu1 %437  ;;  %v1611_v5 = vsel %vm1349_vm3, %v1610_v62, %v1606_v3  ;;  %v435_v6 = vpop.xlane.xlu0 %434 }
  0xf9   :  { %v1620_v10 = vrot.slane %v438_v4, %v5174_v40  ;;  %v1615_v12 = vrot.slane %v435_v6, %v5188_v48  ;;  %v154_v6 = vld [vmem:[%s8921_s0 + $0x430] sm:$0xff] }
  0xfa   :  { %v679_v14 = vsel %vm8940_vm0, %v154_v6, 0.0 }
  0xfb   :  { %v1616_v16 = vsel %vm1356_vm4, %v1615_v12, %v1611_v5  ;;  %653 = vadd.xlane.f32.xlu1 %v652_v8  ;;  %650 = vadd.xlane.f32.xlu0 %v649_v9  ;;  %v155_v5 = vld [vmem:[%s8921_s0 + $0x438] sm:$0xff] }
  0xfc   :  { %v444_v17 = vpop.xlane.xlu1 %443  ;;  %v1621_v19 = vsel %vm1363_vm5, %v1620_v10, %v1616_v16  ;;  %v441_v20 = vpop.xlane.xlu0 %440  ;;  %v682_v11 = vsel %vm8940_vm0, %v155_v5, 0.0 }
  0xfd   :  { %v1630_v23 = vrot.slane %v444_v17, %v5196_v56  ;;  %v1625_v24 = vrot.slane %v441_v20, %v5199_v57  ;;  %v156_v20 = vld [vmem:[%s8921_s0 + $0x440] sm:$0xff] }
  0xfe   :  { %v685_v26 = vsel %vm8940_vm0, %v156_v20, 0.0 }
  0xff   :  { %v1626_v27 = vsel %vm1370_vm6, %v1625_v24, %v1621_v19  ;;  %659 = vadd.xlane.f32.xlu1 %v658_v21  ;;  %656 = vadd.xlane.f32.xlu0 %v655_v22  ;;  %v157_v19 = vld [vmem:[%s8921_s0 + $0x448] sm:$0xff] }
 0x100   :  { %v450_v28 = vpop.xlane.xlu1 %449  ;;  %v1631_v34 = vsel %vm1377_vm7, %v1630_v23, %v1626_v27  ;;  %v447_v36 = vpop.xlane.xlu0 %446  ;;  %v688_v25 = vsel %vm8940_vm0, %v157_v19, 0.0 }
 0x101   :  { %v1640_v39 = vrot.slane %v450_v28, %v5217_v7  ;;  %v1635_v41 = vrot.slane %v447_v36, %v5229_v13  ;;  %v158_v36 = vld [vmem:[%s8921_s0 + $0x450] sm:$0xff] }
 0x102   :  { %v691_v45 = vsel %vm8940_vm0, %v158_v36, 0.0 }
 0x103   :  { %v1636_v46 = vsel %vm1384_vm8, %v1635_v41, %v1631_v34  ;;  %665 = vadd.xlane.f32.xlu1 %v664_v37  ;;  %662 = vadd.xlane.f32.xlu0 %v661_v38  ;;  %v159_v34 = vld [vmem:[%s8921_s0 + $0x458] sm:$0xff] }
 0x104   :  { %v456_v47 = vpop.xlane.xlu1 %455  ;;  %v1641_v49 = vsel %vm1391_vm9, %v1640_v39, %v1636_v46  ;;  %v453_v51 = vpop.xlane.xlu0 %452  ;;  %v694_v44 = vsel %vm8940_vm0, %v159_v34, 0.0 }
 0x105   :  { %v1650_v54 = vrot.slane %v456_v47, %v5247_v29  ;;  %v1645_v55 = vrot.slane %v453_v51, %v5250_v33 }
 0x107   :  { %v1646_v2 = vsel %vm8933_vm10, %v1645_v55, %v1641_v49  ;;  %671 = vadd.xlane.f32.xlu1 %v670_v52  ;;  %668 = vadd.xlane.f32.xlu0 %v667_v53  ;;  %v161_v49 = vld [vmem:[%s8921_s0 + $0x468] sm:$0xff] }
 0x108   :  { %v462_v60 = vpop.xlane.xlu1 %461  ;;  %v1651_v62 = vsel %vm1405_vm11, %v1650_v54, %v1646_v2  ;;  %v459_v63 = vpop.xlane.xlu0 %458  ;;  %v700_v55 = vsel %vm8940_vm0, %v161_v49, 0.0 }
 0x109   :  { %v1660_v3 = vrot.slane %v462_v60, %v5257_v42  ;;  %v1655_v4 = vrot.slane %v459_v63, %v5260_v43  ;;  %v163_v60 = vld [vmem:[%s8921_s0 + $0x478] sm:$0xff] }
 0x10b   :  { %v1656_v8 = vsel %vm8944_vm12, %v1655_v4, %v1651_v62  ;;  %677 = vadd.xlane.f32.xlu1 %v676_v0  ;;  %674 = vadd.xlane.f32.xlu0 %v673_v1  ;;  %vm8930_vm12 = vcmask 1043459   ;;  %v162_v62 = vld [vmem:[%s8921_s0 + $0x470] sm:$0xff]  ;;  %v706_v4 = vsel %vm8940_vm0, %v163_v60, 0.0 }
 0x10c   :  { %v468_v9 = vpop.xlane.xlu1 %467  ;;  %v1661_v10 = vsel %vm1419_vm13, %v1660_v3, %v1656_v8  ;;  %v465_v12 = vpop.xlane.xlu0 %464  ;;  %v703_v5 = vsel %vm8940_vm0, %v162_v62, 0.0 }
 0x10d   :  { %v1670_v16 = vrot.slane %v468_v9, %v5279_v15  ;;  %v1665_v17 = vrot.slane %v465_v12, %v5282_v61  ;;  %v165_v9 = vld [vmem:[%s8921_s0 + $0x488] sm:$0xff] }
 0x10f   :  { %v1666_v21 = vsel %vm1426_vm14, %v1665_v17, %v1661_v10  ;;  %683 = vadd.xlane.f32.xlu1 %v682_v11  ;;  %680 = vadd.xlane.f32.xlu0 %v679_v14  ;;  %v164_v10 = vld [vmem:[%s8921_s0 + $0x480] sm:$0xff]  ;;  %v712_v17 = vsel %vm8940_vm0, %v165_v9, 0.0 }
 0x110   :  { %v1671_v22 = vsel %vm1433_vm15, %v1670_v16, %v1666_v21  ;;  %v474_v23 = vpop.xlane.xlu1 %473  ;;  %v471_v24 = vpop.xlane.xlu0 %470  ;;  %v709_v19 = vsel %vm8940_vm0, %v164_v10, 0.0 }
 0x111   :  { %v1679_v27 = vrot.slane %v474_v23, %v5162_v32  ;;  %v1675_v28 = vrot.slane %v471_v24, %v5156_v30  ;;  %v5611_v37 = vsel %vm8930_vm12, %v1671_v22, %v5504_v50  ;;  %v160_v50 = vld [vmem:[%s8921_s0 + $0x460] sm:$0xff]  ;;  %v167_v22 = vld [vmem:[%s8921_s0 + $0x498] sm:$0xff]  ;;  %v166_v23 = vld [vmem:[%s8921_s0 + $0x490] sm:$0xff]  ;;  %vm8945_vm12 = vcmask 851712  }
 0x112   :  { %v697_v58 = vsel %vm8940_vm0, %v160_v50, 0.0  ;;  %v715_v34 = vsel %vm8940_vm0, %v166_v23, 0.0 }
 0x113   :  { %v1680_v38 = vsel %vm1335_vm1, %v1679_v27, %v1675_v28  ;;  %689 = vadd.xlane.f32.xlu1 %v688_v25  ;;  %686 = vadd.xlane.f32.xlu0 %v685_v26  ;;  %v718_v28 = vsel %vm8940_vm0, %v167_v22, 0.0 }
 0x114   :  { %v480_v39 = vpop.xlane.xlu1 %479  ;;  %v477_v41 = vpop.xlane.xlu0 %476 }
 0x115   :  { %v1689_v46 = vrot.slane %v480_v39, %v5159_v31  ;;  %v1684_v47 = vrot.slane %v477_v41, %v5169_v35  ;;  %v169_v39 = vld [vmem:[%s8921_s0 + $0x4a8] sm:$0xff]  ;;  %v168_v41 = vld [vmem:[%s8921_s0 + $0x4a0] sm:$0xff] }
 0x116   :  { %v724_v49 = vsel %vm8940_vm0, %v169_v39, 0.0  ;;  %v721_v50 = vsel %vm8940_vm0, %v168_v41, 0.0 }
 0x117   :  { %v1685_v51 = vsel %vm1342_vm2, %v1684_v47, %v1680_v38  ;;  %695 = vadd.xlane.f32.xlu1 %v694_v44  ;;  %692 = vadd.xlane.f32.xlu0 %v691_v45 }
 0x118   :  { %v486_v52 = vpop.xlane.xlu1 %485  ;;  %v1690_v53 = vsel %vm1349_vm3, %v1689_v46, %v1685_v51  ;;  %v483_v54 = vpop.xlane.xlu0 %482 }
 0x119   :  { %v1699_v59 = vrot.slane %v486_v52, %v5174_v40  ;;  %v1694_v2 = vrot.slane %v483_v54, %v5188_v48  ;;  %v170_v54 = vld [vmem:[%s8921_s0 + $0x4b0] sm:$0xff] }
 0x11a   :  { %v727_v62 = vsel %vm8940_vm0, %v170_v54, 0.0 }
 0x11b   :  { %v1695_v63 = vsel %vm1356_vm4, %v1694_v2, %v1690_v53  ;;  %701 = vadd.xlane.f32.xlu1 %v700_v55  ;;  %698 = vadd.xlane.f32.xlu0 %v697_v58  ;;  %v171_v53 = vld [vmem:[%s8921_s0 + $0x4b8] sm:$0xff] }
 0x11c   :  { %v492_v0 = vpop.xlane.xlu1 %491  ;;  %v1700_v1 = vsel %vm1363_vm5, %v1699_v59, %v1695_v63  ;;  %v489_v3 = vpop.xlane.xlu0 %488  ;;  %v730_v60 = vsel %vm8940_vm0, %v171_v53, 0.0 }
 0x11d   :  { %v1709_v6 = vrot.slane %v492_v0, %v5196_v56  ;;  %v1704_v8 = vrot.slane %v489_v3, %v5199_v57  ;;  %v172_v3 = vld [vmem:[%s8921_s0 + $0x4c0] sm:$0xff] }
 0x11e   :  { %v733_v10 = vsel %vm8940_vm0, %v172_v3, 0.0 }
 0x11f   :  { %v1705_v12 = vsel %vm1370_vm6, %v1704_v8, %v1700_v1  ;;  %707 = vadd.xlane.f32.xlu1 %v706_v4  ;;  %704 = vadd.xlane.f32.xlu0 %v703_v5  ;;  %v173_v1 = vld [vmem:[%s8921_s0 + $0x4c8] sm:$0xff] }
 0x120   :  { %v498_v11 = vpop.xlane.xlu1 %497  ;;  %v1710_v14 = vsel %vm1377_vm7, %v1709_v6, %v1705_v12  ;;  %v495_v16 = vpop.xlane.xlu0 %494  ;;  %v736_v9 = vsel %vm8940_vm0, %v173_v1, 0.0 }
 0x121   :  { %v1719_v20 = vrot.slane %v498_v11, %v5217_v7  ;;  %v1714_v21 = vrot.slane %v495_v16, %v5229_v13  ;;  %v174_v16 = vld [vmem:[%s8921_s0 + $0x4d0] sm:$0xff] }
 0x122   :  { %v739_v23 = vsel %vm8940_vm0, %v174_v16, 0.0 }
 0x123   :  { %v1715_v24 = vsel %vm1384_vm8, %v1714_v21, %v1710_v14  ;;  %713 = vadd.xlane.f32.xlu1 %v712_v17  ;;  %710 = vadd.xlane.f32.xlu0 %v709_v19  ;;  %v175_v14 = vld [vmem:[%s8921_s0 + $0x4d8] sm:$0xff] }
 0x124   :  { %v504_v25 = vpop.xlane.xlu1 %503  ;;  %v1720_v26 = vsel %vm1391_vm9, %v1719_v20, %v1715_v24  ;;  %v501_v27 = vpop.xlane.xlu0 %500  ;;  %v742_v22 = vsel %vm8940_vm0, %v175_v14, 0.0 }
 0x125   :  { %v1729_v36 = vrot.slane %v504_v25, %v5247_v29  ;;  %v1724_v38 = vrot.slane %v501_v27, %v5250_v33 }
 0x127   :  { %v1725_v44 = vsel %vm8933_vm10, %v1724_v38, %v1720_v26  ;;  %719 = vadd.xlane.f32.xlu1 %v718_v28  ;;  %716 = vadd.xlane.f32.xlu0 %v715_v34  ;;  %v177_v26 = vld [vmem:[%s8921_s0 + $0x4e8] sm:$0xff] }
 0x128   :  { %v510_v45 = vpop.xlane.xlu1 %509  ;;  %v1730_v46 = vsel %vm1405_vm11, %v1729_v36, %v1725_v44  ;;  %v507_v47 = vpop.xlane.xlu0 %506  ;;  %v748_v38 = vsel %vm8940_vm0, %v177_v26, 0.0 }
 0x129   :  { %v1739_v51 = vrot.slane %v510_v45, %v5257_v42  ;;  %v1734_v52 = vrot.slane %v507_v47, %v5260_v43  ;;  %v179_v45 = vld [vmem:[%s8921_s0 + $0x4f8] sm:$0xff] }
 0x12b   :  { %v1735_v55 = vsel %vm8945_vm12, %v1734_v52, %v1730_v46  ;;  %725 = vadd.xlane.f32.xlu1 %v724_v49  ;;  %722 = vadd.xlane.f32.xlu0 %v721_v50  ;;  %vm8931_vm12 = vcmask 1044484   ;;  %v178_v46 = vld [vmem:[%s8921_s0 + $0x4f0] sm:$0xff]  ;;  %v754_v52 = vsel %vm8940_vm0, %v179_v45, 0.0 }
 0x12c   :  { %v516_v58 = vpop.xlane.xlu1 %515  ;;  %v1740_v59 = vsel %vm1419_vm13, %v1739_v51, %v1735_v55  ;;  %v513_v2 = vpop.xlane.xlu0 %512  ;;  %v751_v53 = vsel %vm8940_vm0, %v178_v46, 0.0 }
 0x12d   :  { %v1749_v63 = vrot.slane %v516_v58, %v5279_v15  ;;  %v1744_v0 = vrot.slane %v513_v2, %v5282_v61  ;;  %v181_v58 = vld [vmem:[%s8921_s0 + $0x508] sm:$0xff] }
 0x12f   :  { %v1745_v4 = vsel %vm1426_vm14, %v1744_v0, %v1740_v59  ;;  %731 = vadd.xlane.f32.xlu1 %v730_v60  ;;  %728 = vadd.xlane.f32.xlu0 %v727_v62  ;;  %v180_v59 = vld [vmem:[%s8921_s0 + $0x500] sm:$0xff]  ;;  %v760_v0 = vsel %vm8940_vm0, %v181_v58, 0.0 }
 0x130   :  { %v1750_v5 = vsel %vm1433_vm15, %v1749_v63, %v1745_v4  ;;  %v522_v6 = vpop.xlane.xlu1 %521  ;;  %v519_v8 = vpop.xlane.xlu0 %518  ;;  %v757_v1 = vsel %vm8940_vm0, %v180_v59, 0.0 }
 0x131   :  { %v1758_v12 = vrot.slane %v522_v6, %v5162_v32  ;;  %v1754_v11 = vrot.slane %v519_v8, %v5156_v30  ;;  %v5710_v17 = vsel %vm8931_vm12, %v1750_v5, %v5611_v37  ;;  %v176_v37 = vld [vmem:[%s8921_s0 + $0x4e0] sm:$0xff]  ;;  %v183_v5 = vld [vmem:[%s8921_s0 + $0x518] sm:$0xff]  ;;  %v182_v6 = vld [vmem:[%s8921_s0 + $0x510] sm:$0xff]  ;;  %vm8946_vm12 = vcmask 851712  }
 0x132   :  { %v745_v39 = vsel %vm8940_vm0, %v176_v37, 0.0  ;;  %v763_v14 = vsel %vm8940_vm0, %v182_v6, 0.0 }
 0x133   :  { %v1759_v19 = vsel %vm1335_vm1, %v1758_v12, %v1754_v11  ;;  %737 = vadd.xlane.f32.xlu1 %v736_v9  ;;  %734 = vadd.xlane.f32.xlu0 %v733_v10  ;;  %v766_v11 = vsel %vm8940_vm0, %v183_v5, 0.0  ;;  %v192_v5 = vld [vmem:[%s8921_s0 + $0x560] sm:$0xff] }
 0x134   :  { %v528_v20 = vpop.xlane.xlu1 %527  ;;  %v525_v21 = vpop.xlane.xlu0 %524 }
 0x135   :  { %v1768_v24 = vrot.slane %v528_v20, %v5159_v31  ;;  %v1763_v25 = vrot.slane %v525_v21, %v5169_v35  ;;  %v185_v20 = vld [vmem:[%s8921_s0 + $0x528] sm:$0xff]  ;;  %v184_v21 = vld [vmem:[%s8921_s0 + $0x520] sm:$0xff] }
 0x136   :  { %v772_v26 = vsel %vm8940_vm0, %v185_v20, 0.0  ;;  %v769_v37 = vsel %vm8940_vm0, %v184_v21, 0.0  ;;  %v197_v20 = vld [vmem:[%s8921_s0 + $0x588] sm:$0xff]  ;;  %v196_v21 = vld [vmem:[%s8921_s0 + $0x580] sm:$0xff] }
 0x137   :  { %v1764_v27 = vsel %vm1342_vm2, %v1763_v25, %v1759_v19  ;;  %743 = vadd.xlane.f32.xlu1 %v742_v22  ;;  %740 = vadd.xlane.f32.xlu0 %v739_v23 }
 0x138   :  { %v534_v28 = vpop.xlane.xlu1 %533  ;;  %v1769_v34 = vsel %vm1349_vm3, %v1768_v24, %v1764_v27  ;;  %v531_v36 = vpop.xlane.xlu0 %530 }
 0x139   :  { %v1778_v41 = vrot.slane %v534_v28, %v5174_v40  ;;  %v1773_v44 = vrot.slane %v531_v36, %v5188_v48  ;;  %v186_v36 = vld [vmem:[%s8921_s0 + $0x530] sm:$0xff] }
 0x13a   :  { %v775_v46 = vsel %vm8940_vm0, %v186_v36, 0.0 }
 0x13b   :  { %v1774_v47 = vsel %vm1356_vm4, %v1773_v44, %v1769_v34  ;;  %749 = vadd.xlane.f32.xlu1 %v748_v38  ;;  %746 = vadd.xlane.f32.xlu0 %v745_v39  ;;  %v187_v34 = vld [vmem:[%s8921_s0 + $0x538] sm:$0xff] }
 0x13c   :  { %v540_v49 = vpop.xlane.xlu1 %539  ;;  %v1779_v50 = vsel %vm1363_vm5, %v1778_v41, %v1774_v47  ;;  %v537_v51 = vpop.xlane.xlu0 %536  ;;  %v778_v45 = vsel %vm8940_vm0, %v187_v34, 0.0 }
 0x13d   :  { %v1788_v54 = vrot.slane %v540_v49, %v5196_v56  ;;  %v1783_v55 = vrot.slane %v537_v51, %v5199_v57  ;;  %v188_v51 = vld [vmem:[%s8921_s0 + $0x540] sm:$0xff] }
 0x13e   :  { %v781_v58 = vsel %vm8940_vm0, %v188_v51, 0.0 }
 0x13f   :  { %v1784_v2 = vsel %vm1370_vm6, %v1783_v55, %v1779_v50  ;;  %755 = vadd.xlane.f32.xlu1 %v754_v52  ;;  %752 = vadd.xlane.f32.xlu0 %v751_v53  ;;  %v189_v50 = vld [vmem:[%s8921_s0 + $0x548] sm:$0xff] }
 0x140   :  { %v546_v60 = vpop.xlane.xlu1 %545  ;;  %v1789_v62 = vsel %vm1377_vm7, %v1788_v54, %v1784_v2  ;;  %v543_v63 = vpop.xlane.xlu0 %542  ;;  %v784_v55 = vsel %vm8940_vm0, %v189_v50, 0.0  ;;  %v191_v2 = vld [vmem:[%s8921_s0 + $0x558] sm:$0xff] }
 0x141   :  { %v1798_v3 = vrot.slane %v546_v60, %v5217_v7  ;;  %v1793_v4 = vrot.slane %v543_v63, %v5229_v13  ;;  %v190_v60 = vld [vmem:[%s8921_s0 + $0x550] sm:$0xff] }
 0x143   :  { %v1794_v8 = vsel %vm1384_vm8, %v1793_v4, %v1789_v62  ;;  %761 = vadd.xlane.f32.xlu1 %v760_v0  ;;  %758 = vadd.xlane.f32.xlu0 %v757_v1  ;;  %v790_v1 = vsel %vm8940_vm0, %v191_v2, 0.0  ;;  %v193_v4 = vld [vmem:[%s8921_s0 + $0x568] sm:$0xff] }
 0x144   :  { %v552_v9 = vpop.xlane.xlu1 %551  ;;  %v1799_v10 = vsel %vm1391_vm9, %v1798_v3, %v1794_v8  ;;  %v549_v12 = vpop.xlane.xlu0 %548  ;;  %v787_v3 = vsel %vm8940_vm0, %v190_v60, 0.0  ;;  %v796_v8 = vsel %vm8940_vm0, %v193_v4, 0.0  ;;  %v205_v2 = vld [vmem:[%s8921_s0 + $0x5c8] sm:$0xff]  ;;  %v204_v60 = vld [vmem:[%s8921_s0 + $0x5c0] sm:$0xff] }
 0x145   :  { %v1808_v16 = vrot.slane %v552_v9, %v5247_v29  ;;  %v1803_v19 = vrot.slane %v549_v12, %v5250_v33  ;;  %v793_v9 = vsel %vm8940_vm0, %v192_v5, 0.0  ;;  %v194_v12 = vld [vmem:[%s8921_s0 + $0x570] sm:$0xff]  ;;  %v829_v5 = vsel %vm8940_vm0, %v204_v60, 0.0 }
 0x147   :  { %v1804_v22 = vsel %vm8933_vm10, %v1803_v19, %v1799_v10  ;;  %767 = vadd.xlane.f32.xlu1 %v766_v11  ;;  %764 = vadd.xlane.f32.xlu0 %v763_v14  ;;  %v195_v10 = vld [vmem:[%s8921_s0 + $0x578] sm:$0xff]  ;;  %v799_v19 = vsel %vm8940_vm0, %v194_v12, 0.0 }
 0x148   :  { %v558_v23 = vpop.xlane.xlu1 %557  ;;  %v1809_v24 = vsel %vm1405_vm11, %v1808_v16, %v1804_v22  ;;  %v555_v25 = vpop.xlane.xlu0 %554  ;;  %v802_v16 = vsel %vm8940_vm0, %v195_v10, 0.0 }
 0x149   :  { %v1818_v27 = vrot.slane %v558_v23, %v5257_v42  ;;  %v1813_v28 = vrot.slane %v555_v25, %v5260_v43  ;;  %v805_v25 = vsel %vm8940_vm0, %v196_v21, 0.0 }
 0x14b   :  { %v1814_v38 = vsel %vm8946_vm12, %v1813_v28, %v1809_v24  ;;  %773 = vadd.xlane.f32.xlu1 %v772_v26  ;;  %770 = vadd.xlane.f32.xlu0 %v769_v37  ;;  %vm8932_vm12 = vcmask 1045509   ;;  %v808_v24 = vsel %vm8940_vm0, %v197_v20, 0.0  ;;  %v199_v26 = vld [vmem:[%s8921_s0 + $0x598] sm:$0xff]  ;;  %v198_v37 = vld [vmem:[%s8921_s0 + $0x590] sm:$0xff] }
 0x14c   :  { %v564_v39 = vpop.xlane.xlu1 %563  ;;  %v1819_v41 = vsel %vm1419_vm13, %v1818_v27, %v1814_v38  ;;  %v561_v44 = vpop.xlane.xlu0 %560  ;;  %v814_v34 = vsel %vm8940_vm0, %v199_v26, 0.0  ;;  %v811_v36 = vsel %vm8940_vm0, %v198_v37, 0.0  ;;  %v201_v38 = vld [vmem:[%s8921_s0 + $0x5a8] sm:$0xff] }
 0x14d   :  { %v1828_v47 = vrot.slane %v564_v39, %v5279_v15  ;;  %v1823_v49 = vrot.slane %v561_v44, %v5282_v61  ;;  %v200_v39 = vld [vmem:[%s8921_s0 + $0x5a0] sm:$0xff] }
 0x14f   :  { %v1824_v52 = vsel %vm1426_vm14, %v1823_v49, %v1819_v41  ;;  %779 = vadd.xlane.f32.xlu1 %v778_v45  ;;  %776 = vadd.xlane.f32.xlu0 %v775_v46  ;;  %v820_v45 = vsel %vm8940_vm0, %v201_v38, 0.0  ;;  %v817_v46 = vsel %vm8940_vm0, %v200_v39, 0.0  ;;  %v202_v49 = vld [vmem:[%s8921_s0 + $0x5b0] sm:$0xff] }
 0x150   :  { %v5796_v53 = vpop.xlane.xlu1 %569  ;;  %v5798_v54 = vpop.xlane.xlu0 %566  ;;  %v1829_v59 = vsel %vm1433_vm15, %v1828_v47, %v1824_v52  ;;  %v203_v47 = vld [vmem:[%s8921_s0 + $0x5b8] sm:$0xff] }
 0x151   :  { %v5811_v62 = vsel %vm8932_vm12, %v1829_v59, %v5710_v17  ;;  %v826_v52 = vsel %vm8940_vm0, %v203_v47, 0.0  ;;  %v1833_v59 = vrot.slane %v5798_v54, %v5156_v30  ;;  %vm8947_vm12 = vcmask 851712  }
 0x153   :  { %785 = vadd.xlane.f32.xlu1 %v784_v55  ;;  %782 = vadd.xlane.f32.xlu0 %v781_v58  ;;  %v823_v55 = vsel %vm8940_vm0, %v202_v49, 0.0  ;;  %v1837_v58 = vrot.slane %v5796_v53, %v5162_v32  ;;  %v832_v53 = vsel %vm8940_vm0, %v205_v2, 0.0  ;;  %v210_v2 = vld [vmem:[%s8921_s0 + $0x5f0] sm:$0xff] }
 0x154   :  { %v5813_v63 = vpop.xlane.xlu1 %575  ;;  %v5815_v0 = vpop.xlane.xlu0 %572 }
 0x155   :  { %v1838_v54 = vsel %vm1335_vm1, %v1837_v58, %v1833_v59  ;;  %v211_v59 = vld [vmem:[%s8921_s0 + $0x5f8] sm:$0xff] }
 0x157   :  { %791 = vadd.xlane.f32.xlu1 %v790_v1  ;;  %788 = vadd.xlane.f32.xlu0 %v787_v3  ;;  %v1842_v1 = vrot.slane %v5815_v0, %v5169_v35  ;;  %v206_v0 = vld [vmem:[%s8921_s0 + $0x5d0] sm:$0xff] }
 0x158   :  { %v5825_v17 = vpop.xlane.xlu1 %581  ;;  %v5827_v6 = vpop.xlane.xlu0 %578 }
 0x159   :  { %v1843_v10 = vsel %vm1342_vm2, %v1842_v1, %v1838_v54  ;;  %v1852_v12 = vrot.slane %v5827_v6, %v5188_v48  ;;  %v209_v6 = vld [vmem:[%s8921_s0 + $0x5e8] sm:$0xff]  ;;  %v850_v54 = vsel %vm8940_vm0, %v211_v59, 0.0  ;;  %v216_v59 = vld [vmem:[%s8921_s0 + $0x620] sm:$0xff] }
 0x15a   :  { %v844_v49 = vsel %vm8940_vm0, %v209_v6, 0.0 }
 0x15b   :  { %797 = vadd.xlane.f32.xlu1 %v796_v8  ;;  %794 = vadd.xlane.f32.xlu0 %v793_v9  ;;  %v1847_v8 = vrot.slane %v5813_v63, %v5159_v31  ;;  %v207_v9 = vld [vmem:[%s8921_s0 + $0x5d8] sm:$0xff] }
 0x15c   :  { %v5837_v11 = vpop.xlane.xlu1 %587  ;;  %v5839_v14 = vpop.xlane.xlu0 %584  ;;  %v838_v21 = vsel %vm8940_vm0, %v207_v9, 0.0 }
 0x15d   :  { %v1848_v26 = vsel %vm1349_vm3, %v1847_v8, %v1843_v10  ;;  %v1862_v38 = vrot.slane %v5839_v14, %v5199_v57  ;;  %v847_v8 = vsel %vm8940_vm0, %v210_v2, 0.0  ;;  %v213_v10 = vld [vmem:[%s8921_s0 + $0x608] sm:$0xff] }
 0x15f   :  { %803 = vadd.xlane.f32.xlu1 %v802_v16  ;;  %800 = vadd.xlane.f32.xlu0 %v799_v19 }
 0x160   :  { %v5849_v22 = vpop.xlane.xlu1 %593  ;;  %v5851_v23 = vpop.xlane.xlu0 %590 }
 0x161   :  { %v1872_v1 = vrot.slane %v5851_v23, %v5229_v13  ;;  %v1877_v9 = vrot.slane %v5849_v22, %v5217_v7 }
 0x163   :  { %809 = vadd.xlane.f32.xlu1 %v808_v24  ;;  %806 = vadd.xlane.f32.xlu0 %v805_v25  ;;  %v835_v24 = vsel %vm8940_vm0, %v206_v0, 0.0  ;;  %v1857_v25 = vrot.slane %v5825_v17, %v5174_v40 }
 0x164   :  { %v5861_v27 = vpop.xlane.xlu1 %599  ;;  %v5863_v28 = vpop.xlane.xlu0 %596 }
 0x167   :  { %815 = vadd.xlane.f32.xlu1 %v814_v34  ;;  %812 = vadd.xlane.f32.xlu0 %v811_v36  ;;  %v208_v34 = vld [vmem:[%s8921_s0 + $0x5e0] sm:$0xff]  ;;  %v1853_v36 = vsel %vm1356_vm4, %v1852_v12, %v1848_v26 }
 0x168   :  { %v5873_v41 = vpop.xlane.xlu1 %605  ;;  %v5875_v44 = vpop.xlane.xlu0 %602  ;;  %v1858_v58 = vsel %vm1363_vm5, %v1857_v25, %v1853_v36  ;;  %v212_v12 = vld [vmem:[%s8921_s0 + $0x600] sm:$0xff]  ;;  %v856_v25 = vsel %vm8940_vm0, %v213_v10, 0.0  ;;  %v214_v36 = vld [vmem:[%s8921_s0 + $0x610] sm:$0xff] }
 0x169   :  { %v1863_v60 = vsel %vm1370_vm6, %v1862_v38, %v1858_v58  ;;  %v853_v26 = vsel %vm8940_vm0, %v212_v12, 0.0 }
 0x16b   :  { %821 = vadd.xlane.f32.xlu1 %v820_v45  ;;  %818 = vadd.xlane.f32.xlu0 %v817_v46 }
 0x16c   :  { %v5885_v50 = vpop.xlane.xlu1 %611  ;;  %v5887_v51 = vpop.xlane.xlu0 %608 }
 0x16f   :  { %827 = vadd.xlane.f32.xlu1 %v826_v52  ;;  %824 = vadd.xlane.f32.xlu0 %v823_v55  ;;  %v841_v52 = vsel %vm8940_vm0, %v208_v34, 0.0  ;;  %v1867_v55 = vrot.slane %v5837_v11, %v5196_v56  ;;  %v215_v34 = vld [vmem:[%s8921_s0 + $0x618] sm:$0xff] }
 0x170   :  { %v618_v3 = vpop.xlane.xlu1 %617  ;;  %v615_v4 = vpop.xlane.xlu0 %614 }
 0x171   :  { %v1916_v16 = vrot.slane %v618_v3, %v5162_v32  ;;  %v1912_v19 = vrot.slane %v615_v4, %v5156_v30  ;;  %v1868_v0 = vsel %vm1377_vm7, %v1867_v55, %v1863_v60  ;;  %v1897_v55 = vrot.slane %v5873_v41, %v5257_v42 }
 0x172   :  { %v1902_v60 = vrot.slane %v5887_v51, %v5282_v61 }
 0x173   :  { %833 = vadd.xlane.f32.xlu1 %v832_v53  ;;  %830 = vadd.xlane.f32.xlu0 %v829_v5  ;;  %v1917_v39 = vsel %vm1335_vm1, %v1916_v16, %v1912_v19  ;;  %v1873_v16 = vsel %vm1384_vm8, %v1872_v1, %v1868_v0  ;;  %v1882_v19 = vrot.slane %v5863_v28, %v5250_v33  ;;  %v218_v0 = vld [vmem:[%s8921_s0 + $0x630] sm:$0xff] }
 0x174   :  { %v624_v63 = vpop.xlane.xlu1 %623  ;;  %v621_v20 = vpop.xlane.xlu0 %620  ;;  %v1878_v6 = vsel %vm1391_vm9, %v1877_v9, %v1873_v16  ;;  %v219_v9 = vld [vmem:[%s8921_s0 + $0x638] sm:$0xff] }
 0x175   :  { %v1921_v37 = vrot.slane %v621_v20, %v5169_v35  ;;  %v1926_v17 = vrot.slane %v624_v63, %v5159_v31  ;;  %v1883_v38 = vsel %vm8933_vm10, %v1882_v19, %v1878_v6 }
 0x177   :  { %v1922_v45 = vsel %vm1342_vm2, %v1921_v37, %v1917_v39  ;;  %839 = vadd.xlane.f32.xlu1 %v838_v21  ;;  %836 = vadd.xlane.f32.xlu0 %v835_v24  ;;  %v1887_v37 = vrot.slane %v5861_v27, %v5247_v29  ;;  %v1892_v39 = vrot.slane %v5875_v44, %v5260_v43 }
 0x178   :  { %v630_v46 = vpop.xlane.xlu1 %629  ;;  %v627_v47 = vpop.xlane.xlu0 %626  ;;  %v1927_v11 = vsel %vm1349_vm3, %v1926_v17, %v1922_v45 }
 0x179   :  { %v1931_v14 = vrot.slane %v627_v47, %v5188_v48  ;;  %v1936_v3 = vrot.slane %v630_v46, %v5174_v40  ;;  %v1888_v58 = vsel %vm1405_vm11, %v1887_v37, %v1883_v38 }
 0x17a   :  { %v1893_v2 = vsel %vm8947_vm12, %v1892_v39, %v1888_v58 }
 0x17b   :  { %v1932_v4 = vsel %vm1356_vm4, %v1931_v14, %v1927_v11  ;;  %845 = vadd.xlane.f32.xlu1 %v844_v49  ;;  %842 = vadd.xlane.f32.xlu0 %v841_v52  ;;  %v862_v49 = vsel %vm8940_vm0, %v215_v34, 0.0  ;;  %v859_v52 = vsel %vm8940_vm0, %v214_v36, 0.0  ;;  %v217_v14 = vld [vmem:[%s8921_s0 + $0x628] sm:$0xff] }
 0x17c   :  { %v636_v53 = vpop.xlane.xlu1 %635  ;;  %v633_v5 = vpop.xlane.xlu0 %632  ;;  %v1937_v22 = vsel %vm1363_vm5, %v1936_v3, %v1932_v4 }
 0x17d   :  { %v1941_v23 = vrot.slane %v633_v5, %v5199_v57  ;;  %v1946_v63 = vrot.slane %v636_v53, %v5196_v56  ;;  %v868_v53 = vsel %vm8940_vm0, %v217_v14, 0.0  ;;  %v865_v5 = vsel %vm8940_vm0, %v216_v59, 0.0 }
 0x17f   :  { %v1942_v20 = vsel %vm1370_vm6, %v1941_v23, %v1937_v22  ;;  %851 = vadd.xlane.f32.xlu1 %v850_v54  ;;  %848 = vadd.xlane.f32.xlu0 %v847_v8  ;;  %v1907_v54 = vrot.slane %v5885_v50, %v5279_v15  ;;  %v1898_v8 = vsel %vm1419_vm13, %v1897_v55, %v1893_v2  ;;  %v871_v22 = vsel %vm8940_vm0, %v218_v0, 0.0  ;;  %v225_v2 = vld [vmem:[%s8921_s0 + $0x668] sm:$0xff] }
 0x180   :  { %v642_v21 = vpop.xlane.xlu1 %641  ;;  %v639_v24 = vpop.xlane.xlu0 %638  ;;  %v1947_v27 = vsel %vm1377_vm7, %v1946_v63, %v1942_v20  ;;  %v1903_v23 = vsel %vm1426_vm14, %v1902_v60, %v1898_v8  ;;  %v874_v63 = vsel %vm8940_vm0, %v219_v9, 0.0  ;;  %v224_v60 = vld [vmem:[%s8921_s0 + $0x660] sm:$0xff]  ;;  %v227_v8 = vld [vmem:[%s8921_s0 + $0x678] sm:$0xff] }
 0x181   :  { %v1951_v28 = vrot.slane %v639_v24, %v5229_v13  ;;  %v1956_v17 = vrot.slane %v642_v21, %v5217_v7  ;;  %v1908_v24 = vsel %vm1433_vm15, %v1907_v54, %v1903_v23 }
 0x183   :  { %v1952_v45 = vsel %vm1384_vm8, %v1951_v28, %v1947_v27  ;;  %857 = vadd.xlane.f32.xlu1 %v856_v25  ;;  %854 = vadd.xlane.f32.xlu0 %v853_v26  ;;  %v221_v25 = vld [vmem:[%s8921_s0 + $0x648] sm:$0xff]  ;;  %v220_v26 = vld [vmem:[%s8921_s0 + $0x640] sm:$0xff] }
 0x184   :  { %v648_v46 = vpop.xlane.xlu1 %647  ;;  %v645_v47 = vpop.xlane.xlu0 %644  ;;  %v1957_v41 = vsel %vm1391_vm9, %v1956_v17, %v1952_v45  ;;  %v880_v39 = vsel %vm8940_vm0, %v221_v25, 0.0  ;;  %v877_v17 = vsel %vm8940_vm0, %v220_v26, 0.0 }
 0x185   :  { %v1961_v44 = vrot.slane %v645_v47, %v5250_v33  ;;  %v1966_v1 = vrot.slane %v648_v46, %v5247_v29  ;;  %v223_v47 = vld [vmem:[%s8921_s0 + $0x658] sm:$0xff] }
 0x186   :  { %v886_v58 = vsel %vm8940_vm0, %v223_v47, 0.0 }
 0x187   :  { %v1962_v3 = vsel %vm8933_vm10, %v1961_v44, %v1957_v41  ;;  %863 = vadd.xlane.f32.xlu1 %v862_v49  ;;  %860 = vadd.xlane.f32.xlu0 %v859_v52  ;;  %vm2630_vm10 = vcmask 1046534   ;;  %v222_v49 = vld [vmem:[%s8921_s0 + $0x650] sm:$0xff] }
 0x188   :  { %v654_v11 = vpop.xlane.xlu1 %653  ;;  %v651_v4 = vpop.xlane.xlu0 %650  ;;  %v1967_v12 = vsel %vm1405_vm11, %v1966_v1, %v1962_v3  ;;  %v2631_v38 = vsel %vm2630_vm10, %v1908_v24, %v5811_v62  ;;  %v883_v44 = vsel %vm8940_vm0, %v222_v49, 0.0 }
 0x189   :  { %v1971_v51 = vrot.slane %v651_v4, %v5260_v43  ;;  %v1976_v10 = vrot.slane %v654_v11, %v5257_v42  ;;  %v892_v4 = vsel %vm8940_vm0, %v225_v2, 0.0 }
 0x18b   :  { %v1972_v50 = vsel %vm8947_vm12, %v1971_v51, %v1967_v12  ;;  %869 = vadd.xlane.f32.xlu1 %v868_v53  ;;  %866 = vadd.xlane.f32.xlu0 %v865_v5  ;;  %vm8934_vm12 = vcmask 1047559   ;;  %v889_v53 = vsel %vm8940_vm0, %v224_v60, 0.0  ;;  %v226_v51 = vld [vmem:[%s8921_s0 + $0x670] sm:$0xff]  ;;  %v898_v12 = vsel %vm8940_vm0, %v227_v8, 0.0 }
 0x18c   :  { %v660_v16 = vpop.xlane.xlu1 %659  ;;  %v657_v19 = vpop.xlane.xlu0 %656  ;;  %v1977_v37 = vsel %vm1419_vm13, %v1976_v10, %v1972_v50  ;;  %v895_v50 = vsel %vm8940_vm0, %v226_v51, 0.0 }
 0x18d   :  { %v1986_v20 = vrot.slane %v660_v16, %v5279_v15  ;;  %v1981_v21 = vrot.slane %v657_v19, %v5282_v61 }
 0x18f   :  { %875 = vadd.xlane.f32.xlu1 %v874_v63  ;;  %872 = vadd.xlane.f32.xlu0 %v871_v22  ;;  %v1982_v6 = vsel %vm1426_vm14, %v1981_v21, %v1977_v37  ;;  %v229_v63 = vld [vmem:[%s8921_s0 + $0x688] sm:$0xff]  ;;  %v228_v22 = vld [vmem:[%s8921_s0 + $0x680] sm:$0xff] }
 0x190   :  { %v666_v28 = vpop.xlane.xlu1 %665  ;;  %v663_v34 = vpop.xlane.xlu0 %662  ;;  %v1987_v36 = vsel %vm1433_vm15, %v1986_v20, %v1982_v6  ;;  %v904_v26 = vsel %vm8940_vm0, %v229_v63, 0.0  ;;  %v901_v37 = vsel %vm8940_vm0, %v228_v22, 0.0 }
 0x191   :  { %v1995_v27 = vrot.slane %v666_v28, %v5162_v32  ;;  %v1991_v45 = vrot.slane %v663_v34, %v5156_v30  ;;  %v2633_v46 = vsel %vm8934_vm12, %v1987_v36, %v2631_v38  ;;  %v244_v34 = vld [vmem:[%s8921_s0 + $0x700] sm:$0xff]  ;;  %v230_v36 = vld [vmem:[%s8921_s0 + $0x690] sm:$0xff]  ;;  %vm8948_vm12 = vcmask 720512  }
 0x192   :  { %4483 = vmatprep.mubr.f32.mxu0 %v2633_v46  ;;  %v907_v46 = vsel %vm8940_vm0, %v230_v36, 0.0 }
 0x193   :  { %v1996_v62 = vsel %vm1335_vm1, %v1995_v27, %v1991_v45  ;;  %881 = vadd.xlane.f32.xlu1 %v880_v39  ;;  %878 = vadd.xlane.f32.xlu0 %v877_v17  ;;  %v949_v45 = vsel %vm8940_vm0, %v244_v34, 0.0 }
 0x194   :  { %v672_v52 = vpop.xlane.xlu1 %671  ;;  %v669_v55 = vpop.xlane.xlu0 %668 }
 0x195   :  { %v2005_v14 = vrot.slane %v672_v52, %v5159_v31  ;;  %v2000_v59 = vrot.slane %v669_v55, %v5169_v35  ;;  %v245_v52 = vld [vmem:[%s8921_s0 + $0x708] sm:$0xff] }
 0x196   :  { %v952_v2 = vsel %vm8940_vm0, %v245_v52, 0.0 }
 0x197   :  { %v2001_v1 = vsel %vm1342_vm2, %v2000_v59, %v1996_v62  ;;  %887 = vadd.xlane.f32.xlu1 %v886_v58  ;;  %884 = vadd.xlane.f32.xlu0 %v883_v44  ;;  %v231_v62 = vld [vmem:[%s8921_s0 + $0x698] sm:$0xff] }
 0x198   :  { %v678_v41 = vpop.xlane.xlu1 %677  ;;  %v2006_v3 = vsel %vm1349_vm3, %v2005_v14, %v2001_v1  ;;  %v675_v11 = vpop.xlane.xlu0 %674  ;;  %v910_v59 = vsel %vm8940_vm0, %v231_v62, 0.0 }
 0x199   :  { %v2015_v5 = vrot.slane %v678_v41, %v5174_v40  ;;  %v2010_v54 = vrot.slane %v675_v11, %v5188_v48  ;;  %v260_v41 = vld [vmem:[%s8921_s0 + $0x780] sm:$0xff] }
 0x19b   :  { %v2011_v9 = vsel %vm1356_vm4, %v2010_v54, %v2006_v3  ;;  %893 = vadd.xlane.f32.xlu1 %v892_v4  ;;  %890 = vadd.xlane.f32.xlu0 %v889_v53  ;;  %v246_v3 = vld [vmem:[%s8921_s0 + $0x710] sm:$0xff]  ;;  %v997_v54 = vsel %vm8940_vm0, %v260_v41, 0.0 }
 0x19c   :  { %v684_v0 = vpop.xlane.xlu1 %683  ;;  %v2016_v23 = vsel %vm1363_vm5, %v2015_v5, %v2011_v9  ;;  %v681_v10 = vpop.xlane.xlu0 %680  ;;  %v955_v8 = vsel %vm8940_vm0, %v246_v3, 0.0 }
 0x19d   :  { %v2025_v16 = vrot.slane %v684_v0, %v5196_v56  ;;  %v2020_v19 = vrot.slane %v681_v10, %v5199_v57  ;;  %v232_v0 = vld [vmem:[%s8921_s0 + $0x6a0] sm:$0xff] }
 0x19f   :  { %v2021_v20 = vsel %vm1370_vm6, %v2020_v19, %v2016_v23  ;;  %899 = vadd.xlane.f32.xlu1 %v898_v12  ;;  %896 = vadd.xlane.f32.xlu0 %v895_v50  ;;  %v261_v23 = vld [vmem:[%s8921_s0 + $0x788] sm:$0xff]  ;;  %v913_v19 = vsel %vm8940_vm0, %v232_v0, 0.0 }
 0x1a0   :  { %v690_v21 = vpop.xlane.xlu1 %689  ;;  %v2026_v24 = vsel %vm1377_vm7, %v2025_v16, %v2021_v20  ;;  %v687_v25 = vpop.xlane.xlu0 %686  ;;  %v1000_v63 = vsel %vm8940_vm0, %v261_v23, 0.0 }
 0x1a1   :  { %v2035_v6 = vrot.slane %v690_v21, %v5217_v7  ;;  %v2030_v28 = vrot.slane %v687_v25, %v5229_v13  ;;  %v262_v21 = vld [vmem:[%s8921_s0 + $0x790] sm:$0xff] }
 0x1a3   :  { %v2031_v38 = vsel %vm1384_vm8, %v2030_v28, %v2026_v24  ;;  %905 = vadd.xlane.f32.xlu1 %v904_v26  ;;  %902 = vadd.xlane.f32.xlu0 %v901_v37  ;;  %v247_v24 = vld [vmem:[%s8921_s0 + $0x718] sm:$0xff] }
 0x1a4   :  { %v696_v39 = vpop.xlane.xlu1 %695  ;;  %v2036_v17 = vsel %vm1391_vm9, %v2035_v6, %v2031_v38  ;;  %v693_v27 = vpop.xlane.xlu0 %692  ;;  %v1003_v6 = vsel %vm8940_vm0, %v262_v21, 0.0  ;;  %v958_v28 = vsel %vm8940_vm0, %v247_v24, 0.0  ;;  %v248_v38 = vld [vmem:[%s8921_s0 + $0x720] sm:$0xff] }
 0x1a5   :  { %v2045_v47 = vrot.slane %v696_v39, %v5247_v29  ;;  %v2040_v49 = vrot.slane %v693_v27, %v5250_v33  ;;  %v233_v39 = vld [vmem:[%s8921_s0 + $0x6a8] sm:$0xff] }
 0x1a7   :  { %v2041_v55 = vsel %vm8948_vm12, %v2040_v49, %v2036_v17  ;;  %950 = vadd.xlane.f32.xlu1 %v949_v45  ;;  %908 = vadd.xlane.f32.xlu0 %v907_v46  ;;  %vm8949_vm12 = vcmask 851712   ;;  %v916_v49 = vsel %vm8940_vm0, %v233_v39, 0.0 }
 0x1a8   :  { %v702_v58 = vpop.xlane.xlu1 %701  ;;  %v2046_v44 = vsel %vm1405_vm11, %v2045_v47, %v2041_v55  ;;  %v699_v14 = vpop.xlane.xlu0 %698  ;;  %v961_v47 = vsel %vm8940_vm0, %v248_v38, 0.0  ;;  %v234_v55 = vld [vmem:[%s8921_s0 + $0x6b0] sm:$0xff] }
 0x1a9   :  { %v2055_v60 = vrot.slane %v702_v58, %v5257_v42  ;;  %v2050_v1 = vrot.slane %v699_v14, %v5260_v43  ;;  %v263_v58 = vld [vmem:[%s8921_s0 + $0x798] sm:$0xff] }
 0x1ab   :  { %v2051_v11 = vsel %vm8949_vm12, %v2050_v1, %v2046_v44  ;;  %911 = vadd.xlane.f32.xlu1 %v910_v59  ;;  %953 = vadd.xlane.f32.xlu0 %v952_v2  ;;  %v1006_v1 = vsel %vm8940_vm0, %v263_v58, 0.0  ;;  %vm8950_vm12 = vcmask 720512  }
 0x1ac   :  { %v708_v4 = vpop.xlane.xlu1 %707  ;;  %v2056_v53 = vsel %vm1419_vm13, %v2055_v60, %v2051_v11  ;;  %v705_v5 = vpop.xlane.xlu0 %704  ;;  %v919_v60 = vsel %vm8940_vm0, %v234_v55, 0.0  ;;  %v264_v11 = vld [vmem:[%s8921_s0 + $0x7a0] sm:$0xff] }
 0x1ad   :  { %v2065_v51 = vrot.slane %v708_v4, %v5279_v15  ;;  %v2060_v9 = vrot.slane %v705_v5, %v5282_v61  ;;  %v249_v4 = vld [vmem:[%s8921_s0 + $0x728] sm:$0xff] }
 0x1af   :  { %v2061_v10 = vsel %vm1426_vm14, %v2060_v9, %v2056_v53  ;;  %998 = vadd.xlane.f32.xlu1 %v997_v54  ;;  %956 = vadd.xlane.f32.xlu0 %v955_v8  ;;  %v964_v9 = vsel %vm8940_vm0, %v249_v4, 0.0 }
 0x1b0   :  { %v6137_v12 = vsel %vm1433_vm15, %v2065_v51, %v2061_v10  ;;  %v714_v50 = vpop.xlane.xlu1 %713  ;;  %v711_v16 = vpop.xlane.xlu0 %710  ;;  %v1009_v51 = vsel %vm8940_vm0, %v264_v11, 0.0  ;;  %v250_v10 = vld [vmem:[%s8921_s0 + $0x730] sm:$0xff] }
 0x1b1   :  { %v2074_v22 = vrot.slane %v714_v50, %v5162_v32  ;;  %v2070_v20 = vrot.slane %v711_v16, %v5156_v30  ;;  %v235_v50 = vld [vmem:[%s8921_s0 + $0x6b8] sm:$0xff] }
 0x1b2   :  { %v922_v21 = vsel %vm8940_vm0, %v235_v50, 0.0 }
 0x1b3   :  { %v2075_v25 = vsel %vm1335_vm1, %v2074_v22, %v2070_v20  ;;  %914 = vadd.xlane.f32.xlu1 %v913_v19  ;;  %1001 = vadd.xlane.f32.xlu0 %v1000_v63  ;;  %v967_v20 = vsel %vm8940_vm0, %v250_v10, 0.0 }
 0x1b4   :  { %v720_v26 = vpop.xlane.xlu1 %719  ;;  %v717_v37 = vpop.xlane.xlu0 %716 }
 0x1b5   :  { %v2084_v34 = vrot.slane %v720_v26, %v5159_v31  ;;  %v2079_v36 = vrot.slane %v717_v37, %v5169_v35  ;;  %v236_v26 = vld [vmem:[%s8921_s0 + $0x6c0] sm:$0xff]  ;;  %v265_v37 = vld [vmem:[%s8921_s0 + $0x7a8] sm:$0xff] }
 0x1b6   :  { %v925_v38 = vsel %vm8940_vm0, %v236_v26, 0.0  ;;  %v1012_v39 = vsel %vm8940_vm0, %v265_v37, 0.0  ;;  %v240_v26 = vld [vmem:[%s8921_s0 + $0x6e0] sm:$0xff]  ;;  %v269_v37 = vld [vmem:[%s8921_s0 + $0x7c8] sm:$0xff] }
 0x1b7   :  { %v2080_v17 = vsel %vm1342_vm2, %v2079_v36, %v2075_v25  ;;  %1004 = vadd.xlane.f32.xlu1 %v1003_v6  ;;  %959 = vadd.xlane.f32.xlu0 %v958_v28 }
 0x1b8   :  { %v726_v27 = vpop.xlane.xlu1 %725  ;;  %v2085_v45 = vsel %vm1349_vm3, %v2084_v34, %v2080_v17  ;;  %v723_v46 = vpop.xlane.xlu0 %722 }
 0x1b9   :  { %v2094_v62 = vrot.slane %v726_v27, %v5174_v40  ;;  %v2089_v52 = vrot.slane %v723_v46, %v5188_v48  ;;  %v251_v46 = vld [vmem:[%s8921_s0 + $0x738] sm:$0xff] }
 0x1ba   :  { %v970_v58 = vsel %vm8940_vm0, %v251_v46, 0.0 }
 0x1bb   :  { %v2090_v44 = vsel %vm1356_vm4, %v2089_v52, %v2085_v45  ;;  %962 = vadd.xlane.f32.xlu1 %v961_v47  ;;  %917 = vadd.xlane.f32.xlu0 %v916_v49  ;;  %v266_v45 = vld [vmem:[%s8921_s0 + $0x7b0] sm:$0xff] }
 0x1bc   :  { %v732_v14 = vpop.xlane.xlu1 %731  ;;  %v2095_v59 = vsel %vm1363_vm5, %v2094_v62, %v2090_v44  ;;  %v729_v2 = vpop.xlane.xlu0 %728  ;;  %v1015_v55 = vsel %vm8940_vm0, %v266_v45, 0.0 }
 0x1bd   :  { %v2104_v41 = vrot.slane %v732_v14, %v5196_v56  ;;  %v2099_v3 = vrot.slane %v729_v2, %v5199_v57  ;;  %v237_v2 = vld [vmem:[%s8921_s0 + $0x6c8] sm:$0xff] }
 0x1be   :  { %v928_v4 = vsel %vm8940_vm0, %v237_v2, 0.0 }
 0x1bf   :  { %v2100_v53 = vsel %vm1370_vm6, %v2099_v3, %v2095_v59  ;;  %920 = vadd.xlane.f32.xlu1 %v919_v60  ;;  %1007 = vadd.xlane.f32.xlu0 %v1006_v1  ;;  %v252_v59 = vld [vmem:[%s8921_s0 + $0x740] sm:$0xff] }
 0x1c0   :  { %v738_v5 = vpop.xlane.xlu1 %737  ;;  %v2105_v54 = vsel %vm1377_vm7, %v2104_v41, %v2100_v53  ;;  %v735_v8 = vpop.xlane.xlu0 %734  ;;  %v973_v11 = vsel %vm8940_vm0, %v252_v59, 0.0 }
 0x1c1   :  { %v2114_v0 = vrot.slane %v738_v5, %v5217_v7  ;;  %v2109_v23 = vrot.slane %v735_v8, %v5229_v13  ;;  %v238_v5 = vld [vmem:[%s8921_s0 + $0x6d0] sm:$0xff] }
 0x1c3   :  { %v2110_v16 = vsel %vm1384_vm8, %v2109_v23, %v2105_v54  ;;  %1010 = vadd.xlane.f32.xlu1 %v1009_v51  ;;  %965 = vadd.xlane.f32.xlu0 %v964_v9  ;;  %v267_v54 = vld [vmem:[%s8921_s0 + $0x7b8] sm:$0xff]  ;;  %v931_v9 = vsel %vm8940_vm0, %v238_v5, 0.0  ;;  %v253_v23 = vld [vmem:[%s8921_s0 + $0x748] sm:$0xff]  ;;  %v1045_v5 = vld [vmem:[%s8922_s1] sm:$0xff] }
 0x1c4   :  { %v744_v19 = vpop.xlane.xlu1 %743  ;;  %v2115_v63 = vsel %vm1391_vm9, %v2114_v0, %v2110_v16  ;;  %v741_v22 = vpop.xlane.xlu0 %740  ;;  %v1018_v0 = vsel %vm8940_vm0, %v267_v54, 0.0  ;;  %v1046_v54 = vld [vmem:[%s8922_s1 + $0x8] sm:$0xff] }
 0x1c5   :  { %v2124_v24 = vrot.slane %v744_v19, %v5247_v29  ;;  %v2119_v25 = vrot.slane %v741_v22, %v5250_v33  ;;  %v976_v19 = vsel %vm8940_vm0, %v253_v23, 0.0  ;;  %v239_v22 = vld [vmem:[%s8921_s0 + $0x6d8] sm:$0xff] }
 0x1c7   :  { %v2120_v6 = vsel %vm8950_vm12, %v2119_v25, %v2115_v63  ;;  %968 = vadd.xlane.f32.xlu1 %v967_v20  ;;  %923 = vadd.xlane.f32.xlu0 %v922_v21  ;;  %vm8951_vm12 = vcmask 851712   ;;  %v254_v63 = vld [vmem:[%s8921_s0 + $0x750] sm:$0xff]  ;;  %v934_v25 = vsel %vm8940_vm0, %v239_v22, 0.0 }
 0x1c8   :  { %v750_v28 = vpop.xlane.xlu1 %749  ;;  %v2125_v34 = vsel %vm1405_vm11, %v2124_v24, %v2120_v6  ;;  %v747_v36 = vpop.xlane.xlu0 %746  ;;  %v979_v24 = vsel %vm8940_vm0, %v254_v63, 0.0  ;;  %v243_v63 = vld [vmem:[%s8921_s0 + $0x6f8] sm:$0xff]  ;;  %v1047_v22 = vld [vmem:[%s8922_s1 + $0x10] sm:$0xff] }
 0x1c9   :  { %v2134_v17 = vrot.slane %v750_v28, %v5257_v42  ;;  %v2129_v27 = vrot.slane %v747_v36, %v5260_v43  ;;  %v1024_v36 = vsel %vm8940_vm0, %v269_v37, 0.0 }
 0x1cb   :  { %v2130_v47 = vsel %vm8951_vm12, %v2129_v27, %v2125_v34  ;;  %926 = vadd.xlane.f32.xlu1 %v925_v38  ;;  %1013 = vadd.xlane.f32.xlu0 %v1012_v39  ;;  %vm8952_vm12 = vcmask 1041409   ;;  %v937_v34 = vsel %vm8940_vm0, %v240_v26, 0.0  ;;  %v270_v38 = vld [vmem:[%s8921_s0 + $0x7d0] sm:$0xff]  ;;  %v255_v39 = vld [vmem:[%s8921_s0 + $0x758] sm:$0xff] }
 0x1cc   :  { %v756_v49 = vpop.xlane.xlu1 %755  ;;  %v2135_v62 = vsel %vm1419_vm13, %v2134_v17, %v2130_v47  ;;  %v753_v52 = vpop.xlane.xlu0 %752  ;;  %v1027_v45 = vsel %vm8940_vm0, %v270_v38, 0.0  ;;  %v982_v46 = vsel %vm8940_vm0, %v255_v39, 0.0  ;;  %v256_v47 = vld [vmem:[%s8921_s0 + $0x760] sm:$0xff]  ;;  %v259_v38 = vld [vmem:[%s8921_s0 + $0x778] sm:$0xff]  ;;  %v273_v39 = vld [vmem:[%s8921_s0 + $0x7e8] sm:$0xff] }
 0x1cd   :  { %v2144_v44 = vrot.slane %v756_v49, %v5279_v15  ;;  %v2139_v14 = vrot.slane %v753_v52, %v5282_v61  ;;  %v241_v49 = vld [vmem:[%s8921_s0 + $0x6e8] sm:$0xff] }
 0x1cf   :  { %v2140_v60 = vsel %vm1426_vm14, %v2139_v14, %v2135_v62  ;;  %1016 = vadd.xlane.f32.xlu1 %v1015_v55  ;;  %971 = vadd.xlane.f32.xlu0 %v970_v58  ;;  %v985_v55 = vsel %vm8940_vm0, %v256_v47, 0.0  ;;  %v940_v58 = vsel %vm8940_vm0, %v241_v49, 0.0  ;;  %v271_v14 = vld [vmem:[%s8921_s0 + $0x7d8] sm:$0xff] }
 0x1d0   :  { %v2145_v1 = vsel %vm1433_vm15, %v2144_v44, %v2140_v60  ;;  %v6234_v41 = vpop.xlane.xlu1 %761  ;;  %v6236_v3 = vpop.xlane.xlu0 %758  ;;  %v242_v44 = vld [vmem:[%s8921_s0 + $0x6f0] sm:$0xff] }
 0x1d1   :  { %v6242_v53 = vsel %vm8952_vm12, %v2145_v1, %v6137_v12  ;;  %v268_v12 = vld [vmem:[%s8921_s0 + $0x7c0] sm:$0xff]  ;;  %v943_v60 = vsel %vm8940_vm0, %v242_v44, 0.0  ;;  %v1030_v1 = vsel %vm8940_vm0, %v271_v14, 0.0  ;;  %v274_v14 = vld [vmem:[%s8921_s0 + $0x7f0] sm:$0xff]  ;;  %vm8981_vm12 = vcmask 720512  }
 0x1d2   :  { %8953 = vst [vmem:[#allocation4_spill] sm:$0xff] %v6242_v53  ;;  %v1021_v16 = vsel %vm8940_vm0, %v268_v12, 0.0 }
 0x1d3   :  { %974 = vadd.xlane.f32.xlu1 %v973_v11  ;;  %929 = vadd.xlane.f32.xlu0 %v928_v4  ;;  %v272_v11 = vld [vmem:[%s8921_s0 + $0x7e0] sm:$0xff]  ;;  %v257_v4 = vld [vmem:[%s8921_s0 + $0x768] sm:$0xff] }
 0x1d4   :  { %v6250_v8 = vpop.xlane.xlu1 %767  ;;  %v6252_v51 = vpop.xlane.xlu0 %764  ;;  %v1033_v12 = vsel %vm8940_vm0, %v272_v11, 0.0  ;;  %v988_v23 = vsel %vm8940_vm0, %v257_v4, 0.0  ;;  %v1052_v11 = vld [vmem:[%s8922_s1 + $0x38] sm:$0xff] }
 0x1d7   :  { %932 = vadd.xlane.f32.xlu1 %v931_v9  ;;  %1019 = vadd.xlane.f32.xlu0 %v1018_v0 }
 0x1d8   :  { %v6262_v10 = vpop.xlane.xlu1 %773  ;;  %v6264_v50 = vpop.xlane.xlu0 %770 }
 0x1db   :  { %1022 = vadd.xlane.f32.xlu1 %v1021_v16  ;;  %977 = vadd.xlane.f32.xlu0 %v976_v19  ;;  %v4505_v16 = vpack.c.bf16 %v1046_v54, %v1045_v5  ;;  %v258_v19 = vld [vmem:[%s8921_s0 + $0x770] sm:$0xff]  ;;  %v1039_v54 = vsel %vm8940_vm0, %v274_v14, 0.0 }
 0x1dc   :  { %v6274_v20 = vpop.xlane.xlu1 %779  ;;  %v6276_v21 = vpop.xlane.xlu0 %776  ;;  %v991_v37 = vsel %vm8940_vm0, %v258_v19, 0.0  ;;  %v1054_v19 = vld [vmem:[%s8922_s1 + $0x48] sm:$0xff]  ;;  %v1059_v14 = vld [vmem:[%s8922_s1 + $0x70] sm:$0xff] }
 0x1dd   :  { %4506 = vmatprep.subr.bf16.mxu0 %v4505_v16 }
 0x1de   :  { %4508 = vmatpush3.bf16.msra.mxu0 %v4505_v16  ;;  %v1053_v16 = vld [vmem:[%s8922_s1 + $0x40] sm:$0xff] }
 0x1df   :  { %980 = vadd.xlane.f32.xlu1 %v979_v24  ;;  %935 = vadd.xlane.f32.xlu0 %v934_v25  ;;  %v1048_v24 = vld [vmem:[%s8922_s1 + $0x18] sm:$0xff] }
 0x1e0   :  { %v6286_v6 = vpop.xlane.xlu1 %785  ;;  %v6288_v28 = vpop.xlane.xlu0 %782 }
 0x1e3   :  { %938 = vadd.xlane.f32.xlu1 %v937_v34  ;;  %1025 = vadd.xlane.f32.xlu0 %v1024_v36  ;;  %v946_v34 = vsel %vm8940_vm0, %v243_v63, 0.0  ;;  %v4509_v36 = vpack.c.bf16 %v1048_v24, %v1047_v22  ;;  %v4521_v24 = vpack.c.bf16 %v1054_v19, %v1053_v16  ;;  %v2720_v16 = vld [vmem:[%s8923_s3] sm:$0xff]  ;;  %v2721_v19 = vld [vmem:[%s8923_s3 + $0x8] sm:$0xff] }
 0x1e4   :  { %v6298_v17 = vpop.xlane.xlu1 %791  ;;  %v6300_v27 = vpop.xlane.xlu0 %788 }
 0x1e5   :  { %4510 = vmatprep.subr.bf16.mxu0 %v4509_v36 }
 0x1e6   :  { %4512 = vmatpush3.bf16.msra.mxu0 %v4509_v36 }
 0x1e7   :  { %1028 = vadd.xlane.f32.xlu1 %v1027_v45  ;;  %983 = vadd.xlane.f32.xlu0 %v982_v46  ;;  %v1049_v45 = vld [vmem:[%s8922_s1 + $0x20] sm:$0xff]  ;;  %v1050_v46 = vld [vmem:[%s8922_s1 + $0x28] sm:$0xff] }
 0x1e8   :  { %v6310_v62 = vpop.xlane.xlu1 %797  ;;  %v6312_v52 = vpop.xlane.xlu0 %794  ;;  %v4513_v44 = vpack.c.bf16 %v1050_v46, %v1049_v45  ;;  %v1057_v45 = vld [vmem:[%s8922_s1 + $0x60] sm:$0xff]  ;;  %v1058_v46 = vld [vmem:[%s8922_s1 + $0x68] sm:$0xff] }
 0x1ea   :  { %4514 = vmatprep.subr.bf16.mxu0 %v4513_v44 }
 0x1eb   :  { %986 = vadd.xlane.f32.xlu1 %v985_v55  ;;  %941 = vadd.xlane.f32.xlu0 %v940_v58  ;;  %v994_v55 = vsel %vm8940_vm0, %v259_v38, 0.0  ;;  %v1036_v58 = vsel %vm8940_vm0, %v273_v39, 0.0 }
 0x1ec   :  { %v6322_v59 = vpop.xlane.xlu1 %803  ;;  %v6324_v2 = vpop.xlane.xlu0 %800  ;;  %4516 = vmatpush3.bf16.msra.mxu0 %v4513_v44  ;;  %v4529_v44 = vpack.c.bf16 %v1058_v46, %v1057_v45  ;;  %v2723_v45 = vld [vmem:[%s8923_s3 + $0x18] sm:$0xff] }
 0x1ed   :  { %8954 = vst [vmem:[#allocation5_spill] sm:$0xff] %v6322_v59 }
 0x1ef   :  { %944 = vadd.xlane.f32.xlu1 %v943_v60  ;;  %1031 = vadd.xlane.f32.xlu0 %v1030_v1  ;;  %v275_v60 = vld [vmem:[%s8921_s0 + $0x7f8] sm:$0xff]  ;;  %v1051_v1 = vld [vmem:[%s8922_s1 + $0x30] sm:$0xff] }
 0x1f0   :  { %v6340_v9 = vpop.xlane.xlu1 %809  ;;  %v6342_v0 = vpop.xlane.xlu0 %806 }
 0x1f3   :  { %1034 = vadd.xlane.f32.xlu1 %v1033_v12  ;;  %989 = vadd.xlane.f32.xlu0 %v988_v23  ;;  %v1042_v12 = vsel %vm8940_vm0, %v275_v60, 0.0  ;;  %v4517_v23 = vpack.c.bf16 %v1052_v11, %v1051_v1  ;;  %v1060_v60 = vld [vmem:[%s8922_s1 + $0x78] sm:$0xff]  ;;  %vm8983_vm0 = vcmask 720512  }
 0x1f4   :  { %v6358_v25 = vpop.xlane.xlu1 %815  ;;  %v6360_v26 = vpop.xlane.xlu0 %812 }
 0x1f5   :  { %4518 = vmatprep.subr.bf16.mxu0 %v4517_v23 }
 0x1f6   :  { %4520 = vmatpush3.bf16.msra.mxu0 %v4517_v23 }
 0x1f7   :  { %992 = vadd.xlane.f32.xlu1 %v991_v37  ;;  %947 = vadd.xlane.f32.xlu0 %v946_v34  ;;  %v1055_v37 = vld [vmem:[%s8922_s1 + $0x50] sm:$0xff]  ;;  %v1056_v34 = vld [vmem:[%s8922_s1 + $0x58] sm:$0xff] }
 0x1f8   :  { %v6376_v47 = vpop.xlane.xlu1 %821  ;;  %v6378_v49 = vpop.xlane.xlu0 %818  ;;  %4522 = vmatprep.subr.bf16.mxu0 %v4521_v24  ;;  %v4525_v39 = vpack.c.bf16 %v1056_v34, %v1055_v37 }
 0x1fa   :  { %4524 = vmatpush3.bf16.msra.mxu0 %v4521_v24  ;;  %v2722_v24 = vld [vmem:[%s8923_s3 + $0x10] sm:$0xff] }
 0x1fb   :  { %995 = vadd.xlane.f32.xlu1 %v994_v55  ;;  %1037 = vadd.xlane.f32.xlu0 %v1036_v58  ;;  %v4541_v46 = vpack.c.bf16 %v2723_v45, %v2722_v24 }
 0x1fc   :  { %v6394_v4 = vpop.xlane.xlu1 %827  ;;  %v6396_v5 = vpop.xlane.xlu0 %824  ;;  %4526 = vmatprep.subr.bf16.mxu0 %v4525_v39 }
 0x1fe   :  { %4528 = vmatpush3.bf16.msra.mxu0 %v4525_v39  ;;  %v4537_v39 = vpack.c.bf16 %v2721_v19, %v2720_v16 }
 0x1ff   :  { %1040 = vadd.xlane.f32.xlu0 %v1039_v54  ;;  %1043 = vadd.xlane.f32.xlu1 %v1042_v12  ;;  %v4533_v54 = vpack.c.bf16 %v1060_v60, %v1059_v14  ;;  %v2725_v14 = vld [vmem:[%s8923_s3 + $0x28] sm:$0xff] }
 0x200   :  { %v6406_v63 = vpop.xlane.xlu1 %833  ;;  %v6408_v22 = vpop.xlane.xlu0 %830  ;;  %4530 = vmatprep.subr.bf16.mxu0 %v4529_v44  ;;  %4538 = vmatprep.subr.bf16.mxu1 %v4537_v39 }
 0x201   :  { %4540 = vmatpush3.bf16.msra.mxu1 %v4537_v39 }
 0x202   :  { %4532 = vmatpush3.bf16.msra.mxu0 %v4529_v44  ;;  %v2724_v44 = vld [vmem:[%s8923_s3 + $0x20] sm:$0xff]  ;;  %4542 = vmatprep.subr.bf16.mxu1 %v4541_v46 }
 0x203   :  { %4534 = vmatprep.subr.bf16.mxu0 %v4533_v54  ;;  %v4545_v16 = vpack.c.bf16 %v2725_v14, %v2724_v44 }
 0x204   :  { %v6416_v36 = vpop.xlane.xlu1 %839  ;;  %v6418_v38 = vpop.xlane.xlu0 %836 }
 0x205   :  { %4544 = vmatpush3.bf16.msra.mxu1 %v4541_v46 }
 0x206   :  { %4536 = vmatpush3.bf16.msra.mxu0 %v4533_v54  ;;  %4546 = vmatprep.subr.bf16.mxu1 %v4545_v16 }
 0x208   :  { %v6426_v55 = vpop.xlane.xlu1 %845  ;;  %v6428_v58 = vpop.xlane.xlu0 %842 }
 0x209   :  { %8955 = vst [vmem:[#allocation6_spill] sm:$0xff] %v6426_v55  ;;  %4548 = vmatpush3.bf16.msra.mxu1 %v4545_v16 }
 0x20c   :  { %v6436_v1 = vpop.xlane.xlu1 %851  ;;  %v6438_v11 = vpop.xlane.xlu0 %848 }
 0x20d   :  { %8956 = vst [vmem:[#allocation7_spill] sm:$0xff] %v6436_v1  ;;  %8957 = vst [vmem:[#allocation8_spill] sm:$0xff] %v6438_v11 }
 0x210   :  { %v6440_v12 = vpop.xlane.xlu1 %857  ;;  %v6442_v23 = vpop.xlane.xlu0 %854 }
 0x214   :  { %v6453_v37 = vpop.xlane.xlu1 %863  ;;  %v6455_v34 = vpop.xlane.xlu0 %860 }
 0x218   :  { %v6466_v60 = vpop.xlane.xlu1 %869  ;;  %v6468_v54 = vpop.xlane.xlu0 %866 }
 0x21c   :  { %v6470_v19 = vpop.xlane.xlu1 %875  ;;  %v6472_v24 = vpop.xlane.xlu0 %872 }
 0x220   :  { %v6474_v45 = vpop.xlane.xlu1 %881  ;;  %v6476_v18 = vpop.xlane.xlu0 %878 }
 0x224   :  { %v6478_v53 = vpop.xlane.xlu1 %887  ;;  %v6480_v39 = vpop.xlane.xlu0 %884 }
 0x225   :  { %8958 = vst [vmem:[#allocation9_spill] sm:$0xff] %v6478_v53  ;;  %8959 = vst [vmem:[#allocation10_spill] sm:$0xff] %v6480_v39 }
 0x228   :  { %v6482_v1 = vpop.xlane.xlu1 %893  ;;  %v6484_v11 = vpop.xlane.xlu0 %890 }
 0x229   :  { %8960 = vst [vmem:[#allocation11_spill] sm:$0xff] %v6482_v1  ;;  %8961 = vst [vmem:[#allocation12_spill] sm:$0xff] %v6484_v11 }
 0x22c   :  { %v6486_v44 = vpop.xlane.xlu1 %899  ;;  %v6488_v46 = vpop.xlane.xlu0 %896 }
 0x22d   :  { %8962 = vst [vmem:[#allocation13_spill] sm:$0xff] %v6486_v44  ;;  %8963 = vst [vmem:[#allocation14_spill] sm:$0xff] %v6488_v46 }
 0x230   :  { %v6490_v14 = vpop.xlane.xlu1 %905  ;;  %v6492_v55 = vpop.xlane.xlu0 %902 }
 0x231   :  { %8964 = vst [vmem:[#allocation15_spill] sm:$0xff] %v6490_v14  ;;  %8965 = vst [vmem:[#allocation16_spill] sm:$0xff] %v6492_v55 }
 0x234   :  { %v6494_v16 = vpop.xlane.xlu1 %950  ;;  %v6496_v59 = vpop.xlane.xlu0 %908 }
 0x235   :  { %8966 = vst [vmem:[#allocation17_spill] sm:$0xff] %v6494_v16  ;;  %8967 = vst [vmem:[#allocation18_spill] sm:$0xff] %v6496_v59 }
 0x238   :  { %v6498_v15 = vpop.xlane.xlu1 %911  ;;  %v6500_v53 = vpop.xlane.xlu0 %953 }
 0x239   :  { %8968 = vst [vmem:[#allocation19_spill] sm:$0xff] %v6498_v15  ;;  %8969 = vst [vmem:[#allocation20_spill] sm:$0xff] %v6500_v53 }
 0x23c   :  { %v6502_v39 = vpop.xlane.xlu1 %998  ;;  %v6504_v1 = vpop.xlane.xlu0 %956 }
 0x23d   :  { %8970 = vst [vmem:[#allocation21_spill] sm:$0xff] %v6502_v39 }
 0x240   :  { %v6506_v11 = vpop.xlane.xlu1 %914  ;;  %v6508_v44 = vpop.xlane.xlu0 %1001 }
 0x241   :  { %8971 = vst [vmem:[#allocation22_spill] sm:$0xff] %v6506_v11  ;;  %v2153_v11 = vrot.slane %v6234_v41, %v5162_v32  ;;  %v2168_v41 = vrot.slane %v6264_v50, %v5188_v48 }
 0x244   :  { %v6510_v46 = vpop.xlane.xlu1 %1004  ;;  %v6512_v14 = vpop.xlane.xlu0 %959 }
 0x245   :  { %8972 = vst [vmem:[#allocation23_spill] sm:$0xff] %v6510_v46  ;;  %8973 = vst [vmem:[#allocation24_spill] sm:$0xff] %v6512_v14  ;;  %v2149_v46 = vrot.slane %v6236_v3, %v5156_v30  ;;  %v2158_v14 = vrot.slane %v6252_v51, %v5169_v35  ;;  %v2232_v3 = vrot.slane %v6340_v9, %v5162_v32 }
 0x246   :  { %v2228_v51 = vrot.slane %v6342_v0, %v5156_v30  ;;  %v2178_v9 = vrot.slane %v6276_v21, %v5199_v57  ;;  %v2242_v0 = vrot.slane %v6358_v25, %v5159_v31  ;;  %v2183_v25 = vrot.slane %v6274_v20, %v5196_v56 }
 0x247   :  { %v2321_v20 = vrot.slane %v6453_v37, %v5159_v31  ;;  %v2262_v37 = vrot.slane %v6394_v4, %v5196_v56 }
 0x248   :  { %v6514_v55 = vpop.xlane.xlu1 %962  ;;  %v6516_v16 = vpop.xlane.xlu0 %917 }
 0x249   :  { %8974 = vst [vmem:[#allocation25_spill] sm:$0xff] %v6514_v55  ;;  %8975 = vst [vmem:[#allocation26_spill] sm:$0xff] %v6516_v16 }
 0x24c   :  { %v6518_v59 = vpop.xlane.xlu1 %920  ;;  %v6520_v15 = vpop.xlane.xlu0 %1007 }
 0x24d   :  { %8976 = vst [vmem:[#allocation27_spill] sm:$0xff] %v6518_v59  ;;  %v2154_v59 = vsel %vm1335_vm1, %v2153_v11, %v2149_v46  ;;  %v2233_v46 = vsel %vm1335_vm1, %v2232_v3, %v2228_v51  ;;  %v2257_v51 = vrot.slane %v6396_v5, %v5199_v57 }
 0x250   :  { %v6522_v53 = vpop.xlane.xlu1 %1010  ;;  %v6524_v39 = vpop.xlane.xlu0 %965 }
 0x251   :  { %8977 = vst [vmem:[#allocation28_spill] sm:$0xff] %v6522_v53  ;;  %8978 = vst [vmem:[#allocation29_spill] sm:$0xff] %v6524_v39  ;;  %v2163_v53 = vrot.slane %v6250_v8, %v5159_v31  ;;  %v2159_v39 = vsel %vm1342_vm2, %v2158_v14, %v2154_v59  ;;  %v2173_v8 = vrot.slane %v6262_v10, %v5174_v40 }
 0x252   :  { %v2247_v14 = vrot.slane %v6378_v49, %v5188_v48  ;;  %v2311_v10 = vrot.slane %v6440_v12, %v5162_v32  ;;  %v2188_v12 = vrot.slane %v6288_v28, %v5229_v13  ;;  %v2326_v28 = vrot.slane %v6468_v54, %v5188_v48 }
 0x253   :  { %v2164_v59 = vsel %vm1349_vm3, %v2163_v53, %v2159_v39  ;;  %v2307_v53 = vrot.slane %v6442_v23, %v5156_v30  ;;  %v2316_v39 = vrot.slane %v6455_v34, %v5169_v35  ;;  %v2252_v23 = vrot.slane %v6376_v47, %v5174_v40 }
 0x254   :  { %v6532_v55 = vpop.xlane.xlu1 %968  ;;  %v6534_v16 = vpop.xlane.xlu0 %923  ;;  %v2169_v50 = vsel %vm1356_vm4, %v2168_v41, %v2164_v59 }
 0x255   :  { %8979 = vst [vmem:[#allocation30_spill] sm:$0xff] %v6532_v55  ;;  %8980 = vst [vmem:[#allocation31_spill] sm:$0xff] %v6534_v16  ;;  %v2237_v55 = vrot.slane %v6360_v26, %v5169_v35  ;;  %v2312_v59 = vsel %vm1335_vm1, %v2311_v10, %v2307_v53 }
 0x257   :  { %v2238_v26 = vsel %vm1342_vm2, %v2237_v55, %v2233_v46  ;;  %v2174_v55 = vsel %vm1363_vm5, %v2173_v8, %v2169_v50  ;;  %v2317_v8 = vsel %vm1342_vm2, %v2316_v39, %v2312_v59 }
 0x258   :  { %v6548_v16 = vpop.xlane.xlu1 %926  ;;  %v6550_v11 = vpop.xlane.xlu0 %1013  ;;  %v2179_v49 = vsel %vm1370_vm6, %v2178_v9, %v2174_v55  ;;  %v2243_v3 = vsel %vm1349_vm3, %v2242_v0, %v2238_v26  ;;  %v2193_v9 = vrot.slane %v6286_v6, %v5217_v7  ;;  %v2198_v0 = vrot.slane %v6300_v27, %v5250_v33 }
 0x259   :  { %v2248_v34 = vsel %vm1356_vm4, %v2247_v14, %v2243_v3  ;;  %v2184_v46 = vsel %vm1377_vm7, %v2183_v25, %v2179_v49  ;;  %v2267_v14 = vrot.slane %v6408_v22, %v5229_v13  ;;  %v2331_v6 = vrot.slane %v6466_v60, %v5174_v40 }
 0x25a   :  { %v2189_v5 = vsel %vm1384_vm8, %v2188_v12, %v2184_v46  ;;  %v2253_v26 = vsel %vm1363_vm5, %v2252_v23, %v2248_v34  ;;  %v2322_v10 = vsel %vm1349_vm3, %v2321_v20, %v2317_v8  ;;  %v2336_v27 = vrot.slane %v6472_v24, %v5199_v57 }
 0x25b   :  { %v2258_v54 = vsel %vm1370_vm6, %v2257_v51, %v2253_v26  ;;  %v2327_v53 = vsel %vm1356_vm4, %v2326_v28, %v2322_v10  ;;  %v2203_v25 = vrot.slane %v6298_v17, %v5247_v29  ;;  %v2194_v55 = vsel %vm1391_vm9, %v2193_v9, %v2189_v5 }
 0x25c   :  { %v6570_v21 = vpop.xlane.xlu1 %1016  ;;  %v6572_v41 = vpop.xlane.xlu0 %971  ;;  %v2199_v22 = vsel %vm8981_vm12, %v2198_v0, %v2194_v55  ;;  %v2208_v60 = vrot.slane %v6312_v52, %v5260_v43  ;;  %v2272_v49 = vrot.slane %v6406_v63, %v5217_v7  ;;  %v2263_v12 = vsel %vm1377_vm7, %v2262_v37, %v2258_v54  ;;  %v8984_v0 = vld [vmem:[#allocation10_spill] sm:$0xff]  ;;  %v8985_v54 = vld [vmem:[#allocation3_spill] sm:$0xff]  ;;  %v8990_v55 = vld [vmem:[#allocation9_spill] sm:$0xff] }
 0x25d   :  { %v2268_v24 = vsel %vm1384_vm8, %v2267_v14, %v2263_v12  ;;  %v2277_v23 = vrot.slane %v6418_v38, %v5250_v33  ;;  %v2341_v17 = vrot.slane %v6470_v19, %v5196_v56  ;;  %v2332_v3 = vsel %vm1363_vm5, %v2331_v6, %v2327_v53  ;;  %v8986_v14 = vld [vmem:[#allocation5_spill] sm:$0xff] }
 0x25e   :  { %v2337_v34 = vsel %vm1370_vm6, %v2336_v27, %v2332_v3  ;;  %v2346_v52 = vrot.slane %v6476_v18, %v5229_v13  ;;  %v2204_v59 = vsel %vm1405_vm11, %v2203_v25, %v2199_v22  ;;  %v2213_v20 = vrot.slane %v6310_v62, %v5257_v42  ;;  %v8989_v27 = vld [vmem:[#allocation8_spill] sm:$0xff] }
 0x25f   :  { %vm8982_vm12 = vcmask 851712   ;;  %v2282_v19 = vrot.slane %v6416_v36, %v5247_v29  ;;  %v2273_v8 = vsel %vm1391_vm9, %v2272_v49, %v2268_v24  ;;  %v2287_v18 = vrot.slane %v6428_v58, %v5260_v43  ;;  %v8992_v24 = vld [vmem:[#allocation12_spill] sm:$0xff] }
 0x260   :  { %v6592_v50 = vpop.xlane.xlu1 %974  ;;  %v6594_v47 = vpop.xlane.xlu0 %929  ;;  %v2209_v38 = vsel %vm8982_vm12, %v2208_v60, %v2204_v59  ;;  %v2278_v28 = vsel %vm8983_vm0, %v2277_v23, %v2273_v8  ;;  %v2351_v9 = vrot.slane %v6474_v45, %v5217_v7  ;;  %v2342_v46 = vsel %vm1377_vm7, %v2341_v17, %v2337_v34  ;;  %v8987_v45 = vld [vmem:[#allocation6_spill] sm:$0xff]  ;;  %vm8988_vm0 = vmmov %vm8982_vm12  ;;  %v8993_v34 = vld [vmem:[#allocation7_spill] sm:$0xff] }
 0x261   :  { %v2218_v62 = vrot.slane %v6324_v2, %v5282_v61  ;;  %v2347_v5 = vsel %vm1384_vm8, %v2346_v52, %v2342_v46  ;;  %v2356_v36 = vrot.slane %v8984_v0, %v5250_v33  ;;  %v2223_v58 = vrot.slane %v8986_v14, %v8985_v54  ;;  %v8996_v0 = vld [vmem:[#allocation16_spill] sm:$0xff] }
 0x262   :  { %v2214_v6 = vsel %vm1419_vm13, %v2213_v20, %v2209_v38  ;;  %v2292_v10 = vrot.slane %v8987_v45, %v5257_v42  ;;  %v2283_v53 = vsel %vm1405_vm11, %v2282_v19, %v2278_v28  ;;  %v2297_v25 = vrot.slane %v8989_v27, %v5282_v61  ;;  %v8994_v19 = vld [vmem:[#allocation11_spill] sm:$0xff]  ;;  %v8997_v14 = vld [vmem:[#allocation4_spill] sm:$0xff]  ;;  %v8999_v45 = vld [vmem:[#allocation18_spill] sm:$0xff] }
 0x263   :  { %v2288_v2 = vsel %vm8988_vm0, %v2287_v18, %v2283_v53  ;;  %v2361_v22 = vrot.slane %v8990_v55, %v5247_v29  ;;  %v2352_v60 = vsel %vm1391_vm9, %v2351_v9, %v2347_v5  ;;  %v2219_v49 = vsel %vm1426_vm14, %v2218_v62, %v2214_v6  ;;  %v8995_v62 = vld [vmem:[#allocation15_spill] sm:$0xff]  ;;  %v9000_v53 = vld [vmem:[#allocation20_spill] sm:$0xff] }
 0x264   :  { %v6614_v39 = vpop.xlane.xlu1 %932  ;;  %v6616_v4 = vpop.xlane.xlu0 %1019  ;;  %vm8991_vm12 = vcmask 720512   ;;  %v2366_v23 = vrot.slane %v8992_v24, %v5260_v43  ;;  %v2302_v52 = vrot.slane %v8993_v34, %v8985_v54  ;;  %v2293_v59 = vsel %vm1419_vm13, %v2292_v10, %v2288_v2 }
 0x265   :  { %v2357_v12 = vsel %vm8991_vm12, %v2356_v36, %v2352_v60  ;;  %v2224_v20 = vsel %vm1433_vm15, %v2223_v58, %v2219_v49  ;;  %v2298_v38 = vsel %vm1426_vm14, %v2297_v25, %v2293_v59  ;;  %v2371_v8 = vrot.slane %v8994_v19, %v5257_v42  ;;  %v9001_v25 = vld [vmem:[#allocation14_spill] sm:$0xff]  ;;  %v9005_v59 = vld [vmem:[#allocation24_spill] sm:$0xff] }
 0x266   :  { %v2362_v28 = vsel %vm1405_vm11, %v2361_v22, %v2357_v12  ;;  %v2390_v5 = vrot.slane %v8995_v62, %v5162_v32  ;;  %v2386_v36 = vrot.slane %v8996_v0, %v5156_v30  ;;  %vm8998_vm12 = vcmask 1042434   ;;  %v9002_v22 = vld [vmem:[#allocation19_spill] sm:$0xff]  ;;  %v9003_v12 = vld [vmem:[#allocation17_spill] sm:$0xff] }
 0x267   :  { %v2367_v18 = vsel %vm8988_vm0, %v2366_v23, %v2362_v28  ;;  %v6701_v58 = vsel %vm8998_vm12, %v2224_v20, %v8997_v14  ;;  %v6704_v6 = vsel %vm1433_vm15, %v2302_v52, %v2298_v38  ;;  %v2395_v10 = vrot.slane %v8999_v45, %v5169_v35  ;;  %v9004_v23 = vld [vmem:[#allocation22_spill] sm:$0xff]  ;;  %v9008_v0 = vld [vmem:[#allocation25_spill] sm:$0xff] }
 0x268   :  { %v6636_v51 = vpop.xlane.xlu1 %1022  ;;  %v6638_v63 = vpop.xlane.xlu0 %977  ;;  %v2469_v2 = vrot.slane %v9000_v53, %v5162_v32  ;;  %v2372_v27 = vsel %vm1419_vm13, %v2371_v8, %v2367_v18  ;;  %v2376_v55 = vrot.slane %v9001_v25, %v5282_v61  ;;  %v2400_v60 = vrot.slane %v9002_v22, %v5159_v31  ;;  %v9006_v8 = vld [vmem:[#allocation13_spill] sm:$0xff]  ;;  %v9007_v18 = vld [vmem:[#allocation23_spill] sm:$0xff]  ;;  %v9010_v25 = vld [vmem:[#allocation26_spill] sm:$0xff] }
 0x269   :  { %v2474_v49 = vrot.slane %v6504_v1, %v5169_v35  ;;  %v2465_v24 = vrot.slane %v9003_v12, %v5156_v30  ;;  %v2405_v34 = vrot.slane %v9004_v23, %v5188_v48  ;;  %v2548_v52 = vrot.slane %v6508_v44, %v5162_v32  ;;  %v9009_v45 = vld [vmem:[#allocation21_spill] sm:$0xff] }
 0x26a   :  { %v2479_v20 = vrot.slane %v9005_v59, %v5159_v31  ;;  %v2381_v28 = vrot.slane %v9006_v8, %v8985_v54  ;;  %v2391_v1 = vsel %vm1335_vm1, %v2390_v5, %v2386_v36  ;;  %v2553_v62 = vrot.slane %v9007_v18, %v5169_v35  ;;  %v9011_v36 = vld [vmem:[#allocation27_spill] sm:$0xff] }
 0x26b   :  { %v2484_v14 = vrot.slane %v9008_v0, %v5188_v48  ;;  %v2396_v32 = vsel %vm1342_vm2, %v2395_v10, %v2391_v1  ;;  %v2470_v44 = vsel %vm1335_vm1, %v2469_v2, %v2465_v24  ;;  %v2544_v53 = vrot.slane %v9009_v45, %v5156_v30 }
 0x26c   :  { %v6658_v37 = vpop.xlane.xlu1 %980  ;;  %v6660_v26 = vpop.xlane.xlu0 %935  ;;  %v2410_v22 = vrot.slane %v9010_v25, %v5174_v40  ;;  %v6743_v12 = vsel %vm1426_vm14, %v2376_v55, %v2372_v27  ;;  %v2401_v5 = vsel %vm1349_vm3, %v2400_v60, %v2396_v32  ;;  %v2475_v35 = vsel %vm1342_vm2, %v2474_v49, %v2470_v44  ;;  %v9012_v49 = vld [vmem:[#allocation28_spill] sm:$0xff] }
 0x26d   :  { %v2415_v23 = vrot.slane %v9011_v36, %v5199_v57  ;;  %v2406_v10 = vsel %vm1356_vm4, %v2405_v34, %v2401_v5  ;;  %v2549_v2 = vsel %vm1335_vm1, %v2548_v52, %v2544_v53  ;;  %v2480_v24 = vsel %vm1349_vm3, %v2479_v20, %v2475_v35  ;;  %v9013_v34 = vld [vmem:[#allocation29_spill] sm:$0xff]  ;;  %v9014_v20 = vld [vmem:[#allocation30_spill] sm:$0xff] }
 0x26e   :  { %v2558_v30 = vrot.slane %v6520_v15, %v5159_v31  ;;  %v2554_v55 = vsel %vm1342_vm2, %v2553_v62, %v2549_v2  ;;  %v2485_v60 = vsel %vm1356_vm4, %v2484_v14, %v2480_v24  ;;  %v2563_v1 = vrot.slane %v9012_v49, %v5188_v48  ;;  %v9015_v31 = vld [vmem:[#allocation31_spill] sm:$0xff] }
 0x26f   :  { %v2489_v18 = vrot.slane %v9013_v34, %v5174_v40  ;;  %v2411_v52 = vsel %vm1363_vm5, %v2410_v22, %v2406_v10  ;;  %v2494_v0 = vrot.slane %v9014_v20, %v5199_v57  ;;  %v2420_v15 = vrot.slane %v9015_v31, %v5196_v56 }
 0x270   :  { %v6678_v17 = vpop.xlane.xlu1 %938  ;;  %v6680_v3 = vpop.xlane.xlu0 %1025  ;;  %v2568_v32 = vrot.slane %v6550_v11, %v5174_v40  ;;  %v2416_v62 = vsel %vm1370_vm6, %v2415_v23, %v2411_v52  ;;  %v2425_v14 = vrot.slane %v6548_v16, %v5229_v13  ;;  %v2573_v48 = vrot.slane %v6570_v21, %v5199_v57 }
 0x271   :  { %v2499_v44 = vrot.slane %v6572_v41, %v5196_v56  ;;  %v2559_v45 = vsel %vm1349_vm3, %v2558_v30, %v2554_v55  ;;  %v2504_v53 = vrot.slane %v6592_v50, %v5229_v13  ;;  %v2430_v25 = vrot.slane %v6594_v47, %v5217_v7  ;;  %vm9018_vm3 = vmmov %vm8988_vm0 }
 0x272   :  { %v2578_v40 = vrot.slane %v6616_v4, %v5196_v56  ;;  %v2564_v16 = vsel %vm1356_vm4, %v2563_v1, %v2559_v45  ;;  %v2490_v57 = vsel %vm1363_vm5, %v2489_v18, %v2485_v60  ;;  %v2435_v21 = vrot.slane %v6614_v39, %v5250_v33  ;;  %vm9019_vm4 = vmmov %vm8988_vm0 }
 0x273   :  { %v2583_v41 = vrot.slane %v6636_v51, %v5229_v13  ;;  %v2495_v50 = vsel %vm1370_vm6, %v2494_v0, %v2490_v57  ;;  %v2421_v5 = vsel %vm1377_vm7, %v2420_v15, %v2416_v62  ;;  %v2569_v47 = vsel %vm1363_vm5, %v2568_v32, %v2564_v16 }
 0x274   :  { %v6691_v9 = vpop.xlane.xlu1 %1028  ;;  %v6693_v46 = vpop.xlane.xlu0 %983  ;;  %v2509_v56 = vrot.slane %v6638_v63, %v5217_v7  ;;  %v2426_v4 = vsel %vm1384_vm8, %v2425_v14, %v2421_v5  ;;  %v2574_v35 = vsel %vm1370_vm6, %v2573_v48, %v2569_v47  ;;  %v2500_v36 = vsel %vm1377_vm7, %v2499_v44, %v2495_v50  ;;  %v4417_v50 = vld [vmem:[%s8924_s2] ss:$0 sm:$0xff] }
 0x275   :  { %v2514_v39 = vrot.slane %v6658_v37, %v5250_v33  ;;  %v2505_v13 = vsel %vm1384_vm8, %v2504_v53, %v2500_v36  ;;  %v2431_v51 = vsel %vm1391_vm9, %v2430_v25, %v2426_v4  ;;  %v2579_v23 = vsel %vm1377_vm7, %v2578_v40, %v2574_v35  ;;  %vm9022_vm7 = vmmov %vm8988_vm0 }
 0x276   :  { %v2440_v10 = vrot.slane %v6660_v26, %v5247_v29  ;;  %vm9016_vm1 = vcmask 720512   ;;  %v2584_v30 = vsel %vm1384_vm8, %v2583_v41, %v2579_v23  ;;  %v2445_v55 = vrot.slane %v6678_v17, %v5260_v43 }
 0x277   :  { %v2436_v24 = vsel %vm9016_vm1, %v2435_v21, %v2431_v51  ;;  %v2519_v37 = vrot.slane %v6693_v46, %v5247_v29  ;;  %v2510_v60 = vsel %vm1391_vm9, %v2509_v56, %v2505_v13  ;;  %v2588_v49 = vrot.slane %v6680_v3, %v5217_v7  ;;  %vm9017_vm2 = vmmov %vm9016_vm1 }
 0x278   :  { %v6725_v38 = vpop.xlane.xlu1 %986  ;;  %v6727_v19 = vpop.xlane.xlu0 %941  ;;  %v2515_v34 = vsel %vm9017_vm2, %v2514_v39, %v2510_v60  ;;  %v2593_v18 = vrot.slane %v6691_v9, %v5250_v33  ;;  %v2441_v52 = vsel %vm1405_vm11, %v2440_v10, %v2436_v24  ;;  %v2382_v32 = vsel %vm1433_vm15, %v2381_v28, %v6743_v12  ;;  %vm9020_vm5 = vmmov %vm9016_vm1  ;;  %v4418_v39 = vld [vmem:[%s8925_s4] ss:$0 sm:$0xff] }
 0x279   :  { %v2524_v26 = vrot.slane %v6725_v38, %v5260_v43  ;;  %v2450_v1 = vrot.slane %v6727_v19, %v5257_v42  ;;  %v2446_v0 = vsel %vm9018_vm3, %v2445_v55, %v2441_v52  ;;  %v2520_v33 = vsel %vm1405_vm11, %v2519_v37, %v2515_v34  ;;  %v9026_v60 = vld [vmem:[#allocation2_spill] sm:$0xff] }
 0x27a   :  { %v2589_v31 = vsel %vm1391_vm9, %v2588_v49, %v2584_v30  ;;  %vm9021_vm6 = vcmask 1043459   ;;  %vm9023_vm8 = vcmask 1044484   ;;  %vm9024_vm9 = vcmask 1045509  }
 0x27b   :  { %v2525_v15 = vsel %vm9019_vm4, %v2524_v26, %v2520_v33  ;;  %v2594_v62 = vsel %vm9020_vm5, %v2593_v18, %v2589_v31  ;;  %v2636_v8 = vsel %vm9021_vm6, %v6704_v6, %v6701_v58  ;;  %v2831_v49 = vsub.s32 0, %v9026_v60 }
 0x27c   :  { %v6754_v59 = vpop.xlane.xlu1 %944  ;;  %v6756_v27 = vpop.xlane.xlu0 %1031  ;;  %v2898_v26 = vsub.s32 1, %v9026_v60  ;;  %v3032_v34 = vsub.s32 3, %v9026_v60  ;;  %v3233_v52 = vsub.s32 6, %v9026_v60 }
 0x27d   :  { %v2455_v17 = vrot.slane %v6754_v59, %v5282_v61  ;;  %v2598_v7 = vrot.slane %v6756_v27, %v5247_v29  ;;  %v2451_v29 = vsel %vm1419_vm13, %v2450_v1, %v2446_v0  ;;  %v2965_v1 = vsub.s32 2, %v9026_v60 }
 0x27f   :  { %v2599_v48 = vsel %vm1405_vm11, %v2598_v7, %v2594_v62  ;;  %vm9025_vm11 = vcmask 1047559   ;;  %v3300_v7 = vsub.s32 7, %v9026_v60 }
 0x280   :  { %v1035_v11 = vpop.xlane.xlu1 %1034  ;;  %v990_v22 = vpop.xlane.xlu0 %989 }
 0x281   :  { %v2529_v46 = vrot.slane %v990_v22, %v5257_v42  ;;  %v2603_v9 = vrot.slane %v1035_v11, %v5260_v43  ;;  %v2456_v43 = vsel %vm1426_vm14, %v2455_v17, %v2451_v29  ;;  %v2637_v22 = vsel %vm9023_vm8, %v2382_v32, %v2636_v8  ;;  %v4563_v8 = vld [vmem:[%s8921_s0 + $0x10] sm:$0xff] }
 0x282   :  { %v3099_v17 = vsub.s32 4, %v9026_v60 }
 0x283   :  { %v2530_v14 = vsel %vm1419_vm13, %v2529_v46, %v2525_v15  ;;  %v2604_v28 = vsel %vm9022_vm7, %v2603_v9, %v2599_v48  ;;  %v3166_v46 = vsub.s32 5, %v9026_v60 }
 0x284   :  { %v993_v2 = vpop.xlane.xlu1 %992  ;;  %v948_v63 = vpop.xlane.xlu0 %947 }
 0x285   :  { %v2534_v3 = vrot.slane %v993_v2, %v5282_v61  ;;  %v2460_v38 = vrot.slane %v948_v63, %v8985_v54 }
 0x287   :  { %v2535_v44 = vsel %vm1426_vm14, %v2534_v3, %v2530_v14  ;;  %v2461_v45 = vsel %vm1433_vm15, %v2460_v38, %v2456_v43  ;;  %v4561_v14 = vld [vmem:[%s8921_s0 + $0x8] sm:$0xff] }
 0x288   :  { %v996_v19 = vpop.xlane.xlu1 %995  ;;  %v1038_v20 = vpop.xlane.xlu0 %1037  ;;  %v2638_v57 = vsel %vm9024_vm9, %v2461_v45, %v2637_v22 }
 0x289   :  { %v2539_v59 = vrot.slane %v996_v19, %v8985_v54  ;;  %v2608_v27 = vrot.slane %v1038_v20, %v5257_v42 }
 0x28b   :  { %v2540_v40 = vsel %vm1433_vm15, %v2539_v59, %v2535_v44  ;;  %v2609_v11 = vsel %vm1419_vm13, %v2608_v27, %v2604_v28  ;;  %v4562_v44 = vld [vmem:[%s8921_s0] sm:$0xff]  ;;  %vm9027_vm13 = vcmask 195584  }
 0x28c   :  { %v1041_v53 = vpop.xlane.xlu0 %1040  ;;  %v1044_v42 = vpop.xlane.xlu1 %1043  ;;  %v2639_v58 = vsel %vm2630_vm10, %v2540_v40, %v2638_v57  ;;  %vm2735_vm10 = vcmask 523264   ;;  %vm9030_vm0 = vmmov %vm9027_vm13 }
 0x28d   :  { %v2613_v12 = vrot.slane %v1041_v53, %v5282_v61  ;;  %v2618_v25 = vrot.slane %v1044_v42, %v8985_v54  ;;  %v2726_v61 = vld [vmem:[%s8923_s3 + $0x30] sm:$0xff]  ;;  %v2727_v54 = vld [vmem:[%s8923_s3 + $0x38] sm:$0xff]  ;;  %vm9031_vm12 = vmmov %vm9030_vm0 }
 0x28e   :  { %v4549_v41 = vpack.c.bf16 %v2727_v54, %v2726_v61  ;;  %vm9032_vm1 = vmmov %vm9030_vm0  ;;  %v4567_v54 = vld [vmem:[%s8921_s0 + $0x28] sm:$0xff] }
 0x28f   :  { %v2614_v16 = vsel %vm1426_vm14, %v2613_v12, %v2609_v11  ;;  %vm9028_vm14 = vmmov %vm9027_vm13  ;;  %v4564_v12 = vld [vmem:[%s8921_s0 + $0x20] sm:$0xff] }
 0x290   :  { %v2619_v21 = vsel %vm1433_vm15, %v2618_v25, %v2614_v16  ;;  %4550 = vmatprep.subr.bf16.mxu1 %v4549_v41  ;;  %vm9029_vm15 = vmmov %vm9027_vm13  ;;  %v4565_v16 = vld [vmem:[%s8921_s0 + $0x18] sm:$0xff] }
 0x291   :  { %v2640_v6 = vsel %vm9025_vm11, %v2619_v21, %v2639_v58  ;;  %4552 = vmatpush3.bf16.msra.mxu1 %v4549_v41  ;;  %v4566_v21 = vld [vmem:[%s8921_s0 + $0x30] sm:$0xff]  ;;  %vm9033_vm2 = vmmov %vm9030_vm0 }
 0x292   :  { %4484 = vmatmul.mubr.f32.vlgmr.msra.gmra.mrb[0].mxu0 %v2640_v6  ;;  %vm9034_vm3 = vmmov %vm9030_vm0 }
 0x293   :  { %vm9035_vm4 = vmmov %vm9030_vm0 }
 0x294   :  { %vm9036_vm5 = vmmov %vm9030_vm0 }
 0x295   :  { %vm9037_vm6 = vmmov %vm9030_vm0 }
 0x296   :  { %vm9038_vm7 = vmmov %vm9030_vm0 }
 0x297   :  { %vm9039_vm8 = vmmov %vm9030_vm0 }
 0x298   :  { %vm9040_vm9 = vmmov %vm9030_vm0 }
 0x299   :  { %vm9041_vm11 = vmmov %vm9030_vm0 }
 0x365   :  { %v4485_v5 = vpop.f32.mrb[0].mxu0 }
 0x366   :  { %v2715_v47 = vadd.f32 %v4485_v5, %v4417_v50  ;;  %v2709_v56 = vpop.f32.mrb[1].mxu0 }
 0x367   :  { %v2710_v4 = vadd.f32 %v4417_v50, %v2709_v56  ;;  %v4568_v50 = vld [vmem:[%s8921_s0 + $0x40] sm:$0xff] }
 0x368   :  { %v2719_v36 = vmax.f32 %v2715_v47, 0.0 }
 0x369   :  { %v2718_v35 = vmax.f32 %v2710_v4, 0.0  ;;  %v4569_v4 = vld [vmem:[%s8921_s0 + $0x38] sm:$0xff] }
 0x36b   :  { %4502 = vmatprep.mubr.msk.f32.mxu1 %vm2735_vm10, %v2718_v35 }
 0x36c   :  { %4503 = vmatmul.mubr.msk.f32.vlgmr.msra.gmra.mrb[0].mxu1 %vm2735_vm10, %v2719_v36  ;;  %v4570_v36 = vld [vmem:[%s8921_s0 + $0x50] sm:$0xff]  ;;  %vm9042_vm10 = vmmov %vm9030_vm0 }
 0x43f   :  { %v4504_v13 = vpop.f32.mrb[0].mxu1 }
 0x440   :  { %v2814_v51 = vadd.f32 %v4504_v13, %v4418_v39  ;;  %v2808_v23 = vpop.f32.mrb[1].mxu1 }
 0x441   :  { %v2809_v10 = vadd.f32 %v4418_v39, %v2808_v23  ;;  %v4571_v23 = vld [vmem:[%s8921_s0 + $0x48] sm:$0xff] }
 0x442   :  { %v4422_v2 = vmul.f32 -1.442695, %v2814_v51 }
 0x443   :  { %v4421_v63 = vmul.f32 -1.442695, %v2809_v10 }
 0x444   :  { %4553 = vpow2.f32 %v4422_v2  ;;  %v4572_v2 = vld [vmem:[%s8921_s0 + $0x60] sm:$0xff] }
 0x445   :  { %4555 = vpow2.f32 %v4421_v63 }
 0x44e   :  { %v4554_v24 = vpop.eup %4553 }
 0x44f   :  { %v4556_v30 = vpop.eup %4555  ;;  %v2824_v55 = vadd.f32 1.0, %v4554_v24 }
 0x450   :  { %v2823_v37 = vadd.f32 1.0, %v4556_v30 }
 0x451   :  { %4557 = vrcp.f32 %v2824_v55  ;;  %v4573_v55 = vld [vmem:[%s8921_s0 + $0x58] sm:$0xff] }
 0x452   :  { %4559 = vrcp.f32 %v2823_v37 }
 0x45b   :  { %v4558_v18 = vpop.eup %4557 }
 0x45c   :  { %v6883_v3 = vpop.eup %4559  ;;  %v6885_v38 = vrot.slane %v4558_v18, %v2831_v49  ;;  %v6887_v19 = vrot.slane %v4558_v18, %v2898_v26  ;;  %v6889_v20 = vrot.slane %v4558_v18, %v2965_v1  ;;  %v6893_v0 = vrot.slane %v4558_v18, %v3032_v34 }
 0x45d   :  { %v2832_v33 = vrot.slane %v6883_v3, %v2831_v49  ;;  %v6898_v9 = vrot.slane %v4558_v18, %v3099_v17  ;;  %v6902_v59 = vrot.slane %v4558_v18, %v3166_v46  ;;  %v6906_v31 = vrot.slane %v4558_v18, %v3233_v52  ;;  %v4574_v49 = vld [vmem:[%s8921_s0 + $0x70] sm:$0xff] }
 0x45e   :  { %v6910_v15 = vrot.slane %v4558_v18, %v3300_v7  ;;  %v2899_v29 = vrot.slane %v6883_v3, %v2898_v26  ;;  %v2966_v27 = vrot.slane %v6883_v3, %v2965_v1  ;;  %v3033_v32 = vrot.slane %v6883_v3, %v3032_v34  ;;  %v4575_v18 = vld [vmem:[%s8921_s0 + $0x68] sm:$0xff] }
 0x45f   :  { %2838 = vbcast.lane.b32.xlu1 %v2832_v33, 264  ;;  %2834 = vbcast.lane.b32.xlu0 %v2832_v33, 256  ;;  %v6948_v22 = vrot.slane %v6883_v3, %v3099_v17 }
 0x463   :  { %2842 = vbcast.lane.b32.xlu1 %v2832_v33, 272  ;;  %2850 = vbcast.lane.b32.xlu0 %v2832_v33, 288 }
 0x467   :  { %2846 = vbcast.lane.b32.xlu1 %v2832_v33, 280  ;;  %2858 = vbcast.lane.b32.xlu0 %v2832_v33, 304 }
 0x46b   :  { %2854 = vbcast.lane.b32.xlu1 %v2832_v33, 296  ;;  %2866 = vbcast.lane.b32.xlu0 %v2832_v33, 320 }
 0x46f   :  { %2862 = vbcast.lane.b32.xlu1 %v2832_v33, 312  ;;  %2874 = vbcast.lane.b32.xlu0 %v2832_v33, 336 }
 0x473   :  { %2870 = vbcast.lane.b32.xlu1 %v2832_v33, 328  ;;  %2882 = vbcast.lane.b32.xlu0 %v2832_v33, 352 }
 0x477   :  { %2878 = vbcast.lane.b32.xlu1 %v2832_v33, 344  ;;  %2890 = vbcast.lane.b32.xlu0 %v2832_v33, 368 }
 0x47b   :  { %2886 = vbcast.lane.b32.xlu1 %v2832_v33, 360  ;;  %2901 = vbcast.lane.b32.xlu0 %v2899_v29, 256 }
 0x47f   :  { %2894 = vbcast.lane.b32.xlu1 %v2832_v33, 376  ;;  %2909 = vbcast.lane.b32.xlu0 %v2899_v29, 272  ;;  %v4576_v33 = vld [vmem:[%s8921_s0 + $0x80] sm:$0xff] }
 0x483   :  { %2905 = vbcast.lane.b32.xlu1 %v2899_v29, 264  ;;  %2917 = vbcast.lane.b32.xlu0 %v2899_v29, 288 }
 0x487   :  { %2913 = vbcast.lane.b32.xlu1 %v2899_v29, 280  ;;  %2925 = vbcast.lane.b32.xlu0 %v2899_v29, 304 }
 0x48b   :  { %2921 = vbcast.lane.b32.xlu1 %v2899_v29, 296  ;;  %2933 = vbcast.lane.b32.xlu0 %v2899_v29, 320 }
 0x48f   :  { %2929 = vbcast.lane.b32.xlu1 %v2899_v29, 312  ;;  %2941 = vbcast.lane.b32.xlu0 %v2899_v29, 336 }
 0x493   :  { %2937 = vbcast.lane.b32.xlu1 %v2899_v29, 328  ;;  %2949 = vbcast.lane.b32.xlu0 %v2899_v29, 352 }
 0x497   :  { %2945 = vbcast.lane.b32.xlu1 %v2899_v29, 344  ;;  %2957 = vbcast.lane.b32.xlu0 %v2899_v29, 368 }
 0x49b   :  { %2953 = vbcast.lane.b32.xlu1 %v2899_v29, 360  ;;  %2968 = vbcast.lane.b32.xlu0 %v2966_v27, 256 }
 0x49f   :  { %2961 = vbcast.lane.b32.xlu1 %v2899_v29, 376  ;;  %2976 = vbcast.lane.b32.xlu0 %v2966_v27, 272 }
 0x4a3   :  { %2972 = vbcast.lane.b32.xlu1 %v2966_v27, 264  ;;  %2984 = vbcast.lane.b32.xlu0 %v2966_v27, 288 }
 0x4a7   :  { %2980 = vbcast.lane.b32.xlu1 %v2966_v27, 280  ;;  %2992 = vbcast.lane.b32.xlu0 %v2966_v27, 304 }
 0x4ab   :  { %2988 = vbcast.lane.b32.xlu1 %v2966_v27, 296  ;;  %3000 = vbcast.lane.b32.xlu0 %v2966_v27, 320 }
 0x4af   :  { %2996 = vbcast.lane.b32.xlu1 %v2966_v27, 312  ;;  %3008 = vbcast.lane.b32.xlu0 %v2966_v27, 336 }
 0x4b3   :  { %3004 = vbcast.lane.b32.xlu1 %v2966_v27, 328  ;;  %3016 = vbcast.lane.b32.xlu0 %v2966_v27, 352 }
 0x4b7   :  { %3012 = vbcast.lane.b32.xlu1 %v2966_v27, 344  ;;  %3024 = vbcast.lane.b32.xlu0 %v2966_v27, 368 }
 0x4bb   :  { %3020 = vbcast.lane.b32.xlu1 %v2966_v27, 360  ;;  %3035 = vbcast.lane.b32.xlu0 %v3033_v32, 256 }
 0x4bf   :  { %3028 = vbcast.lane.b32.xlu1 %v2966_v27, 376  ;;  %3043 = vbcast.lane.b32.xlu0 %v3033_v32, 272 }
 0x4c3   :  { %3039 = vbcast.lane.b32.xlu1 %v3033_v32, 264  ;;  %3051 = vbcast.lane.b32.xlu0 %v3033_v32, 288 }
 0x4c7   :  { %3047 = vbcast.lane.b32.xlu1 %v3033_v32, 280  ;;  %3059 = vbcast.lane.b32.xlu0 %v3033_v32, 304 }
 0x4cb   :  { %3055 = vbcast.lane.b32.xlu1 %v3033_v32, 296  ;;  %3067 = vbcast.lane.b32.xlu0 %v3033_v32, 320 }
 0x4cf   :  { %3063 = vbcast.lane.b32.xlu1 %v3033_v32, 312  ;;  %3075 = vbcast.lane.b32.xlu0 %v3033_v32, 336 }
 0x4d1   :  { %v2839_v62 = vpop.permute.xlu1 %2838  ;;  %v2835_v43 = vpop.permute.xlu0 %2834 }
 0x4d2   :  { %v3902_v48 = vmul.f32 %v4561_v14, %v2839_v62  ;;  %v3901_v45 = vmul.f32 %v4562_v44, %v2835_v43  ;;  %v4577_v62 = vld [vmem:[%s8921_s0 + $0x78] sm:$0xff]  ;;  %v4578_v14 = vld [vmem:[%s8921_s0 + $0x90] sm:$0xff] }
 0x4d3   :  { %3071 = vbcast.lane.b32.xlu1 %v3033_v32, 328  ;;  %3083 = vbcast.lane.b32.xlu0 %v3033_v32, 352 }
 0x4d4   :  { %4158 = vst.msk [vmem:[%s8926_s5 + $0x8] sm:$0xff] %vm9027_vm13, %v3902_v48  ;;  %vm9043_vm13 = vmmov %vm9030_vm0 }
 0x4d5   :  { %4157 = vst.msk [vmem:[%s8926_s5] sm:$0xff] %vm9028_vm14, %v3901_v45  ;;  %v2843_v53 = vpop.permute.xlu1 %2842  ;;  %v2851_v42 = vpop.permute.xlu0 %2850  ;;  %vm9044_vm14 = vmmov %vm9030_vm0 }
 0x4d6   :  { %v3903_v28 = vmul.f32 %v4563_v8, %v2843_v53  ;;  %v3905_v25 = vmul.f32 %v4564_v12, %v2851_v42  ;;  %v4579_v53 = vld [vmem:[%s8921_s0 + $0x88] sm:$0xff]  ;;  %v4580_v8 = vld [vmem:[%s8921_s0 + $0xa0] sm:$0xff] }
 0x4d7   :  { %3079 = vbcast.lane.b32.xlu1 %v3033_v32, 344  ;;  %3091 = vbcast.lane.b32.xlu0 %v3033_v32, 368 }
 0x4d8   :  { %4159 = vst.msk [vmem:[%s8926_s5 + $0x10] sm:$0xff] %vm9029_vm15, %v3903_v28  ;;  %vm9045_vm15 = vmmov %vm9030_vm0 }
 0x4d9   :  { %4161 = vst.msk [vmem:[%s8926_s5 + $0x20] sm:$0xff] %vm9030_vm0, %v3905_v25  ;;  %v2847_v40 = vpop.permute.xlu1 %2846  ;;  %v2859_v11 = vpop.permute.xlu0 %2858 }
 0x4da   :  { %v3904_v57 = vmul.f32 %v4565_v16, %v2847_v40  ;;  %v3907_v58 = vmul.f32 %v4566_v21, %v2859_v11  ;;  %v7079_v40 = vrot.slane %v6883_v3, %v3166_v46  ;;  %v4581_v11 = vld [vmem:[%s8921_s0 + $0x98] sm:$0xff] }
 0x4db   :  { %3087 = vbcast.lane.b32.xlu1 %v3033_v32, 360  ;;  %3102 = vbcast.lane.b32.xlu0 %v6948_v22, 256 }
 0x4dc   :  { %4160 = vst.msk [vmem:[%s8926_s5 + $0x18] sm:$0xff] %vm9031_vm12, %v3904_v57  ;;  %v4582_v57 = vld [vmem:[%s8921_s0 + $0xb0] sm:$0xff]  ;;  %vm9046_vm12 = vmmov %vm9030_vm0 }
 0x4dd   :  { %4163 = vst.msk [vmem:[%s8926_s5 + $0x30] sm:$0xff] %vm9032_vm1, %v3907_v58  ;;  %v2855_v6 = vpop.permute.xlu1 %2854  ;;  %v2867_v61 = vpop.permute.xlu0 %2866  ;;  %vm9047_vm1 = vmmov %vm9030_vm0 }
 0x4de   :  { %v3906_v41 = vmul.f32 %v4567_v54, %v2855_v6  ;;  %v3909_v5 = vmul.f32 %v4568_v50, %v2867_v61  ;;  %v4583_v6 = vld [vmem:[%s8921_s0 + $0xa8] sm:$0xff]  ;;  %v4584_v54 = vld [vmem:[%s8921_s0 + $0xc0] sm:$0xff] }
 0x4df   :  { %3095 = vbcast.lane.b32.xlu1 %v3033_v32, 376  ;;  %3110 = vbcast.lane.b32.xlu0 %v6948_v22, 272 }
 0x4e0   :  { %4162 = vst.msk [vmem:[%s8926_s5 + $0x28] sm:$0xff] %vm9033_vm2, %v3906_v41  ;;  %vm9048_vm2 = vmmov %vm9030_vm0 }
 0x4e1   :  { %4165 = vst.msk [vmem:[%s8926_s5 + $0x40] sm:$0xff] %vm9034_vm3, %v3909_v5  ;;  %v2863_v47 = vpop.permute.xlu1 %2862  ;;  %v2875_v56 = vpop.permute.xlu0 %2874  ;;  %vm9049_vm3 = vmmov %vm9030_vm0 }
 0x4e2   :  { %v3908_v35 = vmul.f32 %v4569_v4, %v2863_v47  ;;  %v3911_v39 = vmul.f32 %v4570_v36, %v2875_v56  ;;  %v4585_v47 = vld [vmem:[%s8921_s0 + $0xb8] sm:$0xff] }
 0x4e3   :  { %3106 = vbcast.lane.b32.xlu1 %v6948_v22, 264  ;;  %3118 = vbcast.lane.b32.xlu0 %v6948_v22, 288 }
 0x4e4   :  { %4164 = vst.msk [vmem:[%s8926_s5 + $0x38] sm:$0xff] %vm9035_vm4, %v3908_v35  ;;  %vm9050_vm4 = vmmov %vm9030_vm0 }
 0x4e5   :  { %4167 = vst.msk [vmem:[%s8926_s5 + $0x50] sm:$0xff] %vm9036_vm5, %v3911_v39  ;;  %v2871_v13 = vpop.permute.xlu1 %2870  ;;  %v2883_v51 = vpop.permute.xlu0 %2882  ;;  %vm9051_vm5 = vmmov %vm9030_vm0  ;;  %v4587_v39 = vld [vmem:[%s8921_s0 + $0xc8] sm:$0xff] }
 0x4e6   :  { %v3910_v10 = vmul.f32 %v4571_v23, %v2871_v13  ;;  %v3913_v63 = vmul.f32 %v4572_v2, %v2883_v51  ;;  %v4588_v51 = vld [vmem:[%s8921_s0 + $0xe0] sm:$0xff] }
 0x4e7   :  { %3114 = vbcast.lane.b32.xlu1 %v6948_v22, 280  ;;  %3126 = vbcast.lane.b32.xlu0 %v6948_v22, 304 }
 0x4e8   :  { %4166 = vst.msk [vmem:[%s8926_s5 + $0x48] sm:$0xff] %vm9037_vm6, %v3910_v10  ;;  %vm9052_vm6 = vmmov %vm9030_vm0 }
 0x4e9   :  { %4169 = vst.msk [vmem:[%s8926_s5 + $0x60] sm:$0xff] %vm9038_vm7, %v3913_v63  ;;  %v2879_v24 = vpop.permute.xlu1 %2878  ;;  %v2891_v30 = vpop.permute.xlu0 %2890  ;;  %vm9053_vm7 = vmmov %vm9030_vm0  ;;  %v4589_v63 = vld [vmem:[%s8921_s0 + $0xd8] sm:$0xff] }
 0x4ea   :  { %v3912_v37 = vmul.f32 %v4573_v55, %v2879_v24  ;;  %v3915_v26 = vmul.f32 %v4574_v49, %v2891_v30  ;;  %v4590_v30 = vld [vmem:[%s8921_s0 + $0xf0] sm:$0xff] }
 0x4eb   :  { %3122 = vbcast.lane.b32.xlu1 %v6948_v22, 296  ;;  %3134 = vbcast.lane.b32.xlu0 %v6948_v22, 320 }
 0x4ec   :  { %4168 = vst.msk [vmem:[%s8926_s5 + $0x58] sm:$0xff] %vm9039_vm8, %v3912_v37  ;;  %vm9054_vm8 = vmmov %vm9030_vm0 }
 0x4ed   :  { %4171 = vst.msk [vmem:[%s8926_s5 + $0x70] sm:$0xff] %vm9040_vm9, %v3915_v26  ;;  %v2887_v1 = vpop.permute.xlu1 %2886  ;;  %v2902_v34 = vpop.permute.xlu0 %2901  ;;  %vm9055_vm9 = vmmov %vm9030_vm0  ;;  %v4591_v26 = vld [vmem:[%s8921_s0 + $0xe8] sm:$0xff] }
 0x4ee   :  { %v3914_v17 = vmul.f32 %v4575_v18, %v2887_v1  ;;  %v3917_v29 = vmul.f32 %v4576_v33, %v2902_v34  ;;  %v4592_v34 = vld [vmem:[%s8921_s0 + $0x100] sm:$0xff] }
 0x4ef   :  { %3130 = vbcast.lane.b32.xlu1 %v6948_v22, 312  ;;  %3142 = vbcast.lane.b32.xlu0 %v6948_v22, 336 }
 0x4f0   :  { %4170 = vst.msk [vmem:[%s8926_s5 + $0x68] sm:$0xff] %vm9041_vm11, %v3914_v17  ;;  %vm9056_vm11 = vmmov %vm9030_vm0 }
 0x4f1   :  { %4173 = vst.msk [vmem:[%s8926_s5 + $0x80] sm:$0xff] %vm9042_vm10, %v3917_v29  ;;  %v2895_v27 = vpop.permute.xlu1 %2894  ;;  %v2910_v32 = vpop.permute.xlu0 %2909  ;;  %vm9057_vm10 = vmmov %vm9030_vm0  ;;  %v4593_v29 = vld [vmem:[%s8921_s0 + $0xf8] sm:$0xff] }
 0x4f2   :  { %v3916_v43 = vmul.f32 %v4577_v62, %v2895_v27  ;;  %v3919_v48 = vmul.f32 %v4578_v14, %v2910_v32  ;;  %v4594_v32 = vld [vmem:[%s8921_s0 + $0x110] sm:$0xff] }
 0x4f3   :  { %3138 = vbcast.lane.b32.xlu1 %v6948_v22, 328  ;;  %3150 = vbcast.lane.b32.xlu0 %v6948_v22, 352 }
 0x4f4   :  { %4172 = vst.msk [vmem:[%s8926_s5 + $0x78] sm:$0xff] %vm9043_vm13, %v3916_v43  ;;  %vm9058_vm13 = vmmov %vm9030_vm0 }
 0x4f5   :  { %4175 = vst.msk [vmem:[%s8926_s5 + $0x90] sm:$0xff] %vm9044_vm14, %v3919_v48  ;;  %v2906_v44 = vpop.permute.xlu1 %2905  ;;  %v2918_v45 = vpop.permute.xlu0 %2917  ;;  %vm9059_vm14 = vmmov %vm9030_vm0  ;;  %v4595_v48 = vld [vmem:[%s8921_s0 + $0x108] sm:$0xff] }
 0x4f6   :  { %v3918_v42 = vmul.f32 %v4579_v53, %v2906_v44  ;;  %v3921_v28 = vmul.f32 %v4580_v8, %v2918_v45  ;;  %v4596_v45 = vld [vmem:[%s8921_s0 + $0x120] sm:$0xff] }
 0x4f7   :  { %3146 = vbcast.lane.b32.xlu1 %v6948_v22, 344  ;;  %3158 = vbcast.lane.b32.xlu0 %v6948_v22, 368 }
 0x4f8   :  { %4174 = vst.msk [vmem:[%s8926_s5 + $0x88] sm:$0xff] %vm9045_vm15, %v3918_v42  ;;  %vm9060_vm15 = vmmov %vm9030_vm0 }
 0x4f9   :  { %4177 = vst.msk [vmem:[%s8926_s5 + $0xa0] sm:$0xff] %vm9030_vm0, %v3921_v28  ;;  %v2914_v12 = vpop.permute.xlu1 %2913  ;;  %v2926_v25 = vpop.permute.xlu0 %2925  ;;  %v7212_v28 = vrot.slane %v6883_v3, %v3233_v52 }
 0x4fa   :  { %v3920_v16 = vmul.f32 %v4581_v11, %v2914_v12  ;;  %v3923_v21 = vmul.f32 %v4582_v57, %v2926_v25  ;;  %v4597_v12 = vld [vmem:[%s8921_s0 + $0x118] sm:$0xff]  ;;  %v4598_v11 = vld [vmem:[%s8921_s0 + $0x130] sm:$0xff] }
 0x4fb   :  { %3154 = vbcast.lane.b32.xlu1 %v6948_v22, 360  ;;  %3169 = vbcast.lane.b32.xlu0 %v7079_v40, 256 }
 0x4fc   :  { %4176 = vst.msk [vmem:[%s8926_s5 + $0x98] sm:$0xff] %vm9046_vm12, %v3920_v16  ;;  %vm9061_vm12 = vmmov %vm9030_vm0 }
 0x4fd   :  { %4179 = vst.msk [vmem:[%s8926_s5 + $0xb0] sm:$0xff] %vm9047_vm1, %v3923_v21  ;;  %v2922_v46 = vpop.permute.xlu1 %2921  ;;  %v2934_v58 = vpop.permute.xlu0 %2933  ;;  %vm9062_vm1 = vmmov %vm9030_vm0  ;;  %v4599_v21 = vld [vmem:[%s8921_s0 + $0x128] sm:$0xff] }
 0x4fe   :  { %v3922_v61 = vmul.f32 %v4583_v6, %v2922_v46  ;;  %v3925_v41 = vmul.f32 %v4584_v54, %v2934_v58  ;;  %v4600_v58 = vld [vmem:[%s8921_s0 + $0x140] sm:$0xff] }
 0x4ff   :  { %3162 = vbcast.lane.b32.xlu1 %v6948_v22, 376  ;;  %3177 = vbcast.lane.b32.xlu0 %v7079_v40, 272  ;;  %v4586_v22 = vld [vmem:[%s8921_s0 + $0xd0] sm:$0xff] }
 0x500   :  { %4178 = vst.msk [vmem:[%s8926_s5 + $0xa8] sm:$0xff] %vm9048_vm2, %v3922_v61  ;;  %vm9063_vm2 = vmmov %vm9030_vm0 }
 0x501   :  { %4181 = vst.msk [vmem:[%s8926_s5 + $0xc0] sm:$0xff] %vm9049_vm3, %v3925_v41  ;;  %v2930_v50 = vpop.permute.xlu1 %2929  ;;  %v2942_v5 = vpop.permute.xlu0 %2941  ;;  %vm9064_vm3 = vmmov %vm9030_vm0  ;;  %v4601_v41 = vld [vmem:[%s8921_s0 + $0x138] sm:$0xff] }
 0x502   :  { %v3924_v56 = vmul.f32 %v4585_v47, %v2930_v50  ;;  %v3927_v4 = vmul.f32 %v4586_v22, %v2942_v5  ;;  %v4603_v22 = vld [vmem:[%s8921_s0 + $0x148] sm:$0xff] }
 0x503   :  { %3173 = vbcast.lane.b32.xlu1 %v7079_v40, 264  ;;  %3185 = vbcast.lane.b32.xlu0 %v7079_v40, 288 }
 0x504   :  { %4180 = vst.msk [vmem:[%s8926_s5 + $0xb8] sm:$0xff] %vm9050_vm4, %v3924_v56  ;;  %vm9065_vm4 = vmmov %vm9030_vm0 }
 0x505   :  { %4183 = vst.msk [vmem:[%s8926_s5 + $0xd0] sm:$0xff] %vm9051_vm5, %v3927_v4  ;;  %v2938_v35 = vpop.permute.xlu1 %2937  ;;  %v2950_v36 = vpop.permute.xlu0 %2949  ;;  %vm9066_vm5 = vmmov %vm9030_vm0 }
 0x506   :  { %v3926_v13 = vmul.f32 %v4587_v39, %v2938_v35  ;;  %v3929_v23 = vmul.f32 %v4588_v51, %v2950_v36  ;;  %v4604_v35 = vld [vmem:[%s8921_s0 + $0x160] sm:$0xff]  ;;  %v4605_v51 = vld [vmem:[%s8921_s0 + $0x158] sm:$0xff] }
 0x507   :  { %3181 = vbcast.lane.b32.xlu1 %v7079_v40, 280  ;;  %3193 = vbcast.lane.b32.xlu0 %v7079_v40, 304 }
 0x508   :  { %4182 = vst.msk [vmem:[%s8926_s5 + $0xc8] sm:$0xff] %vm9052_vm6, %v3926_v13  ;;  %vm9067_vm6 = vmmov %vm9030_vm0 }
 0x509   :  { %4185 = vst.msk [vmem:[%s8926_s5 + $0xe0] sm:$0xff] %vm9053_vm7, %v3929_v23  ;;  %v2946_v10 = vpop.permute.xlu1 %2945  ;;  %v2958_v2 = vpop.permute.xlu0 %2957  ;;  %vm9068_vm7 = vmmov %vm9030_vm0 }
 0x50a   :  { %v3928_v24 = vmul.f32 %v4589_v63, %v2946_v10  ;;  %v3931_v55 = vmul.f32 %v4590_v30, %v2958_v2  ;;  %v4606_v10 = vld [vmem:[%s8921_s0 + $0x170] sm:$0xff]  ;;  %v4607_v30 = vld [vmem:[%s8921_s0 + $0x168] sm:$0xff] }
 0x50b   :  { %3189 = vbcast.lane.b32.xlu1 %v7079_v40, 296  ;;  %3201 = vbcast.lane.b32.xlu0 %v7079_v40, 320 }
 0x50c   :  { %4184 = vst.msk [vmem:[%s8926_s5 + $0xd8] sm:$0xff] %vm9054_vm8, %v3928_v24  ;;  %vm9069_vm8 = vmmov %vm9030_vm0 }
 0x50d   :  { %4187 = vst.msk [vmem:[%s8926_s5 + $0xf0] sm:$0xff] %vm9055_vm9, %v3931_v55  ;;  %v2954_v37 = vpop.permute.xlu1 %2953  ;;  %v2969_v49 = vpop.permute.xlu0 %2968  ;;  %vm9070_vm9 = vmmov %vm9030_vm0 }
 0x50e   :  { %v3930_v1 = vmul.f32 %v4591_v26, %v2954_v37  ;;  %v3933_v18 = vmul.f32 %v4592_v34, %v2969_v49  ;;  %v4608_v37 = vld [vmem:[%s8921_s0 + $0x180] sm:$0xff]  ;;  %v4609_v34 = vld [vmem:[%s8921_s0 + $0x178] sm:$0xff] }
 0x50f   :  { %3197 = vbcast.lane.b32.xlu1 %v7079_v40, 312  ;;  %3209 = vbcast.lane.b32.xlu0 %v7079_v40, 336 }
 0x510   :  { %4186 = vst.msk [vmem:[%s8926_s5 + $0xe8] sm:$0xff] %vm9056_vm11, %v3930_v1  ;;  %vm9071_vm11 = vmmov %vm9030_vm0 }
 0x511   :  { %4189 = vst.msk [vmem:[%s8926_s5 + $0x100] sm:$0xff] %vm9057_vm10, %v3933_v18  ;;  %v2962_v17 = vpop.permute.xlu1 %2961  ;;  %v2977_v33 = vpop.permute.xlu0 %2976  ;;  %vm9072_vm10 = vmmov %vm9030_vm0 }
 0x512   :  { %v3932_v27 = vmul.f32 %v4593_v29, %v2962_v17  ;;  %v3935_v62 = vmul.f32 %v4594_v32, %v2977_v33  ;;  %v4610_v17 = vld [vmem:[%s8921_s0 + $0x190] sm:$0xff]  ;;  %v4611_v32 = vld [vmem:[%s8921_s0 + $0x188] sm:$0xff] }
 0x513   :  { %3205 = vbcast.lane.b32.xlu1 %v7079_v40, 328  ;;  %3217 = vbcast.lane.b32.xlu0 %v7079_v40, 352 }
 0x514   :  { %4188 = vst.msk [vmem:[%s8926_s5 + $0xf8] sm:$0xff] %vm9058_vm13, %v3932_v27  ;;  %vm9073_vm13 = vmmov %vm9030_vm0 }
 0x515   :  { %4191 = vst.msk [vmem:[%s8926_s5 + $0x110] sm:$0xff] %vm9059_vm14, %v3935_v62  ;;  %v2973_v43 = vpop.permute.xlu1 %2972  ;;  %v2985_v14 = vpop.permute.xlu0 %2984  ;;  %vm9074_vm14 = vmmov %vm9030_vm0 }
 0x516   :  { %v3934_v44 = vmul.f32 %v4595_v48, %v2973_v43  ;;  %v3937_v53 = vmul.f32 %v4596_v45, %v2985_v14  ;;  %v4612_v43 = vld [vmem:[%s8921_s0 + $0x1a0] sm:$0xff]  ;;  %v7345_v45 = vrot.slane %v6883_v3, %v3300_v7  ;;  %v4615_v3 = vld [vmem:[%s8921_s0 + $0x1a8] sm:$0xff] }
 0x517   :  { %3213 = vbcast.lane.b32.xlu1 %v7079_v40, 344  ;;  %3225 = vbcast.lane.b32.xlu0 %v7079_v40, 368 }
 0x518   :  { %4190 = vst.msk [vmem:[%s8926_s5 + $0x108] sm:$0xff] %vm9060_vm15, %v3934_v44  ;;  %vm9075_vm15 = vmmov %vm9030_vm0 }
 0x519   :  { %4193 = vst.msk [vmem:[%s8926_s5 + $0x120] sm:$0xff] %vm9030_vm0, %v3937_v53  ;;  %v2981_v42 = vpop.permute.xlu1 %2980  ;;  %v2993_v8 = vpop.permute.xlu0 %2992  ;;  %v4613_v53 = vld [vmem:[%s8921_s0 + $0x198] sm:$0xff] }
 0x51a   :  { %v3936_v25 = vmul.f32 %v4597_v12, %v2981_v42  ;;  %v3939_v16 = vmul.f32 %v4598_v11, %v2993_v8  ;;  %v4614_v8 = vld [vmem:[%s8921_s0 + $0x1b0] sm:$0xff]  ;;  %v4616_v11 = vld [vmem:[%s8921_s0 + $0x1c0] sm:$0xff] }
 0x51b   :  { %3221 = vbcast.lane.b32.xlu1 %v7079_v40, 360  ;;  %3236 = vbcast.lane.b32.xlu0 %v7212_v28, 256 }
 0x51c   :  { %4192 = vst.msk [vmem:[%s8926_s5 + $0x118] sm:$0xff] %vm9061_vm12, %v3936_v25  ;;  %vm9076_vm12 = vmmov %vm9030_vm0 }
 0x51d   :  { %4195 = vst.msk [vmem:[%s8926_s5 + $0x130] sm:$0xff] %vm9062_vm1, %v3939_v16  ;;  %v2989_v52 = vpop.permute.xlu1 %2988  ;;  %v3001_v57 = vpop.permute.xlu0 %3000  ;;  %vm9077_vm1 = vmmov %vm9030_vm0 }
 0x51e   :  { %v3938_v46 = vmul.f32 %v4599_v21, %v2989_v52  ;;  %v3941_v6 = vmul.f32 %v4600_v58, %v3001_v57  ;;  %v4617_v21 = vld [vmem:[%s8921_s0 + $0x1b8] sm:$0xff] }
 0x51f   :  { %3229 = vbcast.lane.b32.xlu1 %v7079_v40, 376  ;;  %3244 = vbcast.lane.b32.xlu0 %v7212_v28, 272  ;;  %v4602_v40 = vld [vmem:[%s8921_s0 + $0x150] sm:$0xff] }
 0x520   :  { %4194 = vst.msk [vmem:[%s8926_s5 + $0x128] sm:$0xff] %vm9063_vm2, %v3938_v46  ;;  %vm9078_vm2 = vmmov %vm9030_vm0 }
 0x521   :  { %4197 = vst.msk [vmem:[%s8926_s5 + $0x140] sm:$0xff] %vm9064_vm3, %v3941_v6  ;;  %v2997_v61 = vpop.permute.xlu1 %2996  ;;  %v3009_v54 = vpop.permute.xlu0 %3008  ;;  %vm9079_vm3 = vmmov %vm9030_vm0 }
 0x522   :  { %v3940_v50 = vmul.f32 %v4601_v41, %v2997_v61  ;;  %v3943_v5 = vmul.f32 %v4602_v40, %v3009_v54  ;;  %v4619_v54 = vld [vmem:[%s8921_s0 + $0x1c8] sm:$0xff] }
 0x523   :  { %3240 = vbcast.lane.b32.xlu1 %v7212_v28, 264  ;;  %3252 = vbcast.lane.b32.xlu0 %v7212_v28, 288 }
 0x524   :  { %4196 = vst.msk [vmem:[%s8926_s5 + $0x138] sm:$0xff] %vm9065_vm4, %v3940_v50  ;;  %vm9080_vm4 = vmmov %vm9030_vm0  ;;  %v4620_v50 = vld [vmem:[%s8921_s0 + $0x1e0] sm:$0xff] }
 0x525   :  { %4199 = vst.msk [vmem:[%s8926_s5 + $0x150] sm:$0xff] %vm9066_vm5, %v3943_v5  ;;  %v3005_v47 = vpop.permute.xlu1 %3004  ;;  %v3017_v56 = vpop.permute.xlu0 %3016  ;;  %vm9081_vm5 = vmmov %vm9030_vm0 }
 0x526   :  { %v3942_v4 = vmul.f32 %v4603_v22, %v3005_v47  ;;  %v3945_v36 = vmul.f32 %v4604_v35, %v3017_v56  ;;  %v4621_v56 = vld [vmem:[%s8921_s0 + $0x1d8] sm:$0xff] }
 0x527   :  { %3248 = vbcast.lane.b32.xlu1 %v7212_v28, 280  ;;  %3260 = vbcast.lane.b32.xlu0 %v7212_v28, 304 }
 0x528   :  { %4198 = vst.msk [vmem:[%s8926_s5 + $0x148] sm:$0xff] %vm9067_vm6, %v3942_v4  ;;  %vm9082_vm6 = vmmov %vm9030_vm0  ;;  %v4622_v4 = vld [vmem:[%s8921_s0 + $0x1f0] sm:$0xff] }
 0x529   :  { %4201 = vst.msk [vmem:[%s8926_s5 + $0x160] sm:$0xff] %vm9068_vm7, %v3945_v36  ;;  %v3013_v39 = vpop.permute.xlu1 %3012  ;;  %v3025_v13 = vpop.permute.xlu0 %3024  ;;  %vm9083_vm7 = vmmov %vm9030_vm0 }
 0x52a   :  { %v3944_v23 = vmul.f32 %v4605_v51, %v3013_v39  ;;  %v3947_v2 = vmul.f32 %v4606_v10, %v3025_v13  ;;  %v4623_v13 = vld [vmem:[%s8921_s0 + $0x1e8] sm:$0xff] }
 0x52b   :  { %3256 = vbcast.lane.b32.xlu1 %v7212_v28, 296  ;;  %3268 = vbcast.lane.b32.xlu0 %v7212_v28, 320 }
 0x52c   :  { %4200 = vst.msk [vmem:[%s8926_s5 + $0x158] sm:$0xff] %vm9069_vm8, %v3944_v23  ;;  %vm9084_vm8 = vmmov %vm9030_vm0  ;;  %v4624_v23 = vld [vmem:[%s8921_s0 + $0x200] sm:$0xff] }
 0x52d   :  { %4203 = vst.msk [vmem:[%s8926_s5 + $0x170] sm:$0xff] %vm9070_vm9, %v3947_v2  ;;  %v3021_v63 = vpop.permute.xlu1 %3020  ;;  %v3036_v24 = vpop.permute.xlu0 %3035  ;;  %vm9085_vm9 = vmmov %vm9030_vm0 }
 0x52e   :  { %v3946_v55 = vmul.f32 %v4607_v30, %v3021_v63  ;;  %v3949_v49 = vmul.f32 %v4608_v37, %v3036_v24  ;;  %v4625_v24 = vld [vmem:[%s8921_s0 + $0x1f8] sm:$0xff] }
 0x52f   :  { %3264 = vbcast.lane.b32.xlu1 %v7212_v28, 312  ;;  %3276 = vbcast.lane.b32.xlu0 %v7212_v28, 336 }
 0x530   :  { %4202 = vst.msk [vmem:[%s8926_s5 + $0x168] sm:$0xff] %vm9071_vm11, %v3946_v55  ;;  %vm9086_vm11 = vmmov %vm9030_vm0  ;;  %v4626_v55 = vld [vmem:[%s8921_s0 + $0x210] sm:$0xff] }
 0x531   :  { %4205 = vst.msk [vmem:[%s8926_s5 + $0x180] sm:$0xff] %vm9072_vm10, %v3949_v49  ;;  %v3029_v26 = vpop.permute.xlu1 %3028  ;;  %v3044_v1 = vpop.permute.xlu0 %3043  ;;  %vm9087_vm10 = vmmov %vm9030_vm0 }
 0x532   :  { %v3948_v18 = vmul.f32 %v4609_v34, %v3029_v26  ;;  %v3951_v33 = vmul.f32 %v4610_v17, %v3044_v1  ;;  %v4627_v1 = vld [vmem:[%s8921_s0 + $0x208] sm:$0xff] }
 0x533   :  { %3272 = vbcast.lane.b32.xlu1 %v7212_v28, 328  ;;  %3284 = vbcast.lane.b32.xlu0 %v7212_v28, 352 }
 0x534   :  { %4204 = vst.msk [vmem:[%s8926_s5 + $0x178] sm:$0xff] %vm9073_vm13, %v3948_v18  ;;  %vm9088_vm13 = vmmov %vm9030_vm0  ;;  %v4628_v18 = vld [vmem:[%s8921_s0 + $0x220] sm:$0xff] }
 0x535   :  { %4207 = vst.msk [vmem:[%s8926_s5 + $0x190] sm:$0xff] %vm9074_vm14, %v3951_v33  ;;  %v3040_v29 = vpop.permute.xlu1 %3039  ;;  %v3052_v27 = vpop.permute.xlu0 %3051  ;;  %vm9089_vm14 = vmmov %vm9030_vm0 }
 0x536   :  { %v3950_v62 = vmul.f32 %v4611_v32, %v3040_v29  ;;  %v3953_v14 = vmul.f32 %v4612_v43, %v3052_v27  ;;  %v4629_v27 = vld [vmem:[%s8921_s0 + $0x218] sm:$0xff] }
 0x537   :  { %3280 = vbcast.lane.b32.xlu1 %v7212_v28, 344  ;;  %3292 = vbcast.lane.b32.xlu0 %v7212_v28, 368 }
 0x538   :  { %4206 = vst.msk [vmem:[%s8926_s5 + $0x188] sm:$0xff] %vm9075_vm15, %v3950_v62  ;;  %vm9090_vm15 = vmmov %vm9030_vm0  ;;  %v4630_v62 = vld [vmem:[%s8921_s0 + $0x230] sm:$0xff] }
 0x539   :  { %4209 = vst.msk [vmem:[%s8926_s5 + $0x1a0] sm:$0xff] %vm9030_vm0, %v3953_v14  ;;  %v3048_v48 = vpop.permute.xlu1 %3047  ;;  %v3060_v44 = vpop.permute.xlu0 %3059 }
 0x53a   :  { %v3952_v42 = vmul.f32 %v4613_v53, %v3048_v48  ;;  %v3955_v12 = vmul.f32 %v4614_v8, %v3060_v44  ;;  %v4631_v44 = vld [vmem:[%s8921_s0 + $0x228] sm:$0xff] }
 0x53b   :  { %3288 = vbcast.lane.b32.xlu1 %v7212_v28, 360  ;;  %3303 = vbcast.lane.b32.xlu0 %v7345_v45, 256 }
 0x53c   :  { %4208 = vst.msk [vmem:[%s8926_s5 + $0x198] sm:$0xff] %vm9076_vm12, %v3952_v42  ;;  %vm9091_vm12 = vmmov %vm9030_vm0  ;;  %v4632_v42 = vld [vmem:[%s8921_s0 + $0x240] sm:$0xff] }
 0x53d   :  { %4211 = vst.msk [vmem:[%s8926_s5 + $0x1b0] sm:$0xff] %vm9077_vm1, %v3955_v12  ;;  %v3056_v60 = vpop.permute.xlu1 %3055  ;;  %v3068_v7 = vpop.permute.xlu0 %3067  ;;  %vm9092_vm1 = vmmov %vm9030_vm0 }
 0x53e   :  { %v3954_v25 = vmul.f32 %v4615_v3, %v3056_v60  ;;  %v3957_v16 = vmul.f32 %v4616_v11, %v3068_v7  ;;  %v4633_v7 = vld [vmem:[%s8921_s0 + $0x238] sm:$0xff] }
 0x53f   :  { %3296 = vbcast.lane.b32.xlu1 %v7212_v28, 376  ;;  %3311 = vbcast.lane.b32.xlu0 %v7345_v45, 272  ;;  %v4618_v28 = vld [vmem:[%s8921_s0 + $0x1d0] sm:$0xff] }
 0x540   :  { %4210 = vst.msk [vmem:[%s8926_s5 + $0x1a8] sm:$0xff] %vm9078_vm2, %v3954_v25  ;;  %vm9093_vm2 = vmmov %vm9030_vm0 }
 0x541   :  { %4213 = vst.msk [vmem:[%s8926_s5 + $0x1c0] sm:$0xff] %vm9079_vm3, %v3957_v16  ;;  %v3064_v52 = vpop.permute.xlu1 %3063  ;;  %v3076_v57 = vpop.permute.xlu0 %3075  ;;  %vm9094_vm3 = vmmov %vm9030_vm0 }
 0x542   :  { %v3956_v46 = vmul.f32 %v4617_v21, %v3064_v52  ;;  %v3959_v58 = vmul.f32 %v4618_v28, %v3076_v57  ;;  %v4635_v52 = vld [vmem:[%s8921_s0 + $0x248] sm:$0xff]  ;;  %v4636_v21 = vld [vmem:[%s8921_s0 + $0x260] sm:$0xff] }
 0x543   :  { %3307 = vbcast.lane.b32.xlu1 %v7345_v45, 264  ;;  %3319 = vbcast.lane.b32.xlu0 %v7345_v45, 288 }
 0x544   :  { %4212 = vst.msk [vmem:[%s8926_s5 + $0x1b8] sm:$0xff] %vm9080_vm4, %v3956_v46  ;;  %vm9095_vm4 = vmmov %vm9030_vm0 }
 0x545   :  { %4215 = vst.msk [vmem:[%s8926_s5 + $0x1d0] sm:$0xff] %vm9081_vm5, %v3959_v58  ;;  %v3072_v6 = vpop.permute.xlu1 %3071  ;;  %v3084_v61 = vpop.permute.xlu0 %3083  ;;  %vm9096_vm5 = vmmov %vm9030_vm0 }
 0x546   :  { %v3958_v41 = vmul.f32 %v4619_v54, %v3072_v6  ;;  %v3961_v40 = vmul.f32 %v4620_v50, %v3084_v61  ;;  %v4637_v6 = vld [vmem:[%s8921_s0 + $0x258] sm:$0xff]  ;;  %v4638_v54 = vld [vmem:[%s8921_s0 + $0x270] sm:$0xff] }
 0x547   :  { %3315 = vbcast.lane.b32.xlu1 %v7345_v45, 280  ;;  %3327 = vbcast.lane.b32.xlu0 %v7345_v45, 304 }
 0x548   :  { %4214 = vst.msk [vmem:[%s8926_s5 + $0x1c8] sm:$0xff] %vm9082_vm6, %v3958_v41  ;;  %vm9097_vm6 = vmmov %vm9030_vm0 }
 0x549   :  { %4217 = vst.msk [vmem:[%s8926_s5 + $0x1e0] sm:$0xff] %vm9083_vm7, %v3961_v40  ;;  %v3080_v5 = vpop.permute.xlu1 %3079  ;;  %v3092_v47 = vpop.permute.xlu0 %3091  ;;  %vm9098_vm7 = vmmov %vm9030_vm0 }
 0x54a   :  { %v3960_v22 = vmul.f32 %v4621_v56, %v3080_v5  ;;  %v3963_v35 = vmul.f32 %v4622_v4, %v3092_v47  ;;  %v4639_v5 = vld [vmem:[%s8921_s0 + $0x268] sm:$0xff]  ;;  %v4640_v56 = vld [vmem:[%s8921_s0 + $0x280] sm:$0xff] }
 0x54b   :  { %3323 = vbcast.lane.b32.xlu1 %v7345_v45, 296  ;;  %3335 = vbcast.lane.b32.xlu0 %v7345_v45, 320 }
 0x54c   :  { %4216 = vst.msk [vmem:[%s8926_s5 + $0x1d8] sm:$0xff] %vm9084_vm8, %v3960_v22  ;;  %vm9099_vm8 = vmmov %vm9030_vm0 }
 0x54d   :  { %4219 = vst.msk [vmem:[%s8926_s5 + $0x1f0] sm:$0xff] %vm9085_vm9, %v3963_v35  ;;  %v3088_v36 = vpop.permute.xlu1 %3087  ;;  %v3103_v39 = vpop.permute.xlu0 %3102  ;;  %vm9100_vm9 = vmmov %vm9030_vm0 }
 0x54e   :  { %v3962_v51 = vmul.f32 %v4623_v13, %v3088_v36  ;;  %v3965_v10 = vmul.f32 %v4624_v23, %v3103_v39  ;;  %v4641_v36 = vld [vmem:[%s8921_s0 + $0x278] sm:$0xff]  ;;  %v4642_v13 = vld [vmem:[%s8921_s0 + $0x290] sm:$0xff] }
 0x54f   :  { %3331 = vbcast.lane.b32.xlu1 %v7345_v45, 312  ;;  %3343 = vbcast.lane.b32.xlu0 %v7345_v45, 336 }
 0x550   :  { %4218 = vst.msk [vmem:[%s8926_s5 + $0x1e8] sm:$0xff] %vm9086_vm11, %v3962_v51  ;;  %vm9101_vm11 = vmmov %vm9030_vm0 }
 0x551   :  { %4221 = vst.msk [vmem:[%s8926_s5 + $0x200] sm:$0xff] %vm9087_vm10, %v3965_v10  ;;  %v3096_v2 = vpop.permute.xlu1 %3095  ;;  %v3111_v63 = vpop.permute.xlu0 %3110  ;;  %vm9102_vm10 = vmmov %vm9030_vm0 }
 0x552   :  { %v3964_v30 = vmul.f32 %v4625_v24, %v3096_v2  ;;  %v3967_v37 = vmul.f32 %v4626_v55, %v3111_v63  ;;  %v4643_v2 = vld [vmem:[%s8921_s0 + $0x288] sm:$0xff]  ;;  %v4644_v24 = vld [vmem:[%s8921_s0 + $0x2a0] sm:$0xff] }
 0x553   :  { %3339 = vbcast.lane.b32.xlu1 %v7345_v45, 328  ;;  %3351 = vbcast.lane.b32.xlu0 %v7345_v45, 352 }
 0x554   :  { %4220 = vst.msk [vmem:[%s8926_s5 + $0x1f8] sm:$0xff] %vm9088_vm13, %v3964_v30  ;;  %vm9103_vm13 = vmmov %vm9030_vm0 }
 0x555   :  { %4223 = vst.msk [vmem:[%s8926_s5 + $0x210] sm:$0xff] %vm9089_vm14, %v3967_v37  ;;  %v3107_v49 = vpop.permute.xlu1 %3106  ;;  %v3119_v26 = vpop.permute.xlu0 %3118  ;;  %vm9104_vm14 = vmmov %vm9030_vm0 }
 0x556   :  { %v3966_v34 = vmul.f32 %v4627_v1, %v3107_v49  ;;  %v3969_v17 = vmul.f32 %v4628_v18, %v3119_v26  ;;  %v4645_v49 = vld [vmem:[%s8921_s0 + $0x298] sm:$0xff]  ;;  %v4646_v1 = vld [vmem:[%s8921_s0 + $0x2b0] sm:$0xff] }
 0x557   :  { %3347 = vbcast.lane.b32.xlu1 %v7345_v45, 344  ;;  %3359 = vbcast.lane.b32.xlu0 %v7345_v45, 368 }
 0x558   :  { %4222 = vst.msk [vmem:[%s8926_s5 + $0x208] sm:$0xff] %vm9090_vm15, %v3966_v34  ;;  %vm9105_vm15 = vmmov %vm9030_vm0 }
 0x559   :  { %4225 = vst.msk [vmem:[%s8926_s5 + $0x220] sm:$0xff] %vm9030_vm0, %v3969_v17  ;;  %v3115_v33 = vpop.permute.xlu1 %3114  ;;  %v3127_v29 = vpop.permute.xlu0 %3126 }
 0x55a   :  { %v3968_v32 = vmul.f32 %v4629_v27, %v3115_v33  ;;  %v3971_v43 = vmul.f32 %v4630_v62, %v3127_v29  ;;  %v4647_v33 = vld [vmem:[%s8921_s0 + $0x2a8] sm:$0xff]  ;;  %v4648_v27 = vld [vmem:[%s8921_s0 + $0x2c0] sm:$0xff] }
 0x55b   :  { %3355 = vbcast.lane.b32.xlu1 %v7345_v45, 360  ;;  %3370 = vbcast.lane.b32.xlu0 %v6885_v38, 256 }
 0x55c   :  { %4224 = vst.msk [vmem:[%s8926_s5 + $0x218] sm:$0xff] %vm9091_vm12, %v3968_v32  ;;  %vm9106_vm12 = vmmov %vm9030_vm0 }
 0x55d   :  { %4227 = vst.msk [vmem:[%s8926_s5 + $0x230] sm:$0xff] %vm9092_vm1, %v3971_v43  ;;  %v3123_v14 = vpop.permute.xlu1 %3122  ;;  %v3135_v48 = vpop.permute.xlu0 %3134  ;;  %vm9107_vm1 = vmmov %vm9030_vm0 }
 0x55e   :  { %v3970_v53 = vmul.f32 %v4631_v44, %v3123_v14  ;;  %v3973_v8 = vmul.f32 %v4632_v42, %v3135_v48  ;;  %v4649_v14 = vld [vmem:[%s8921_s0 + $0x2b8] sm:$0xff] }
 0x55f   :  { %3363 = vbcast.lane.b32.xlu1 %v7345_v45, 376  ;;  %3378 = vbcast.lane.b32.xlu0 %v6885_v38, 272  ;;  %v4634_v45 = vld [vmem:[%s8921_s0 + $0x250] sm:$0xff] }
 0x560   :  { %4226 = vst.msk [vmem:[%s8926_s5 + $0x228] sm:$0xff] %vm9093_vm2, %v3970_v53  ;;  %vm9108_vm2 = vmmov %vm9030_vm0 }
 0x561   :  { %4229 = vst.msk [vmem:[%s8926_s5 + $0x240] sm:$0xff] %vm9094_vm3, %v3973_v8  ;;  %v3131_v12 = vpop.permute.xlu1 %3130  ;;  %v3143_v60 = vpop.permute.xlu0 %3142  ;;  %vm9109_vm3 = vmmov %vm9030_vm0  ;;  %v4651_v8 = vld [vmem:[%s8921_s0 + $0x2c8] sm:$0xff] }
 0x562   :  { %v3972_v3 = vmul.f32 %v4633_v7, %v3131_v12  ;;  %v3975_v25 = vmul.f32 %v4634_v45, %v3143_v60  ;;  %v4652_v60 = vld [vmem:[%s8921_s0 + $0x2e0] sm:$0xff] }
 0x563   :  { %3374 = vbcast.lane.b32.xlu1 %v6885_v38, 264  ;;  %3386 = vbcast.lane.b32.xlu0 %v6885_v38, 288 }
 0x564   :  { %4228 = vst.msk [vmem:[%s8926_s5 + $0x238] sm:$0xff] %vm9095_vm4, %v3972_v3  ;;  %vm9110_vm4 = vmmov %vm9030_vm0 }
 0x565   :  { %4231 = vst.msk [vmem:[%s8926_s5 + $0x250] sm:$0xff] %vm9096_vm5, %v3975_v25  ;;  %v3139_v11 = vpop.permute.xlu1 %3138  ;;  %v3151_v16 = vpop.permute.xlu0 %3150  ;;  %vm9111_vm5 = vmmov %vm9030_vm0  ;;  %v4653_v25 = vld [vmem:[%s8921_s0 + $0x2d8] sm:$0xff] }
 0x566   :  { %v3974_v57 = vmul.f32 %v4635_v52, %v3139_v11  ;;  %v3977_v46 = vmul.f32 %v4636_v21, %v3151_v16  ;;  %v4654_v16 = vld [vmem:[%s8921_s0 + $0x2f0] sm:$0xff] }
 0x567   :  { %3382 = vbcast.lane.b32.xlu1 %v6885_v38, 280  ;;  %3394 = vbcast.lane.b32.xlu0 %v6885_v38, 304 }
 0x568   :  { %4230 = vst.msk [vmem:[%s8926_s5 + $0x248] sm:$0xff] %vm9097_vm6, %v3974_v57  ;;  %vm9112_vm6 = vmmov %vm9030_vm0 }
 0x569   :  { %4233 = vst.msk [vmem:[%s8926_s5 + $0x260] sm:$0xff] %vm9098_vm7, %v3977_v46  ;;  %v3147_v28 = vpop.permute.xlu1 %3146  ;;  %v3159_v58 = vpop.permute.xlu0 %3158  ;;  %vm9113_vm7 = vmmov %vm9030_vm0  ;;  %v4655_v46 = vld [vmem:[%s8921_s0 + $0x2e8] sm:$0xff] }
 0x56a   :  { %v3976_v61 = vmul.f32 %v4637_v6, %v3147_v28  ;;  %v3979_v41 = vmul.f32 %v4638_v54, %v3159_v58  ;;  %v4656_v58 = vld [vmem:[%s8921_s0 + $0x300] sm:$0xff] }
 0x56b   :  { %3390 = vbcast.lane.b32.xlu1 %v6885_v38, 296  ;;  %3402 = vbcast.lane.b32.xlu0 %v6885_v38, 320 }
 0x56c   :  { %4232 = vst.msk [vmem:[%s8926_s5 + $0x258] sm:$0xff] %vm9099_vm8, %v3976_v61  ;;  %vm9114_vm8 = vmmov %vm9030_vm0 }
 0x56d   :  { %4235 = vst.msk [vmem:[%s8926_s5 + $0x270] sm:$0xff] %vm9100_vm9, %v3979_v41  ;;  %v3155_v50 = vpop.permute.xlu1 %3154  ;;  %v3170_v40 = vpop.permute.xlu0 %3169  ;;  %vm9115_vm9 = vmmov %vm9030_vm0  ;;  %v4657_v41 = vld [vmem:[%s8921_s0 + $0x2f8] sm:$0xff] }
 0x56e   :  { %v3978_v47 = vmul.f32 %v4639_v5, %v3155_v50  ;;  %v3981_v22 = vmul.f32 %v4640_v56, %v3170_v40  ;;  %v4658_v40 = vld [vmem:[%s8921_s0 + $0x310] sm:$0xff] }
 0x56f   :  { %3398 = vbcast.lane.b32.xlu1 %v6885_v38, 312  ;;  %3410 = vbcast.lane.b32.xlu0 %v6885_v38, 336 }
 0x570   :  { %4234 = vst.msk [vmem:[%s8926_s5 + $0x268] sm:$0xff] %vm9101_vm11, %v3978_v47  ;;  %vm9116_vm11 = vmmov %vm9030_vm0 }
 0x571   :  { %4237 = vst.msk [vmem:[%s8926_s5 + $0x280] sm:$0xff] %vm9102_vm10, %v3981_v22  ;;  %v3163_v4 = vpop.permute.xlu1 %3162  ;;  %v3178_v35 = vpop.permute.xlu0 %3177  ;;  %vm9117_vm10 = vmmov %vm9030_vm0  ;;  %v4659_v22 = vld [vmem:[%s8921_s0 + $0x308] sm:$0xff] }
 0x572   :  { %v3980_v39 = vmul.f32 %v4641_v36, %v3163_v4  ;;  %v3983_v51 = vmul.f32 %v4642_v13, %v3178_v35  ;;  %v4660_v35 = vld [vmem:[%s8921_s0 + $0x320] sm:$0xff] }
 0x573   :  { %3406 = vbcast.lane.b32.xlu1 %v6885_v38, 328  ;;  %3418 = vbcast.lane.b32.xlu0 %v6885_v38, 352 }
 0x574   :  { %4236 = vst.msk [vmem:[%s8926_s5 + $0x278] sm:$0xff] %vm9103_vm13, %v3980_v39  ;;  %vm9118_vm13 = vmmov %vm9030_vm0 }
 0x575   :  { %4239 = vst.msk [vmem:[%s8926_s5 + $0x290] sm:$0xff] %vm9104_vm14, %v3983_v51  ;;  %v3174_v23 = vpop.permute.xlu1 %3173  ;;  %v3186_v10 = vpop.permute.xlu0 %3185  ;;  %vm9119_vm14 = vmmov %vm9030_vm0  ;;  %v4661_v51 = vld [vmem:[%s8921_s0 + $0x318] sm:$0xff] }
 0x576   :  { %v3982_v63 = vmul.f32 %v4643_v2, %v3174_v23  ;;  %v3985_v30 = vmul.f32 %v4644_v24, %v3186_v10  ;;  %v4662_v10 = vld [vmem:[%s8921_s0 + $0x330] sm:$0xff] }
 0x577   :  { %3414 = vbcast.lane.b32.xlu1 %v6885_v38, 344  ;;  %3426 = vbcast.lane.b32.xlu0 %v6885_v38, 368 }
 0x578   :  { %4238 = vst.msk [vmem:[%s8926_s5 + $0x288] sm:$0xff] %vm9105_vm15, %v3982_v63  ;;  %vm9120_vm15 = vmmov %vm9030_vm0 }
 0x579   :  { %4241 = vst.msk [vmem:[%s8926_s5 + $0x2a0] sm:$0xff] %vm9030_vm0, %v3985_v30  ;;  %v3182_v55 = vpop.permute.xlu1 %3181  ;;  %v3194_v37 = vpop.permute.xlu0 %3193  ;;  %v4663_v30 = vld [vmem:[%s8921_s0 + $0x328] sm:$0xff] }
 0x57a   :  { %v3984_v26 = vmul.f32 %v4645_v49, %v3182_v55  ;;  %v3987_v34 = vmul.f32 %v4646_v1, %v3194_v37  ;;  %v4664_v37 = vld [vmem:[%s8921_s0 + $0x340] sm:$0xff] }
 0x57b   :  { %3422 = vbcast.lane.b32.xlu1 %v6885_v38, 360  ;;  %3437 = vbcast.lane.b32.xlu0 %v6887_v19, 256 }
 0x57c   :  { %4240 = vst.msk [vmem:[%s8926_s5 + $0x298] sm:$0xff] %vm9106_vm12, %v3984_v26  ;;  %vm9121_vm12 = vmmov %vm9030_vm0 }
 0x57d   :  { %4243 = vst.msk [vmem:[%s8926_s5 + $0x2b0] sm:$0xff] %vm9107_vm1, %v3987_v34  ;;  %v3190_v18 = vpop.permute.xlu1 %3189  ;;  %v3202_v17 = vpop.permute.xlu0 %3201  ;;  %vm9122_vm1 = vmmov %vm9030_vm0  ;;  %v4665_v34 = vld [vmem:[%s8921_s0 + $0x338] sm:$0xff] }
 0x57e   :  { %v3986_v29 = vmul.f32 %v4647_v33, %v3190_v18  ;;  %v3989_v32 = vmul.f32 %v4648_v27, %v3202_v17  ;;  %v4667_v27 = vld [vmem:[%s8921_s0 + $0x348] sm:$0xff] }
 0x57f   :  { %3430 = vbcast.lane.b32.xlu1 %v6885_v38, 376  ;;  %3445 = vbcast.lane.b32.xlu0 %v6887_v19, 272  ;;  %v4650_v38 = vld [vmem:[%s8921_s0 + $0x2d0] sm:$0xff] }
 0x580   :  { %4242 = vst.msk [vmem:[%s8926_s5 + $0x2a8] sm:$0xff] %vm9108_vm2, %v3986_v29  ;;  %vm9123_vm2 = vmmov %vm9030_vm0 }
 0x581   :  { %4245 = vst.msk [vmem:[%s8926_s5 + $0x2c0] sm:$0xff] %vm9109_vm3, %v3989_v32  ;;  %v3198_v62 = vpop.permute.xlu1 %3197  ;;  %v3210_v43 = vpop.permute.xlu0 %3209  ;;  %vm9124_vm3 = vmmov %vm9030_vm0 }
 0x582   :  { %v3988_v48 = vmul.f32 %v4649_v14, %v3198_v62  ;;  %v3991_v44 = vmul.f32 %v4650_v38, %v3210_v43  ;;  %v4668_v62 = vld [vmem:[%s8921_s0 + $0x360] sm:$0xff]  ;;  %v4669_v38 = vld [vmem:[%s8921_s0 + $0x358] sm:$0xff] }
 0x583   :  { %3441 = vbcast.lane.b32.xlu1 %v6887_v19, 264  ;;  %3453 = vbcast.lane.b32.xlu0 %v6887_v19, 288 }
 0x584   :  { %4244 = vst.msk [vmem:[%s8926_s5 + $0x2b8] sm:$0xff] %vm9110_vm4, %v3988_v48  ;;  %vm9125_vm4 = vmmov %vm9030_vm0 }
 0x585   :  { %4247 = vst.msk [vmem:[%s8926_s5 + $0x2d0] sm:$0xff] %vm9111_vm5, %v3991_v44  ;;  %v3206_v53 = vpop.permute.xlu1 %3205  ;;  %v3218_v42 = vpop.permute.xlu0 %3217  ;;  %vm9126_vm5 = vmmov %vm9030_vm0 }
 0x586   :  { %v3990_v12 = vmul.f32 %v4651_v8, %v3206_v53  ;;  %v3993_v7 = vmul.f32 %v4652_v60, %v3218_v42  ;;  %v4670_v53 = vld [vmem:[%s8921_s0 + $0x370] sm:$0xff]  ;;  %v4671_v60 = vld [vmem:[%s8921_s0 + $0x368] sm:$0xff] }
 0x587   :  { %3449 = vbcast.lane.b32.xlu1 %v6887_v19, 280  ;;  %3461 = vbcast.lane.b32.xlu0 %v6887_v19, 304 }
 0x588   :  { %4246 = vst.msk [vmem:[%s8926_s5 + $0x2c8] sm:$0xff] %vm9112_vm6, %v3990_v12  ;;  %vm9127_vm6 = vmmov %vm9030_vm0 }
 0x589   :  { %4249 = vst.msk [vmem:[%s8926_s5 + $0x2e0] sm:$0xff] %vm9113_vm7, %v3993_v7  ;;  %v3214_v3 = vpop.permute.xlu1 %3213  ;;  %v3226_v45 = vpop.permute.xlu0 %3225  ;;  %vm9128_vm7 = vmmov %vm9030_vm0 }
 0x58a   :  { %v3992_v11 = vmul.f32 %v4653_v25, %v3214_v3  ;;  %v3995_v52 = vmul.f32 %v4654_v16, %v3226_v45  ;;  %v4672_v3 = vld [vmem:[%s8921_s0 + $0x380] sm:$0xff]  ;;  %v4673_v16 = vld [vmem:[%s8921_s0 + $0x378] sm:$0xff] }
 0x58b   :  { %3457 = vbcast.lane.b32.xlu1 %v6887_v19, 296  ;;  %3469 = vbcast.lane.b32.xlu0 %v6887_v19, 320 }
 0x58c   :  { %4248 = vst.msk [vmem:[%s8926_s5 + $0x2d8] sm:$0xff] %vm9114_vm8, %v3992_v11  ;;  %vm9129_vm8 = vmmov %vm9030_vm0 }
 0x58d   :  { %4251 = vst.msk [vmem:[%s8926_s5 + $0x2f0] sm:$0xff] %vm9115_vm9, %v3995_v52  ;;  %v3222_v57 = vpop.permute.xlu1 %3221  ;;  %v3237_v21 = vpop.permute.xlu0 %3236  ;;  %vm9130_vm9 = vmmov %vm9030_vm0 }
 0x58e   :  { %v3994_v28 = vmul.f32 %v4655_v46, %v3222_v57  ;;  %v3997_v6 = vmul.f32 %v4656_v58, %v3237_v21  ;;  %v4674_v57 = vld [vmem:[%s8921_s0 + $0x390] sm:$0xff]  ;;  %v4675_v58 = vld [vmem:[%s8921_s0 + $0x388] sm:$0xff] }
 0x58f   :  { %3465 = vbcast.lane.b32.xlu1 %v6887_v19, 312  ;;  %3477 = vbcast.lane.b32.xlu0 %v6887_v19, 336 }
 0x590   :  { %4250 = vst.msk [vmem:[%s8926_s5 + $0x2e8] sm:$0xff] %vm9116_vm11, %v3994_v28  ;;  %vm9131_vm11 = vmmov %vm9030_vm0 }
 0x591   :  { %4253 = vst.msk [vmem:[%s8926_s5 + $0x300] sm:$0xff] %vm9117_vm10, %v3997_v6  ;;  %v3230_v61 = vpop.permute.xlu1 %3229  ;;  %v3245_v54 = vpop.permute.xlu0 %3244  ;;  %vm9132_vm10 = vmmov %vm9030_vm0 }
 0x592   :  { %v3996_v50 = vmul.f32 %v4657_v41, %v3230_v61  ;;  %v3999_v5 = vmul.f32 %v4658_v40, %v3245_v54  ;;  %v4676_v61 = vld [vmem:[%s8921_s0 + $0x3a0] sm:$0xff]  ;;  %v4677_v40 = vld [vmem:[%s8921_s0 + $0x398] sm:$0xff] }
 0x593   :  { %3473 = vbcast.lane.b32.xlu1 %v6887_v19, 328  ;;  %3485 = vbcast.lane.b32.xlu0 %v6887_v19, 352 }
 0x594   :  { %4252 = vst.msk [vmem:[%s8926_s5 + $0x2f8] sm:$0xff] %vm9118_vm13, %v3996_v50  ;;  %vm9133_vm13 = vmmov %vm9030_vm0 }
 0x595   :  { %4255 = vst.msk [vmem:[%s8926_s5 + $0x310] sm:$0xff] %vm9119_vm14, %v3999_v5  ;;  %v3241_v47 = vpop.permute.xlu1 %3240  ;;  %v3253_v56 = vpop.permute.xlu0 %3252  ;;  %vm9134_vm14 = vmmov %vm9030_vm0 }
 0x596   :  { %v3998_v4 = vmul.f32 %v4659_v22, %v3241_v47  ;;  %v4001_v36 = vmul.f32 %v4660_v35, %v3253_v56  ;;  %v4678_v47 = vld [vmem:[%s8921_s0 + $0x3b0] sm:$0xff]  ;;  %v4679_v35 = vld [vmem:[%s8921_s0 + $0x3a8] sm:$0xff] }
 0x597   :  { %3481 = vbcast.lane.b32.xlu1 %v6887_v19, 344  ;;  %3493 = vbcast.lane.b32.xlu0 %v6887_v19, 368 }
 0x598   :  { %4254 = vst.msk [vmem:[%s8926_s5 + $0x308] sm:$0xff] %vm9120_vm15, %v3998_v4  ;;  %vm9135_vm15 = vmmov %vm9030_vm0 }
 0x599   :  { %4257 = vst.msk [vmem:[%s8926_s5 + $0x320] sm:$0xff] %vm9030_vm0, %v4001_v36  ;;  %v3249_v39 = vpop.permute.xlu1 %3248  ;;  %v3261_v13 = vpop.permute.xlu0 %3260 }
 0x59a   :  { %v4000_v23 = vmul.f32 %v4661_v51, %v3249_v39  ;;  %v4003_v2 = vmul.f32 %v4662_v10, %v3261_v13  ;;  %v4680_v39 = vld [vmem:[%s8921_s0 + $0x3c0] sm:$0xff]  ;;  %v4681_v10 = vld [vmem:[%s8921_s0 + $0x3b8] sm:$0xff] }
 0x59b   :  { %3489 = vbcast.lane.b32.xlu1 %v6887_v19, 360  ;;  %3504 = vbcast.lane.b32.xlu0 %v6889_v20, 256 }
 0x59c   :  { %4256 = vst.msk [vmem:[%s8926_s5 + $0x318] sm:$0xff] %vm9121_vm12, %v4000_v23  ;;  %vm9136_vm12 = vmmov %vm9030_vm0 }
 0x59d   :  { %4259 = vst.msk [vmem:[%s8926_s5 + $0x330] sm:$0xff] %vm9122_vm1, %v4003_v2  ;;  %v3257_v63 = vpop.permute.xlu1 %3256  ;;  %v3269_v24 = vpop.permute.xlu0 %3268  ;;  %vm9137_vm1 = vmmov %vm9030_vm0 }
 0x59e   :  { %v4002_v55 = vmul.f32 %v4663_v30, %v3257_v63  ;;  %v4005_v49 = vmul.f32 %v4664_v37, %v3269_v24 }
 0x59f   :  { %3497 = vbcast.lane.b32.xlu1 %v6887_v19, 376  ;;  %3512 = vbcast.lane.b32.xlu0 %v6889_v20, 272  ;;  %v4666_v19 = vld [vmem:[%s8921_s0 + $0x350] sm:$0xff] }
 0x5a0   :  { %4258 = vst.msk [vmem:[%s8926_s5 + $0x328] sm:$0xff] %vm9123_vm2, %v4002_v55  ;;  %vm9138_vm2 = vmmov %vm9030_vm0  ;;  %v4683_v55 = vld [vmem:[%s8921_s0 + $0x3c8] sm:$0xff] }
 0x5a1   :  { %4261 = vst.msk [vmem:[%s8926_s5 + $0x340] sm:$0xff] %vm9124_vm3, %v4005_v49  ;;  %v3265_v26 = vpop.permute.xlu1 %3264  ;;  %v3277_v1 = vpop.permute.xlu0 %3276  ;;  %vm9139_vm3 = vmmov %vm9030_vm0  ;;  %v4684_v49 = vld [vmem:[%s8921_s0 + $0x3e0] sm:$0xff] }
 0x5a2   :  { %v4004_v18 = vmul.f32 %v4665_v34, %v3265_v26  ;;  %v4007_v17 = vmul.f32 %v4666_v19, %v3277_v1 }
 0x5a3   :  { %3508 = vbcast.lane.b32.xlu1 %v6889_v20, 264  ;;  %3520 = vbcast.lane.b32.xlu0 %v6889_v20, 288 }
 0x5a4   :  { %4260 = vst.msk [vmem:[%s8926_s5 + $0x338] sm:$0xff] %vm9125_vm4, %v4004_v18  ;;  %vm9140_vm4 = vmmov %vm9030_vm0  ;;  %v4685_v18 = vld [vmem:[%s8921_s0 + $0x3d8] sm:$0xff] }
 0x5a5   :  { %4263 = vst.msk [vmem:[%s8926_s5 + $0x350] sm:$0xff] %vm9126_vm5, %v4007_v17  ;;  %v3273_v33 = vpop.permute.xlu1 %3272  ;;  %v3285_v29 = vpop.permute.xlu0 %3284  ;;  %vm9141_vm5 = vmmov %vm9030_vm0  ;;  %v4686_v17 = vld [vmem:[%s8921_s0 + $0x3f0] sm:$0xff] }
 0x5a6   :  { %v4006_v32 = vmul.f32 %v4667_v27, %v3273_v33  ;;  %v4009_v43 = vmul.f32 %v4668_v62, %v3285_v29 }
 0x5a7   :  { %3516 = vbcast.lane.b32.xlu1 %v6889_v20, 280  ;;  %3528 = vbcast.lane.b32.xlu0 %v6889_v20, 304 }
 0x5a8   :  { %4262 = vst.msk [vmem:[%s8926_s5 + $0x348] sm:$0xff] %vm9127_vm6, %v4006_v32  ;;  %vm9142_vm6 = vmmov %vm9030_vm0  ;;  %v4687_v32 = vld [vmem:[%s8921_s0 + $0x3e8] sm:$0xff] }
 0x5a9   :  { %4265 = vst.msk [vmem:[%s8926_s5 + $0x360] sm:$0xff] %vm9128_vm7, %v4009_v43  ;;  %v3281_v14 = vpop.permute.xlu1 %3280  ;;  %v3293_v48 = vpop.permute.xlu0 %3292  ;;  %vm9143_vm7 = vmmov %vm9030_vm0  ;;  %v4688_v43 = vld [vmem:[%s8921_s0 + $0x400] sm:$0xff] }
 0x5aa   :  { %v4008_v44 = vmul.f32 %v4669_v38, %v3281_v14  ;;  %v4011_v42 = vmul.f32 %v4670_v53, %v3293_v48 }
 0x5ab   :  { %3524 = vbcast.lane.b32.xlu1 %v6889_v20, 296  ;;  %3536 = vbcast.lane.b32.xlu0 %v6889_v20, 320 }
 0x5ac   :  { %4264 = vst.msk [vmem:[%s8926_s5 + $0x358] sm:$0xff] %vm9129_vm8, %v4008_v44  ;;  %vm9144_vm8 = vmmov %vm9030_vm0  ;;  %v4689_v44 = vld [vmem:[%s8921_s0 + $0x3f8] sm:$0xff] }
 0x5ad   :  { %4267 = vst.msk [vmem:[%s8926_s5 + $0x370] sm:$0xff] %vm9130_vm9, %v4011_v42  ;;  %v3289_v8 = vpop.permute.xlu1 %3288  ;;  %v3304_v12 = vpop.permute.xlu0 %3303  ;;  %vm9145_vm9 = vmmov %vm9030_vm0  ;;  %v4690_v42 = vld [vmem:[%s8921_s0 + $0x410] sm:$0xff] }
 0x5ae   :  { %v4010_v7 = vmul.f32 %v4671_v60, %v3289_v8  ;;  %v4013_v45 = vmul.f32 %v4672_v3, %v3304_v12 }
 0x5af   :  { %3532 = vbcast.lane.b32.xlu1 %v6889_v20, 312  ;;  %3544 = vbcast.lane.b32.xlu0 %v6889_v20, 336 }
 0x5b0   :  { %4266 = vst.msk [vmem:[%s8926_s5 + $0x368] sm:$0xff] %vm9131_vm11, %v4010_v7  ;;  %vm9146_vm11 = vmmov %vm9030_vm0  ;;  %v4691_v7 = vld [vmem:[%s8921_s0 + $0x408] sm:$0xff] }
 0x5b1   :  { %4269 = vst.msk [vmem:[%s8926_s5 + $0x380] sm:$0xff] %vm9132_vm10, %v4013_v45  ;;  %v3297_v25 = vpop.permute.xlu1 %3296  ;;  %v3312_v11 = vpop.permute.xlu0 %3311  ;;  %vm9147_vm10 = vmmov %vm9030_vm0  ;;  %v4692_v45 = vld [vmem:[%s8921_s0 + $0x420] sm:$0xff] }
 0x5b2   :  { %v4012_v52 = vmul.f32 %v4673_v16, %v3297_v25  ;;  %v4015_v21 = vmul.f32 %v4674_v57, %v3312_v11 }
 0x5b3   :  { %3540 = vbcast.lane.b32.xlu1 %v6889_v20, 328  ;;  %3552 = vbcast.lane.b32.xlu0 %v6889_v20, 352 }
 0x5b4   :  { %4268 = vst.msk [vmem:[%s8926_s5 + $0x378] sm:$0xff] %vm9133_vm13, %v4012_v52  ;;  %vm9148_vm13 = vmmov %vm9030_vm0  ;;  %v4693_v52 = vld [vmem:[%s8921_s0 + $0x418] sm:$0xff] }
 0x5b5   :  { %4271 = vst.msk [vmem:[%s8926_s5 + $0x390] sm:$0xff] %vm9134_vm14, %v4015_v21  ;;  %v3308_v46 = vpop.permute.xlu1 %3307  ;;  %v3320_v28 = vpop.permute.xlu0 %3319  ;;  %vm9149_vm14 = vmmov %vm9030_vm0  ;;  %v4694_v21 = vld [vmem:[%s8921_s0 + $0x430] sm:$0xff] }
 0x5b6   :  { %v4014_v6 = vmul.f32 %v4675_v58, %v3308_v46  ;;  %v4017_v54 = vmul.f32 %v4676_v61, %v3320_v28 }
 0x5b7   :  { %3548 = vbcast.lane.b32.xlu1 %v6889_v20, 344  ;;  %3560 = vbcast.lane.b32.xlu0 %v6889_v20, 368 }
 0x5b8   :  { %4270 = vst.msk [vmem:[%s8926_s5 + $0x388] sm:$0xff] %vm9135_vm15, %v4014_v6  ;;  %vm9150_vm15 = vmmov %vm9030_vm0  ;;  %v4695_v6 = vld [vmem:[%s8921_s0 + $0x428] sm:$0xff] }
 0x5b9   :  { %4273 = vst.msk [vmem:[%s8926_s5 + $0x3a0] sm:$0xff] %vm9030_vm0, %v4017_v54  ;;  %v3316_v41 = vpop.permute.xlu1 %3315  ;;  %v3328_v50 = vpop.permute.xlu0 %3327  ;;  %v4696_v54 = vld [vmem:[%s8921_s0 + $0x440] sm:$0xff] }
 0x5ba   :  { %v4016_v5 = vmul.f32 %v4677_v40, %v3316_v41  ;;  %v4019_v56 = vmul.f32 %v4678_v47, %v3328_v50 }
 0x5bb   :  { %3556 = vbcast.lane.b32.xlu1 %v6889_v20, 360  ;;  %3571 = vbcast.lane.b32.xlu0 %v6893_v0, 256 }
 0x5bc   :  { %4272 = vst.msk [vmem:[%s8926_s5 + $0x398] sm:$0xff] %vm9136_vm12, %v4016_v5  ;;  %vm9151_vm12 = vmmov %vm9030_vm0  ;;  %v4697_v5 = vld [vmem:[%s8921_s0 + $0x438] sm:$0xff] }
 0x5bd   :  { %4275 = vst.msk [vmem:[%s8926_s5 + $0x3b0] sm:$0xff] %vm9137_vm1, %v4019_v56  ;;  %v3324_v22 = vpop.permute.xlu1 %3323  ;;  %v3336_v4 = vpop.permute.xlu0 %3335  ;;  %vm9152_vm1 = vmmov %vm9030_vm0 }
 0x5be   :  { %v4018_v36 = vmul.f32 %v4679_v35, %v3324_v22  ;;  %v4021_v13 = vmul.f32 %v4680_v39, %v3336_v4  ;;  %v4699_v35 = vld [vmem:[%s8921_s0 + $0x448] sm:$0xff]  ;;  %v4700_v39 = vld [vmem:[%s8921_s0 + $0x460] sm:$0xff] }
 0x5bf   :  { %3564 = vbcast.lane.b32.xlu1 %v6889_v20, 376  ;;  %3579 = vbcast.lane.b32.xlu0 %v6893_v0, 272  ;;  %v4682_v20 = vld [vmem:[%s8921_s0 + $0x3d0] sm:$0xff] }
 0x5c0   :  { %4274 = vst.msk [vmem:[%s8926_s5 + $0x3a8] sm:$0xff] %vm9138_vm2, %v4018_v36  ;;  %vm9153_vm2 = vmmov %vm9030_vm0 }
 0x5c1   :  { %4277 = vst.msk [vmem:[%s8926_s5 + $0x3c0] sm:$0xff] %vm9139_vm3, %v4021_v13  ;;  %v3332_v51 = vpop.permute.xlu1 %3331  ;;  %v3344_v23 = vpop.permute.xlu0 %3343  ;;  %vm9154_vm3 = vmmov %vm9030_vm0 }
 0x5c2   :  { %v4020_v2 = vmul.f32 %v4681_v10, %v3332_v51  ;;  %v4023_v63 = vmul.f32 %v4682_v20, %v3344_v23  ;;  %v4701_v10 = vld [vmem:[%s8921_s0 + $0x458] sm:$0xff]  ;;  %v4702_v20 = vld [vmem:[%s8921_s0 + $0x470] sm:$0xff] }
 0x5c3   :  { %3575 = vbcast.lane.b32.xlu1 %v6893_v0, 264  ;;  %3587 = vbcast.lane.b32.xlu0 %v6893_v0, 288 }
 0x5c4   :  { %4276 = vst.msk [vmem:[%s8926_s5 + $0x3b8] sm:$0xff] %vm9140_vm4, %v4020_v2  ;;  %vm9155_vm4 = vmmov %vm9030_vm0 }
 0x5c5   :  { %4279 = vst.msk [vmem:[%s8926_s5 + $0x3d0] sm:$0xff] %vm9141_vm5, %v4023_v63  ;;  %v3340_v24 = vpop.permute.xlu1 %3339  ;;  %v3352_v30 = vpop.permute.xlu0 %3351  ;;  %vm9156_vm5 = vmmov %vm9030_vm0 }
 0x5c6   :  { %v4022_v37 = vmul.f32 %v4683_v55, %v3340_v24  ;;  %v4025_v26 = vmul.f32 %v4684_v49, %v3352_v30  ;;  %v4703_v55 = vld [vmem:[%s8921_s0 + $0x468] sm:$0xff]  ;;  %v4704_v49 = vld [vmem:[%s8921_s0 + $0x480] sm:$0xff] }
 0x5c7   :  { %3583 = vbcast.lane.b32.xlu1 %v6893_v0, 280  ;;  %3595 = vbcast.lane.b32.xlu0 %v6893_v0, 304 }
 0x5c8   :  { %4278 = vst.msk [vmem:[%s8926_s5 + $0x3c8] sm:$0xff] %vm9142_vm6, %v4022_v37  ;;  %vm9157_vm6 = vmmov %vm9030_vm0 }
 0x5c9   :  { %4281 = vst.msk [vmem:[%s8926_s5 + $0x3e0] sm:$0xff] %vm9143_vm7, %v4025_v26  ;;  %v3348_v1 = vpop.permute.xlu1 %3347  ;;  %v3360_v34 = vpop.permute.xlu0 %3359  ;;  %vm9158_vm7 = vmmov %vm9030_vm0 }
 0x5ca   :  { %v4024_v19 = vmul.f32 %v4685_v18, %v3348_v1  ;;  %v4027_v33 = vmul.f32 %v4686_v17, %v3360_v34  ;;  %v4705_v18 = vld [vmem:[%s8921_s0 + $0x478] sm:$0xff]  ;;  %v4706_v17 = vld [vmem:[%s8921_s0 + $0x490] sm:$0xff] }
 0x5cb   :  { %3591 = vbcast.lane.b32.xlu1 %v6893_v0, 296  ;;  %3603 = vbcast.lane.b32.xlu0 %v6893_v0, 320 }
 0x5cc   :  { %4280 = vst.msk [vmem:[%s8926_s5 + $0x3d8] sm:$0xff] %vm9144_vm8, %v4024_v19  ;;  %vm9159_vm8 = vmmov %vm9030_vm0 }
 0x5cd   :  { %4283 = vst.msk [vmem:[%s8926_s5 + $0x3f0] sm:$0xff] %vm9145_vm9, %v4027_v33  ;;  %v3356_v29 = vpop.permute.xlu1 %3355  ;;  %v3371_v27 = vpop.permute.xlu0 %3370  ;;  %vm9160_vm9 = vmmov %vm9030_vm0 }
 0x5ce   :  { %v4026_v62 = vmul.f32 %v4687_v32, %v3356_v29  ;;  %v4029_v14 = vmul.f32 %v4688_v43, %v3371_v27  ;;  %v4707_v32 = vld [vmem:[%s8921_s0 + $0x488] sm:$0xff]  ;;  %v4708_v43 = vld [vmem:[%s8921_s0 + $0x4a0] sm:$0xff] }
 0x5cf   :  { %3599 = vbcast.lane.b32.xlu1 %v6893_v0, 312  ;;  %3611 = vbcast.lane.b32.xlu0 %v6893_v0, 336 }
 0x5d0   :  { %4282 = vst.msk [vmem:[%s8926_s5 + $0x3e8] sm:$0xff] %vm9146_vm11, %v4026_v62  ;;  %vm9161_vm11 = vmmov %vm9030_vm0 }
 0x5d1   :  { %4285 = vst.msk [vmem:[%s8926_s5 + $0x400] sm:$0xff] %vm9147_vm10, %v4029_v14  ;;  %v3364_v48 = vpop.permute.xlu1 %3363  ;;  %v3379_v38 = vpop.permute.xlu0 %3378  ;;  %vm9162_vm10 = vmmov %vm9030_vm0 }
 0x5d2   :  { %v4028_v53 = vmul.f32 %v4689_v44, %v3364_v48  ;;  %v4031_v8 = vmul.f32 %v4690_v42, %v3379_v38  ;;  %v4709_v44 = vld [vmem:[%s8921_s0 + $0x498] sm:$0xff]  ;;  %v4710_v42 = vld [vmem:[%s8921_s0 + $0x4b0] sm:$0xff] }
 0x5d3   :  { %3607 = vbcast.lane.b32.xlu1 %v6893_v0, 328  ;;  %3619 = vbcast.lane.b32.xlu0 %v6893_v0, 352 }
 0x5d4   :  { %4284 = vst.msk [vmem:[%s8926_s5 + $0x3f8] sm:$0xff] %vm9148_vm13, %v4028_v53  ;;  %vm9163_vm13 = vmmov %vm9030_vm0 }
 0x5d5   :  { %4287 = vst.msk [vmem:[%s8926_s5 + $0x410] sm:$0xff] %vm9149_vm14, %v4031_v8  ;;  %v3375_v12 = vpop.permute.xlu1 %3374  ;;  %v3387_v60 = vpop.permute.xlu0 %3386  ;;  %vm9164_vm14 = vmmov %vm9030_vm0 }
 0x5d6   :  { %v4030_v3 = vmul.f32 %v4691_v7, %v3375_v12  ;;  %v4033_v25 = vmul.f32 %v4692_v45, %v3387_v60  ;;  %v4711_v7 = vld [vmem:[%s8921_s0 + $0x4a8] sm:$0xff]  ;;  %v4712_v45 = vld [vmem:[%s8921_s0 + $0x4c0] sm:$0xff] }
 0x5d7   :  { %3615 = vbcast.lane.b32.xlu1 %v6893_v0, 344  ;;  %3627 = vbcast.lane.b32.xlu0 %v6893_v0, 368 }
 0x5d8   :  { %4286 = vst.msk [vmem:[%s8926_s5 + $0x408] sm:$0xff] %vm9150_vm15, %v4030_v3  ;;  %vm9165_vm15 = vmmov %vm9030_vm0 }
 0x5d9   :  { %4289 = vst.msk [vmem:[%s8926_s5 + $0x420] sm:$0xff] %vm9030_vm0, %v4033_v25  ;;  %v3383_v11 = vpop.permute.xlu1 %3382  ;;  %v3395_v16 = vpop.permute.xlu0 %3394 }
 0x5da   :  { %v4032_v57 = vmul.f32 %v4693_v52, %v3383_v11  ;;  %v4035_v46 = vmul.f32 %v4694_v21, %v3395_v16  ;;  %v4713_v52 = vld [vmem:[%s8921_s0 + $0x4b8] sm:$0xff] }
 0x5db   :  { %3623 = vbcast.lane.b32.xlu1 %v6893_v0, 360  ;;  %3638 = vbcast.lane.b32.xlu0 %v6898_v9, 256 }
 0x5dc   :  { %4288 = vst.msk [vmem:[%s8926_s5 + $0x418] sm:$0xff] %vm9151_vm12, %v4032_v57  ;;  %vm9166_vm12 = vmmov %vm9030_vm0 }
 0x5dd   :  { %4291 = vst.msk [vmem:[%s8926_s5 + $0x430] sm:$0xff] %vm9152_vm1, %v4035_v46  ;;  %v3391_v28 = vpop.permute.xlu1 %3390  ;;  %v3403_v58 = vpop.permute.xlu0 %3402  ;;  %vm9167_vm1 = vmmov %vm9030_vm0 }
 0x5de   :  { %v4034_v61 = vmul.f32 %v4695_v6, %v3391_v28  ;;  %v4037_v41 = vmul.f32 %v4696_v54, %v3403_v58  ;;  %v4715_v58 = vld [vmem:[%s8921_s0 + $0x4c8] sm:$0xff] }
 0x5df   :  { %3631 = vbcast.lane.b32.xlu1 %v6893_v0, 376  ;;  %3646 = vbcast.lane.b32.xlu0 %v6898_v9, 272  ;;  %v4698_v0 = vld [vmem:[%s8921_s0 + $0x450] sm:$0xff] }
 0x5e0   :  { %4290 = vst.msk [vmem:[%s8926_s5 + $0x428] sm:$0xff] %vm9153_vm2, %v4034_v61  ;;  %vm9168_vm2 = vmmov %vm9030_vm0  ;;  %v4716_v61 = vld [vmem:[%s8921_s0 + $0x4e0] sm:$0xff] }
 0x5e1   :  { %4293 = vst.msk [vmem:[%s8926_s5 + $0x440] sm:$0xff] %vm9154_vm3, %v4037_v41  ;;  %v3399_v50 = vpop.permute.xlu1 %3398  ;;  %v3411_v40 = vpop.permute.xlu0 %3410  ;;  %vm9169_vm3 = vmmov %vm9030_vm0 }
 0x5e2   :  { %v4036_v47 = vmul.f32 %v4697_v5, %v3399_v50  ;;  %v4039_v56 = vmul.f32 %v4698_v0, %v3411_v40  ;;  %v4717_v40 = vld [vmem:[%s8921_s0 + $0x4d8] sm:$0xff] }
 0x5e3   :  { %3642 = vbcast.lane.b32.xlu1 %v6898_v9, 264  ;;  %3654 = vbcast.lane.b32.xlu0 %v6898_v9, 288 }
 0x5e4   :  { %4292 = vst.msk [vmem:[%s8926_s5 + $0x438] sm:$0xff] %vm9155_vm4, %v4036_v47  ;;  %vm9170_vm4 = vmmov %vm9030_vm0  ;;  %v4718_v47 = vld [vmem:[%s8921_s0 + $0x4f0] sm:$0xff] }
 0x5e5   :  { %4295 = vst.msk [vmem:[%s8926_s5 + $0x450] sm:$0xff] %vm9156_vm5, %v4039_v56  ;;  %v3407_v22 = vpop.permute.xlu1 %3406  ;;  %v3419_v4 = vpop.permute.xlu0 %3418  ;;  %vm9171_vm5 = vmmov %vm9030_vm0 }
 0x5e6   :  { %v4038_v36 = vmul.f32 %v4699_v35, %v3407_v22  ;;  %v4041_v13 = vmul.f32 %v4700_v39, %v3419_v4  ;;  %v4719_v4 = vld [vmem:[%s8921_s0 + $0x4e8] sm:$0xff] }
 0x5e7   :  { %3650 = vbcast.lane.b32.xlu1 %v6898_v9, 280  ;;  %3662 = vbcast.lane.b32.xlu0 %v6898_v9, 304 }
 0x5e8   :  { %4294 = vst.msk [vmem:[%s8926_s5 + $0x448] sm:$0xff] %vm9157_vm6, %v4038_v36  ;;  %vm9172_vm6 = vmmov %vm9030_vm0  ;;  %v4720_v36 = vld [vmem:[%s8921_s0 + $0x500] sm:$0xff] }
 0x5e9   :  { %4297 = vst.msk [vmem:[%s8926_s5 + $0x460] sm:$0xff] %vm9158_vm7, %v4041_v13  ;;  %v3415_v51 = vpop.permute.xlu1 %3414  ;;  %v3427_v23 = vpop.permute.xlu0 %3426  ;;  %vm9173_vm7 = vmmov %vm9030_vm0 }
 0x5ea   :  { %v4040_v2 = vmul.f32 %v4701_v10, %v3415_v51  ;;  %v4043_v63 = vmul.f32 %v4702_v20, %v3427_v23  ;;  %v4721_v23 = vld [vmem:[%s8921_s0 + $0x4f8] sm:$0xff] }
 0x5eb   :  { %3658 = vbcast.lane.b32.xlu1 %v6898_v9, 296  ;;  %3670 = vbcast.lane.b32.xlu0 %v6898_v9, 320 }
 0x5ec   :  { %4296 = vst.msk [vmem:[%s8926_s5 + $0x458] sm:$0xff] %vm9159_vm8, %v4040_v2  ;;  %vm9174_vm8 = vmmov %vm9030_vm0  ;;  %v4722_v2 = vld [vmem:[%s8921_s0 + $0x510] sm:$0xff] }
 0x5ed   :  { %4299 = vst.msk [vmem:[%s8926_s5 + $0x470] sm:$0xff] %vm9160_vm9, %v4043_v63  ;;  %v3423_v24 = vpop.permute.xlu1 %3422  ;;  %v3438_v30 = vpop.permute.xlu0 %3437  ;;  %vm9175_vm9 = vmmov %vm9030_vm0 }
 0x5ee   :  { %v4042_v37 = vmul.f32 %v4703_v55, %v3423_v24  ;;  %v4045_v26 = vmul.f32 %v4704_v49, %v3438_v30  ;;  %v4723_v30 = vld [vmem:[%s8921_s0 + $0x508] sm:$0xff] }
 0x5ef   :  { %3666 = vbcast.lane.b32.xlu1 %v6898_v9, 312  ;;  %3678 = vbcast.lane.b32.xlu0 %v6898_v9, 336 }
 0x5f0   :  { %4298 = vst.msk [vmem:[%s8926_s5 + $0x468] sm:$0xff] %vm9161_vm11, %v4042_v37  ;;  %vm9176_vm11 = vmmov %vm9030_vm0  ;;  %v4724_v37 = vld [vmem:[%s8921_s0 + $0x520] sm:$0xff] }
 0x5f1   :  { %4301 = vst.msk [vmem:[%s8926_s5 + $0x480] sm:$0xff] %vm9162_vm10, %v4045_v26  ;;  %v3431_v1 = vpop.permute.xlu1 %3430  ;;  %v3446_v34 = vpop.permute.xlu0 %3445  ;;  %vm9177_vm10 = vmmov %vm9030_vm0 }
 0x5f2   :  { %v4044_v19 = vmul.f32 %v4705_v18, %v3431_v1  ;;  %v4047_v33 = vmul.f32 %v4706_v17, %v3446_v34  ;;  %v4725_v34 = vld [vmem:[%s8921_s0 + $0x518] sm:$0xff] }
 0x5f3   :  { %3674 = vbcast.lane.b32.xlu1 %v6898_v9, 328  ;;  %3686 = vbcast.lane.b32.xlu0 %v6898_v9, 352 }
 0x5f4   :  { %4300 = vst.msk [vmem:[%s8926_s5 + $0x478] sm:$0xff] %vm9163_vm13, %v4044_v19  ;;  %vm9178_vm13 = vmmov %vm9030_vm0  ;;  %v4726_v19 = vld [vmem:[%s8921_s0 + $0x530] sm:$0xff] }
 0x5f5   :  { %4303 = vst.msk [vmem:[%s8926_s5 + $0x490] sm:$0xff] %vm9164_vm14, %v4047_v33  ;;  %v3442_v29 = vpop.permute.xlu1 %3441  ;;  %v3454_v27 = vpop.permute.xlu0 %3453  ;;  %vm9179_vm14 = vmmov %vm9030_vm0 }
 0x5f6   :  { %v4046_v62 = vmul.f32 %v4707_v32, %v3442_v29  ;;  %v4049_v14 = vmul.f32 %v4708_v43, %v3454_v27  ;;  %v4727_v27 = vld [vmem:[%s8921_s0 + $0x528] sm:$0xff] }
 0x5f7   :  { %3682 = vbcast.lane.b32.xlu1 %v6898_v9, 344  ;;  %3694 = vbcast.lane.b32.xlu0 %v6898_v9, 368 }
 0x5f8   :  { %4302 = vst.msk [vmem:[%s8926_s5 + $0x488] sm:$0xff] %vm9165_vm15, %v4046_v62  ;;  %vm9180_vm15 = vmmov %vm9030_vm0  ;;  %v4728_v62 = vld [vmem:[%s8921_s0 + $0x540] sm:$0xff] }
 0x5f9   :  { %4305 = vst.msk [vmem:[%s8926_s5 + $0x4a0] sm:$0xff] %vm9030_vm0, %v4049_v14  ;;  %v3450_v48 = vpop.permute.xlu1 %3449  ;;  %v3462_v38 = vpop.permute.xlu0 %3461 }
 0x5fa   :  { %v4048_v53 = vmul.f32 %v4709_v44, %v3450_v48  ;;  %v4051_v8 = vmul.f32 %v4710_v42, %v3462_v38  ;;  %v4729_v38 = vld [vmem:[%s8921_s0 + $0x538] sm:$0xff] }
 0x5fb   :  { %3690 = vbcast.lane.b32.xlu1 %v6898_v9, 360  ;;  %3705 = vbcast.lane.b32.xlu0 %v6902_v59, 256 }
 0x5fc   :  { %4304 = vst.msk [vmem:[%s8926_s5 + $0x498] sm:$0xff] %vm9166_vm12, %v4048_v53  ;;  %vm9181_vm12 = vmmov %vm9030_vm0 }
 0x5fd   :  { %4307 = vst.msk [vmem:[%s8926_s5 + $0x4b0] sm:$0xff] %vm9167_vm1, %v4051_v8  ;;  %v3458_v12 = vpop.permute.xlu1 %3457  ;;  %v3470_v60 = vpop.permute.xlu0 %3469  ;;  %vm9182_vm1 = vmmov %vm9030_vm0 }
 0x5fe   :  { %v4050_v3 = vmul.f32 %v4711_v7, %v3458_v12  ;;  %v4053_v25 = vmul.f32 %v4712_v45, %v3470_v60  ;;  %v4731_v12 = vld [vmem:[%s8921_s0 + $0x548] sm:$0xff]  ;;  %v4732_v7 = vld [vmem:[%s8921_s0 + $0x560] sm:$0xff] }
 0x5ff   :  { %3698 = vbcast.lane.b32.xlu1 %v6898_v9, 376  ;;  %3713 = vbcast.lane.b32.xlu0 %v6902_v59, 272  ;;  %v4714_v9 = vld [vmem:[%s8921_s0 + $0x4d0] sm:$0xff] }
 0x600   :  { %4306 = vst.msk [vmem:[%s8926_s5 + $0x4a8] sm:$0xff] %vm9168_vm2, %v4050_v3  ;;  %vm9183_vm2 = vmmov %vm9030_vm0 }
 0x601   :  { %4309 = vst.msk [vmem:[%s8926_s5 + $0x4c0] sm:$0xff] %vm9169_vm3, %v4053_v25  ;;  %v3466_v11 = vpop.permute.xlu1 %3465  ;;  %v3478_v16 = vpop.permute.xlu0 %3477  ;;  %vm9184_vm3 = vmmov %vm9030_vm0 }
 0x602   :  { %v4052_v57 = vmul.f32 %v4713_v52, %v3466_v11  ;;  %v4055_v21 = vmul.f32 %v4714_v9, %v3478_v16  ;;  %v4733_v11 = vld [vmem:[%s8921_s0 + $0x558] sm:$0xff]  ;;  %v4734_v52 = vld [vmem:[%s8921_s0 + $0x570] sm:$0xff] }
 0x603   :  { %3709 = vbcast.lane.b32.xlu1 %v6902_v59, 264  ;;  %3721 = vbcast.lane.b32.xlu0 %v6902_v59, 288 }
 0x604   :  { %4308 = vst.msk [vmem:[%s8926_s5 + $0x4b8] sm:$0xff] %vm9170_vm4, %v4052_v57  ;;  %vm9185_vm4 = vmmov %vm9030_vm0 }
 0x605   :  { %4311 = vst.msk [vmem:[%s8926_s5 + $0x4d0] sm:$0xff] %vm9171_vm5, %v4055_v21  ;;  %v3474_v46 = vpop.permute.xlu1 %3473  ;;  %v3486_v28 = vpop.permute.xlu0 %3485  ;;  %vm9186_vm5 = vmmov %vm9030_vm0 }
 0x606   :  { %v4054_v6 = vmul.f32 %v4715_v58, %v3474_v46  ;;  %v4057_v54 = vmul.f32 %v4716_v61, %v3486_v28  ;;  %v4735_v46 = vld [vmem:[%s8921_s0 + $0x568] sm:$0xff]  ;;  %v4736_v58 = vld [vmem:[%s8921_s0 + $0x580] sm:$0xff] }
 0x607   :  { %3717 = vbcast.lane.b32.xlu1 %v6902_v59, 280  ;;  %3729 = vbcast.lane.b32.xlu0 %v6902_v59, 304 }
 0x608   :  { %4310 = vst.msk [vmem:[%s8926_s5 + $0x4c8] sm:$0xff] %vm9172_vm6, %v4054_v6  ;;  %vm9187_vm6 = vmmov %vm9030_vm0 }
 0x609   :  { %4313 = vst.msk [vmem:[%s8926_s5 + $0x4e0] sm:$0xff] %vm9173_vm7, %v4057_v54  ;;  %v3482_v41 = vpop.permute.xlu1 %3481  ;;  %v3494_v50 = vpop.permute.xlu0 %3493  ;;  %vm9188_vm7 = vmmov %vm9030_vm0 }
 0x60a   :  { %v4056_v5 = vmul.f32 %v4717_v40, %v3482_v41  ;;  %v4059_v0 = vmul.f32 %v4718_v47, %v3494_v50  ;;  %v4737_v41 = vld [vmem:[%s8921_s0 + $0x578] sm:$0xff]  ;;  %v4738_v40 = vld [vmem:[%s8921_s0 + $0x590] sm:$0xff] }
 0x60b   :  { %3725 = vbcast.lane.b32.xlu1 %v6902_v59, 296  ;;  %3737 = vbcast.lane.b32.xlu0 %v6902_v59, 320 }
 0x60c   :  { %4312 = vst.msk [vmem:[%s8926_s5 + $0x4d8] sm:$0xff] %vm9174_vm8, %v4056_v5  ;;  %vm9189_vm8 = vmmov %vm9030_vm0 }
 0x60d   :  { %4315 = vst.msk [vmem:[%s8926_s5 + $0x4f0] sm:$0xff] %vm9175_vm9, %v4059_v0  ;;  %v3490_v56 = vpop.permute.xlu1 %3489  ;;  %v3505_v22 = vpop.permute.xlu0 %3504  ;;  %vm9190_vm9 = vmmov %vm9030_vm0 }
 0x60e   :  { %v4058_v35 = vmul.f32 %v4719_v4, %v3490_v56  ;;  %v4061_v39 = vmul.f32 %v4720_v36, %v3505_v22  ;;  %v4739_v56 = vld [vmem:[%s8921_s0 + $0x588] sm:$0xff]  ;;  %v4740_v4 = vld [vmem:[%s8921_s0 + $0x5a0] sm:$0xff] }
 0x60f   :  { %3733 = vbcast.lane.b32.xlu1 %v6902_v59, 312  ;;  %3745 = vbcast.lane.b32.xlu0 %v6902_v59, 336 }
 0x610   :  { %4314 = vst.msk [vmem:[%s8926_s5 + $0x4e8] sm:$0xff] %vm9176_vm11, %v4058_v35  ;;  %vm9191_vm11 = vmmov %vm9030_vm0 }
 0x611   :  { %4317 = vst.msk [vmem:[%s8926_s5 + $0x500] sm:$0xff] %vm9177_vm10, %v4061_v39  ;;  %v3498_v13 = vpop.permute.xlu1 %3497  ;;  %v3513_v51 = vpop.permute.xlu0 %3512  ;;  %vm9192_vm10 = vmmov %vm9030_vm0 }
 0x612   :  { %v4060_v10 = vmul.f32 %v4721_v23, %v3498_v13  ;;  %v4063_v20 = vmul.f32 %v4722_v2, %v3513_v51  ;;  %v4741_v13 = vld [vmem:[%s8921_s0 + $0x598] sm:$0xff]  ;;  %v4742_v23 = vld [vmem:[%s8921_s0 + $0x5b0] sm:$0xff] }
 0x613   :  { %3741 = vbcast.lane.b32.xlu1 %v6902_v59, 328  ;;  %3753 = vbcast.lane.b32.xlu0 %v6902_v59, 352 }
 0x614   :  { %4316 = vst.msk [vmem:[%s8926_s5 + $0x4f8] sm:$0xff] %vm9178_vm13, %v4060_v10  ;;  %vm9193_vm13 = vmmov %vm9030_vm0 }
 0x615   :  { %4319 = vst.msk [vmem:[%s8926_s5 + $0x510] sm:$0xff] %vm9179_vm14, %v4063_v20  ;;  %v3509_v63 = vpop.permute.xlu1 %3508  ;;  %v3521_v24 = vpop.permute.xlu0 %3520  ;;  %vm9194_vm14 = vmmov %vm9030_vm0 }
 0x616   :  { %v4062_v55 = vmul.f32 %v4723_v30, %v3509_v63  ;;  %v4065_v49 = vmul.f32 %v4724_v37, %v3521_v24  ;;  %v4743_v63 = vld [vmem:[%s8921_s0 + $0x5a8] sm:$0xff]  ;;  %v4744_v30 = vld [vmem:[%s8921_s0 + $0x5c0] sm:$0xff] }
 0x617   :  { %3749 = vbcast.lane.b32.xlu1 %v6902_v59, 344  ;;  %3761 = vbcast.lane.b32.xlu0 %v6902_v59, 368 }
 0x618   :  { %4318 = vst.msk [vmem:[%s8926_s5 + $0x508] sm:$0xff] %vm9180_vm15, %v4062_v55  ;;  %vm9195_vm15 = vmmov %vm9030_vm0 }
 0x619   :  { %4321 = vst.msk [vmem:[%s8926_s5 + $0x520] sm:$0xff] %vm9030_vm0, %v4065_v49  ;;  %v3517_v26 = vpop.permute.xlu1 %3516  ;;  %v3529_v1 = vpop.permute.xlu0 %3528 }
 0x61a   :  { %v4064_v18 = vmul.f32 %v4725_v34, %v3517_v26  ;;  %v4067_v17 = vmul.f32 %v4726_v19, %v3529_v1  ;;  %v4745_v26 = vld [vmem:[%s8921_s0 + $0x5b8] sm:$0xff] }
 0x61b   :  { %3757 = vbcast.lane.b32.xlu1 %v6902_v59, 360  ;;  %3772 = vbcast.lane.b32.xlu0 %v6906_v31, 256 }
 0x61c   :  { %4320 = vst.msk [vmem:[%s8926_s5 + $0x518] sm:$0xff] %vm9181_vm12, %v4064_v18  ;;  %vm9196_vm12 = vmmov %vm9030_vm0 }
 0x61d   :  { %4323 = vst.msk [vmem:[%s8926_s5 + $0x530] sm:$0xff] %vm9182_vm1, %v4067_v17  ;;  %v3525_v33 = vpop.permute.xlu1 %3524  ;;  %v3537_v29 = vpop.permute.xlu0 %3536  ;;  %vm9197_vm1 = vmmov %vm9030_vm0  ;;  %v4747_v17 = vld [vmem:[%s8921_s0 + $0x5c8] sm:$0xff] }
 0x61e   :  { %v4066_v32 = vmul.f32 %v4727_v27, %v3525_v33  ;;  %v4069_v43 = vmul.f32 %v4728_v62, %v3537_v29  ;;  %v4748_v29 = vld [vmem:[%s8921_s0 + $0x5e0] sm:$0xff] }
 0x61f   :  { %3765 = vbcast.lane.b32.xlu1 %v6902_v59, 376  ;;  %3780 = vbcast.lane.b32.xlu0 %v6906_v31, 272  ;;  %v4730_v59 = vld [vmem:[%s8921_s0 + $0x550] sm:$0xff] }
 0x620   :  { %4322 = vst.msk [vmem:[%s8926_s5 + $0x528] sm:$0xff] %vm9183_vm2, %v4066_v32  ;;  %vm9198_vm2 = vmmov %vm9030_vm0 }
 0x621   :  { %4325 = vst.msk [vmem:[%s8926_s5 + $0x540] sm:$0xff] %vm9184_vm3, %v4069_v43  ;;  %v3533_v14 = vpop.permute.xlu1 %3532  ;;  %v3545_v48 = vpop.permute.xlu0 %3544  ;;  %vm9199_vm3 = vmmov %vm9030_vm0  ;;  %v4749_v43 = vld [vmem:[%s8921_s0 + $0x5d8] sm:$0xff] }
 0x622   :  { %v4068_v44 = vmul.f32 %v4729_v38, %v3533_v14  ;;  %v4071_v53 = vmul.f32 %v4730_v59, %v3545_v48  ;;  %v4750_v48 = vld [vmem:[%s8921_s0 + $0x5f0] sm:$0xff] }
 0x623   :  { %3776 = vbcast.lane.b32.xlu1 %v6906_v31, 264  ;;  %3788 = vbcast.lane.b32.xlu0 %v6906_v31, 288 }
 0x624   :  { %4324 = vst.msk [vmem:[%s8926_s5 + $0x538] sm:$0xff] %vm9185_vm4, %v4068_v44  ;;  %vm9200_vm4 = vmmov %vm9030_vm0 }
 0x625   :  { %4327 = vst.msk [vmem:[%s8926_s5 + $0x550] sm:$0xff] %vm9186_vm5, %v4071_v53  ;;  %v3541_v42 = vpop.permute.xlu1 %3540  ;;  %v3553_v8 = vpop.permute.xlu0 %3552  ;;  %vm9201_vm5 = vmmov %vm9030_vm0  ;;  %v4751_v53 = vld [vmem:[%s8921_s0 + $0x5e8] sm:$0xff] }
 0x626   :  { %v4070_v60 = vmul.f32 %v4731_v12, %v3541_v42  ;;  %v4073_v3 = vmul.f32 %v4732_v7, %v3553_v8  ;;  %v4752_v8 = vld [vmem:[%s8921_s0 + $0x600] sm:$0xff] }
 0x627   :  { %3784 = vbcast.lane.b32.xlu1 %v6906_v31, 280  ;;  %3796 = vbcast.lane.b32.xlu0 %v6906_v31, 304 }
 0x628   :  { %4326 = vst.msk [vmem:[%s8926_s5 + $0x548] sm:$0xff] %vm9187_vm6, %v4070_v60  ;;  %vm9202_vm6 = vmmov %vm9030_vm0 }
 0x629   :  { %4329 = vst.msk [vmem:[%s8926_s5 + $0x560] sm:$0xff] %vm9188_vm7, %v4073_v3  ;;  %v3549_v45 = vpop.permute.xlu1 %3548  ;;  %v3561_v25 = vpop.permute.xlu0 %3560  ;;  %vm9203_vm7 = vmmov %vm9030_vm0  ;;  %v4753_v3 = vld [vmem:[%s8921_s0 + $0x5f8] sm:$0xff] }
 0x62a   :  { %v4072_v16 = vmul.f32 %v4733_v11, %v3549_v45  ;;  %v4075_v57 = vmul.f32 %v4734_v52, %v3561_v25  ;;  %v4754_v25 = vld [vmem:[%s8921_s0 + $0x610] sm:$0xff] }
 0x62b   :  { %3792 = vbcast.lane.b32.xlu1 %v6906_v31, 296  ;;  %3804 = vbcast.lane.b32.xlu0 %v6906_v31, 320 }
 0x62c   :  { %4328 = vst.msk [vmem:[%s8926_s5 + $0x558] sm:$0xff] %vm9189_vm8, %v4072_v16  ;;  %vm9204_vm8 = vmmov %vm9030_vm0 }
 0x62d   :  { %4331 = vst.msk [vmem:[%s8926_s5 + $0x570] sm:$0xff] %vm9190_vm9, %v4075_v57  ;;  %v3557_v9 = vpop.permute.xlu1 %3556  ;;  %v3572_v21 = vpop.permute.xlu0 %3571  ;;  %vm9205_vm9 = vmmov %vm9030_vm0  ;;  %v4755_v57 = vld [vmem:[%s8921_s0 + $0x608] sm:$0xff] }
 0x62e   :  { %v4074_v28 = vmul.f32 %v4735_v46, %v3557_v9  ;;  %v4077_v6 = vmul.f32 %v4736_v58, %v3572_v21  ;;  %v4756_v21 = vld [vmem:[%s8921_s0 + $0x620] sm:$0xff] }
 0x62f   :  { %3800 = vbcast.lane.b32.xlu1 %v6906_v31, 312  ;;  %3812 = vbcast.lane.b32.xlu0 %v6906_v31, 336 }
 0x630   :  { %4330 = vst.msk [vmem:[%s8926_s5 + $0x568] sm:$0xff] %vm9191_vm11, %v4074_v28  ;;  %vm9206_vm11 = vmmov %vm9030_vm0 }
 0x631   :  { %4333 = vst.msk [vmem:[%s8926_s5 + $0x580] sm:$0xff] %vm9192_vm10, %v4077_v6  ;;  %v3565_v61 = vpop.permute.xlu1 %3564  ;;  %v3580_v54 = vpop.permute.xlu0 %3579  ;;  %vm9207_vm10 = vmmov %vm9030_vm0  ;;  %v4757_v6 = vld [vmem:[%s8921_s0 + $0x618] sm:$0xff] }
 0x632   :  { %v4076_v50 = vmul.f32 %v4737_v41, %v3565_v61  ;;  %v4079_v5 = vmul.f32 %v4738_v40, %v3580_v54  ;;  %v4758_v54 = vld [vmem:[%s8921_s0 + $0x630] sm:$0xff] }
 0x633   :  { %3808 = vbcast.lane.b32.xlu1 %v6906_v31, 328  ;;  %3820 = vbcast.lane.b32.xlu0 %v6906_v31, 352 }
 0x634   :  { %4332 = vst.msk [vmem:[%s8926_s5 + $0x578] sm:$0xff] %vm9193_vm13, %v4076_v50  ;;  %vm9208_vm13 = vmmov %vm9030_vm0 }
 0x635   :  { %4335 = vst.msk [vmem:[%s8926_s5 + $0x590] sm:$0xff] %vm9194_vm14, %v4079_v5  ;;  %v3576_v47 = vpop.permute.xlu1 %3575  ;;  %v3588_v0 = vpop.permute.xlu0 %3587  ;;  %vm9209_vm14 = vmmov %vm9030_vm0  ;;  %v4759_v5 = vld [vmem:[%s8921_s0 + $0x628] sm:$0xff] }
 0x636   :  { %v4078_v22 = vmul.f32 %v4739_v56, %v3576_v47  ;;  %v4081_v35 = vmul.f32 %v4740_v4, %v3588_v0  ;;  %v4760_v0 = vld [vmem:[%s8921_s0 + $0x640] sm:$0xff] }
 0x637   :  { %3816 = vbcast.lane.b32.xlu1 %v6906_v31, 344  ;;  %3828 = vbcast.lane.b32.xlu0 %v6906_v31, 368 }
 0x638   :  { %4334 = vst.msk [vmem:[%s8926_s5 + $0x588] sm:$0xff] %vm9195_vm15, %v4078_v22  ;;  %vm9210_vm15 = vmmov %vm9030_vm0 }
 0x639   :  { %4337 = vst.msk [vmem:[%s8926_s5 + $0x5a0] sm:$0xff] %vm9030_vm0, %v4081_v35  ;;  %v3584_v36 = vpop.permute.xlu1 %3583  ;;  %v3596_v39 = vpop.permute.xlu0 %3595  ;;  %v4761_v35 = vld [vmem:[%s8921_s0 + $0x638] sm:$0xff] }
 0x63a   :  { %v4080_v51 = vmul.f32 %v4741_v13, %v3584_v36  ;;  %v4083_v10 = vmul.f32 %v4742_v23, %v3596_v39  ;;  %v4763_v23 = vld [vmem:[%s8921_s0 + $0x648] sm:$0xff] }
 0x63b   :  { %3824 = vbcast.lane.b32.xlu1 %v6906_v31, 360  ;;  %3839 = vbcast.lane.b32.xlu0 %v6910_v15, 256 }
 0x63c   :  { %4336 = vst.msk [vmem:[%s8926_s5 + $0x598] sm:$0xff] %vm9196_vm12, %v4080_v51  ;;  %vm9211_vm12 = vmmov %vm9030_vm0 }
 0x63d   :  { %4339 = vst.msk [vmem:[%s8926_s5 + $0x5b0] sm:$0xff] %vm9197_vm1, %v4083_v10  ;;  %v3592_v2 = vpop.permute.xlu1 %3591  ;;  %v3604_v20 = vpop.permute.xlu0 %3603  ;;  %vm9212_vm1 = vmmov %vm9030_vm0 }
 0x63e   :  { %v4082_v24 = vmul.f32 %v4743_v63, %v3592_v2  ;;  %v4085_v55 = vmul.f32 %v4744_v30, %v3604_v20  ;;  %v4764_v2 = vld [vmem:[%s8921_s0 + $0x660] sm:$0xff]  ;;  %v4765_v30 = vld [vmem:[%s8921_s0 + $0x658] sm:$0xff] }
 0x63f   :  { %3832 = vbcast.lane.b32.xlu1 %v6906_v31, 376  ;;  %3847 = vbcast.lane.b32.xlu0 %v6910_v15, 272  ;;  %v4746_v31 = vld [vmem:[%s8921_s0 + $0x5d0] sm:$0xff] }
 0x640   :  { %4338 = vst.msk [vmem:[%s8926_s5 + $0x5a8] sm:$0xff] %vm9198_vm2, %v4082_v24  ;;  %vm9213_vm2 = vmmov %vm9030_vm0 }
 0x641   :  { %4341 = vst.msk [vmem:[%s8926_s5 + $0x5c0] sm:$0xff] %vm9199_vm3, %v4085_v55  ;;  %v3600_v37 = vpop.permute.xlu1 %3599  ;;  %v3612_v49 = vpop.permute.xlu0 %3611  ;;  %vm9214_vm3 = vmmov %vm9030_vm0 }
 0x642   :  { %v4084_v1 = vmul.f32 %v4745_v26, %v3600_v37  ;;  %v4087_v34 = vmul.f32 %v4746_v31, %v3612_v49  ;;  %v4766_v37 = vld [vmem:[%s8921_s0 + $0x670] sm:$0xff]  ;;  %v4767_v31 = vld [vmem:[%s8921_s0 + $0x668] sm:$0xff] }
 0x643   :  { %3843 = vbcast.lane.b32.xlu1 %v6910_v15, 264  ;;  %3855 = vbcast.lane.b32.xlu0 %v6910_v15, 288 }
 0x644   :  { %4340 = vst.msk [vmem:[%s8926_s5 + $0x5b8] sm:$0xff] %vm9200_vm4, %v4084_v1  ;;  %vm9215_vm4 = vmmov %vm9030_vm0 }
 0x645   :  { %4343 = vst.msk [vmem:[%s8926_s5 + $0x5d0] sm:$0xff] %vm9201_vm5, %v4087_v34  ;;  %v3608_v18 = vpop.permute.xlu1 %3607  ;;  %v3620_v19 = vpop.permute.xlu0 %3619  ;;  %vm9216_vm5 = vmmov %vm9030_vm0 }
 0x646   :  { %v4086_v33 = vmul.f32 %v4747_v17, %v3608_v18  ;;  %v4089_v27 = vmul.f32 %v4748_v29, %v3620_v19  ;;  %v4768_v18 = vld [vmem:[%s8921_s0 + $0x680] sm:$0xff]  ;;  %v4769_v29 = vld [vmem:[%s8921_s0 + $0x678] sm:$0xff] }
 0x647   :  { %3851 = vbcast.lane.b32.xlu1 %v6910_v15, 280  ;;  %3863 = vbcast.lane.b32.xlu0 %v6910_v15, 304 }
 0x648   :  { %4342 = vst.msk [vmem:[%s8926_s5 + $0x5c8] sm:$0xff] %vm9202_vm6, %v4086_v33  ;;  %vm9217_vm6 = vmmov %vm9030_vm0 }
 0x649   :  { %4345 = vst.msk [vmem:[%s8926_s5 + $0x5e0] sm:$0xff] %vm9203_vm7, %v4089_v27  ;;  %v3616_v32 = vpop.permute.xlu1 %3615  ;;  %v3628_v62 = vpop.permute.xlu0 %3627  ;;  %vm9218_vm7 = vmmov %vm9030_vm0 }
 0x64a   :  { %v4088_v14 = vmul.f32 %v4749_v43, %v3616_v32  ;;  %v4091_v38 = vmul.f32 %v4750_v48, %v3628_v62  ;;  %v4770_v32 = vld [vmem:[%s8921_s0 + $0x690] sm:$0xff]  ;;  %v4771_v48 = vld [vmem:[%s8921_s0 + $0x688] sm:$0xff] }
 0x64b   :  { %3859 = vbcast.lane.b32.xlu1 %v6910_v15, 296  ;;  %3871 = vbcast.lane.b32.xlu0 %v6910_v15, 320 }
 0x64c   :  { %4344 = vst.msk [vmem:[%s8926_s5 + $0x5d8] sm:$0xff] %vm9204_vm8, %v4088_v14  ;;  %vm9219_vm8 = vmmov %vm9030_vm0 }
 0x64d   :  { %4347 = vst.msk [vmem:[%s8926_s5 + $0x5f0] sm:$0xff] %vm9205_vm9, %v4091_v38  ;;  %v3624_v44 = vpop.permute.xlu1 %3623  ;;  %v3639_v59 = vpop.permute.xlu0 %3638  ;;  %vm9220_vm9 = vmmov %vm9030_vm0 }
 0x64e   :  { %v4090_v42 = vmul.f32 %v4751_v53, %v3624_v44  ;;  %v4093_v12 = vmul.f32 %v4752_v8, %v3639_v59  ;;  %v4772_v44 = vld [vmem:[%s8921_s0 + $0x6a0] sm:$0xff]  ;;  %v4773_v8 = vld [vmem:[%s8921_s0 + $0x698] sm:$0xff] }
 0x64f   :  { %3867 = vbcast.lane.b32.xlu1 %v6910_v15, 312  ;;  %3879 = vbcast.lane.b32.xlu0 %v6910_v15, 336 }
 0x650   :  { %4346 = vst.msk [vmem:[%s8926_s5 + $0x5e8] sm:$0xff] %vm9206_vm11, %v4090_v42  ;;  %vm9221_vm11 = vmmov %vm9030_vm0 }
 0x651   :  { %4349 = vst.msk [vmem:[%s8926_s5 + $0x600] sm:$0xff] %vm9207_vm10, %v4093_v12  ;;  %v3632_v60 = vpop.permute.xlu1 %3631  ;;  %v3647_v7 = vpop.permute.xlu0 %3646  ;;  %vm9222_vm10 = vmmov %vm9030_vm0 }
 0x652   :  { %v4092_v45 = vmul.f32 %v4753_v3, %v3632_v60  ;;  %v4095_v11 = vmul.f32 %v4754_v25, %v3647_v7  ;;  %v4774_v60 = vld [vmem:[%s8921_s0 + $0x6b0] sm:$0xff]  ;;  %v4775_v25 = vld [vmem:[%s8921_s0 + $0x6a8] sm:$0xff] }
 0x653   :  { %3875 = vbcast.lane.b32.xlu1 %v6910_v15, 328  ;;  %3887 = vbcast.lane.b32.xlu0 %v6910_v15, 352 }
 0x654   :  { %4348 = vst.msk [vmem:[%s8926_s5 + $0x5f8] sm:$0xff] %vm9208_vm13, %v4092_v45  ;;  %vm9223_vm13 = vmmov %vm9030_vm0 }
 0x655   :  { %4351 = vst.msk [vmem:[%s8926_s5 + $0x610] sm:$0xff] %vm9209_vm14, %v4095_v11  ;;  %v3643_v16 = vpop.permute.xlu1 %3642  ;;  %v3655_v52 = vpop.permute.xlu0 %3654  ;;  %vm9224_vm14 = vmmov %vm9030_vm0 }
 0x656   :  { %v4094_v9 = vmul.f32 %v4755_v57, %v3643_v16  ;;  %v4097_v46 = vmul.f32 %v4756_v21, %v3655_v52  ;;  %v4776_v16 = vld [vmem:[%s8921_s0 + $0x6c0] sm:$0xff]  ;;  %v4777_v21 = vld [vmem:[%s8921_s0 + $0x6b8] sm:$0xff] }
 0x657   :  { %3883 = vbcast.lane.b32.xlu1 %v6910_v15, 344  ;;  %3895 = vbcast.lane.b32.xlu0 %v6910_v15, 368 }
 0x658   :  { %4350 = vst.msk [vmem:[%s8926_s5 + $0x608] sm:$0xff] %vm9210_vm15, %v4094_v9  ;;  %vm9225_vm15 = vmmov %vm9030_vm0 }
 0x659   :  { %4353 = vst.msk [vmem:[%s8926_s5 + $0x620] sm:$0xff] %vm9030_vm0, %v4097_v46  ;;  %v3651_v28 = vpop.permute.xlu1 %3650  ;;  %v3663_v58 = vpop.permute.xlu0 %3662 }
 0x65a   :  { %v4096_v61 = vmul.f32 %v4757_v6, %v3651_v28  ;;  %v4099_v41 = vmul.f32 %v4758_v54, %v3663_v58  ;;  %v4778_v28 = vld [vmem:[%s8921_s0 + $0x6d0] sm:$0xff]  ;;  %v4779_v54 = vld [vmem:[%s8921_s0 + $0x6c8] sm:$0xff] }
 0x65b   :  { %3891 = vbcast.lane.b32.xlu1 %v6910_v15, 360 }
 0x65c   :  { %4352 = vst.msk [vmem:[%s8926_s5 + $0x618] sm:$0xff] %vm9211_vm12, %v4096_v61  ;;  %vm9226_vm12 = vmmov %vm9030_vm0 }
 0x65d   :  { %4355 = vst.msk [vmem:[%s8926_s5 + $0x630] sm:$0xff] %vm9212_vm1, %v4099_v41  ;;  %v3659_v50 = vpop.permute.xlu1 %3658  ;;  %v3671_v40 = vpop.permute.xlu0 %3670  ;;  %vm9227_vm1 = vmmov %vm9030_vm0 }
 0x65e   :  { %v4098_v47 = vmul.f32 %v4759_v5, %v3659_v50  ;;  %v4101_v56 = vmul.f32 %v4760_v0, %v3671_v40  ;;  %v4780_v50 = vld [vmem:[%s8921_s0 + $0x6e0] sm:$0xff]  ;;  %v4781_v0 = vld [vmem:[%s8921_s0 + $0x6d8] sm:$0xff] }
 0x65f   :  { %3899 = vbcast.lane.b32.xlu1 %v6910_v15, 376  ;;  %v4762_v15 = vld [vmem:[%s8921_s0 + $0x650] sm:$0xff] }
 0x660   :  { %4354 = vst.msk [vmem:[%s8926_s5 + $0x628] sm:$0xff] %vm9213_vm2, %v4098_v47  ;;  %vm9228_vm2 = vmmov %vm9030_vm0 }
 0x661   :  { %4357 = vst.msk [vmem:[%s8926_s5 + $0x640] sm:$0xff] %vm9214_vm3, %v4101_v56  ;;  %v3667_v22 = vpop.permute.xlu1 %3666  ;;  %v3679_v4 = vpop.permute.xlu0 %3678  ;;  %vm9229_vm3 = vmmov %vm9030_vm0 }
 0x662   :  { %v4100_v36 = vmul.f32 %v4761_v35, %v3667_v22  ;;  %v4103_v39 = vmul.f32 %v4762_v15, %v3679_v4  ;;  %v4782_v22 = vld [vmem:[%s8921_s0 + $0x6f0] sm:$0xff]  ;;  %v4783_v15 = vld [vmem:[%s8921_s0 + $0x6e8] sm:$0xff] }
 0x664   :  { %4356 = vst.msk [vmem:[%s8926_s5 + $0x638] sm:$0xff] %vm9215_vm4, %v4100_v36  ;;  %vm9230_vm4 = vmmov %vm9030_vm0 }
 0x665   :  { %4359 = vst.msk [vmem:[%s8926_s5 + $0x650] sm:$0xff] %vm9216_vm5, %v4103_v39  ;;  %v3675_v13 = vpop.permute.xlu1 %3674  ;;  %v3687_v51 = vpop.permute.xlu0 %3686  ;;  %vm9231_vm5 = vmmov %vm9030_vm0 }
 0x666   :  { %v4102_v10 = vmul.f32 %v4763_v23, %v3675_v13  ;;  %v4105_v20 = vmul.f32 %v4764_v2, %v3687_v51  ;;  %v4784_v13 = vld [vmem:[%s8921_s0 + $0x700] sm:$0xff]  ;;  %v4785_v2 = vld [vmem:[%s8921_s0 + $0x6f8] sm:$0xff] }
 0x668   :  { %4358 = vst.msk [vmem:[%s8926_s5 + $0x648] sm:$0xff] %vm9217_vm6, %v4102_v10  ;;  %vm9232_vm6 = vmmov %vm9030_vm0 }
 0x669   :  { %4361 = vst.msk [vmem:[%s8926_s5 + $0x660] sm:$0xff] %vm9218_vm7, %v4105_v20  ;;  %v3683_v63 = vpop.permute.xlu1 %3682  ;;  %v3695_v24 = vpop.permute.xlu0 %3694  ;;  %vm9233_vm7 = vmmov %vm9030_vm0 }
 0x66a   :  { %v4104_v55 = vmul.f32 %v4765_v30, %v3683_v63  ;;  %v4107_v49 = vmul.f32 %v4766_v37, %v3695_v24  ;;  %v4786_v63 = vld [vmem:[%s8921_s0 + $0x710] sm:$0xff]  ;;  %v4787_v37 = vld [vmem:[%s8921_s0 + $0x708] sm:$0xff] }
 0x66c   :  { %4360 = vst.msk [vmem:[%s8926_s5 + $0x658] sm:$0xff] %vm9219_vm8, %v4104_v55  ;;  %vm9234_vm8 = vmmov %vm9030_vm0 }
 0x66d   :  { %4363 = vst.msk [vmem:[%s8926_s5 + $0x670] sm:$0xff] %vm9220_vm9, %v4107_v49  ;;  %v3691_v26 = vpop.permute.xlu1 %3690  ;;  %v3706_v1 = vpop.permute.xlu0 %3705  ;;  %vm9235_vm9 = vmmov %vm9030_vm0 }
 0x66e   :  { %v4106_v34 = vmul.f32 %v4767_v31, %v3691_v26  ;;  %v4109_v19 = vmul.f32 %v4768_v18, %v3706_v1  ;;  %v4788_v26 = vld [vmem:[%s8921_s0 + $0x720] sm:$0xff]  ;;  %v4789_v18 = vld [vmem:[%s8921_s0 + $0x718] sm:$0xff] }
 0x670   :  { %4362 = vst.msk [vmem:[%s8926_s5 + $0x668] sm:$0xff] %vm9221_vm11, %v4106_v34  ;;  %vm9236_vm11 = vmmov %vm9030_vm0 }
 0x671   :  { %4365 = vst.msk [vmem:[%s8926_s5 + $0x680] sm:$0xff] %vm9222_vm10, %v4109_v19  ;;  %v3699_v17 = vpop.permute.xlu1 %3698  ;;  %v3714_v33 = vpop.permute.xlu0 %3713  ;;  %vm9237_vm10 = vmmov %vm9030_vm0 }
 0x672   :  { %v4108_v27 = vmul.f32 %v4769_v29, %v3699_v17  ;;  %v4111_v62 = vmul.f32 %v4770_v32, %v3714_v33  ;;  %v4790_v17 = vld [vmem:[%s8921_s0 + $0x730] sm:$0xff]  ;;  %v4791_v32 = vld [vmem:[%s8921_s0 + $0x728] sm:$0xff] }
 0x674   :  { %4364 = vst.msk [vmem:[%s8926_s5 + $0x678] sm:$0xff] %vm9223_vm13, %v4108_v27  ;;  %vm9238_vm13 = vmmov %vm9030_vm0 }
 0x675   :  { %4367 = vst.msk [vmem:[%s8926_s5 + $0x690] sm:$0xff] %vm9224_vm14, %v4111_v62  ;;  %v3710_v43 = vpop.permute.xlu1 %3709  ;;  %v3722_v14 = vpop.permute.xlu0 %3721  ;;  %vm9239_vm14 = vmmov %vm9030_vm0 }
 0x676   :  { %v4110_v38 = vmul.f32 %v4771_v48, %v3710_v43  ;;  %v4113_v59 = vmul.f32 %v4772_v44, %v3722_v14  ;;  %v4792_v43 = vld [vmem:[%s8921_s0 + $0x740] sm:$0xff]  ;;  %v4793_v44 = vld [vmem:[%s8921_s0 + $0x738] sm:$0xff] }
 0x678   :  { %4366 = vst.msk [vmem:[%s8926_s5 + $0x688] sm:$0xff] %vm9225_vm15, %v4110_v38  ;;  %vm9240_vm15 = vmmov %vm9030_vm0 }
 0x679   :  { %4369 = vst.msk [vmem:[%s8926_s5 + $0x6a0] sm:$0xff] %vm9030_vm0, %v4113_v59  ;;  %v3718_v53 = vpop.permute.xlu1 %3717  ;;  %v3730_v42 = vpop.permute.xlu0 %3729 }
 0x67a   :  { %v4112_v12 = vmul.f32 %v4773_v8, %v3718_v53  ;;  %v4115_v7 = vmul.f32 %v4774_v60, %v3730_v42  ;;  %v4794_v53 = vld [vmem:[%s8921_s0 + $0x750] sm:$0xff]  ;;  %v4795_v60 = vld [vmem:[%s8921_s0 + $0x748] sm:$0xff] }
 0x67c   :  { %4368 = vst.msk [vmem:[%s8926_s5 + $0x698] sm:$0xff] %vm9226_vm12, %v4112_v12  ;;  %vm9241_vm12 = vmmov %vm9030_vm0 }
 0x67d   :  { %4371 = vst.msk [vmem:[%s8926_s5 + $0x6b0] sm:$0xff] %vm9227_vm1, %v4115_v7  ;;  %v3726_v3 = vpop.permute.xlu1 %3725  ;;  %v3738_v45 = vpop.permute.xlu0 %3737  ;;  %vm9242_vm1 = vmmov %vm9030_vm0 }
 0x67e   :  { %v4114_v11 = vmul.f32 %v4775_v25, %v3726_v3  ;;  %v4117_v52 = vmul.f32 %v4776_v16, %v3738_v45  ;;  %v4796_v3 = vld [vmem:[%s8921_s0 + $0x760] sm:$0xff]  ;;  %v4797_v16 = vld [vmem:[%s8921_s0 + $0x758] sm:$0xff] }
 0x680   :  { %4370 = vst.msk [vmem:[%s8926_s5 + $0x6a8] sm:$0xff] %vm9228_vm2, %v4114_v11  ;;  %vm9243_vm2 = vmmov %vm9030_vm0 }
 0x681   :  { %4373 = vst.msk [vmem:[%s8926_s5 + $0x6c0] sm:$0xff] %vm9229_vm3, %v4117_v52  ;;  %v3734_v57 = vpop.permute.xlu1 %3733  ;;  %v3746_v9 = vpop.permute.xlu0 %3745  ;;  %vm9244_vm3 = vmmov %vm9030_vm0 }
 0x682   :  { %v4116_v46 = vmul.f32 %v4777_v21, %v3734_v57  ;;  %v4119_v58 = vmul.f32 %v4778_v28, %v3746_v9  ;;  %v4798_v57 = vld [vmem:[%s8921_s0 + $0x770] sm:$0xff]  ;;  %v4799_v28 = vld [vmem:[%s8921_s0 + $0x768] sm:$0xff] }
 0x684   :  { %4372 = vst.msk [vmem:[%s8926_s5 + $0x6b8] sm:$0xff] %vm9230_vm4, %v4116_v46  ;;  %vm9245_vm4 = vmmov %vm9030_vm0 }
 0x685   :  { %4375 = vst.msk [vmem:[%s8926_s5 + $0x6d0] sm:$0xff] %vm9231_vm5, %v4119_v58  ;;  %v3742_v6 = vpop.permute.xlu1 %3741  ;;  %v3754_v61 = vpop.permute.xlu0 %3753  ;;  %vm9246_vm5 = vmmov %vm9030_vm0 }
 0x686   :  { %v4118_v41 = vmul.f32 %v4779_v54, %v3742_v6  ;;  %v4121_v40 = vmul.f32 %v4780_v50, %v3754_v61  ;;  %v4800_v6 = vld [vmem:[%s8921_s0 + $0x780] sm:$0xff]  ;;  %v4801_v50 = vld [vmem:[%s8921_s0 + $0x778] sm:$0xff] }
 0x688   :  { %4374 = vst.msk [vmem:[%s8926_s5 + $0x6c8] sm:$0xff] %vm9232_vm6, %v4118_v41  ;;  %vm9247_vm6 = vmmov %vm9030_vm0 }
 0x689   :  { %4377 = vst.msk [vmem:[%s8926_s5 + $0x6e0] sm:$0xff] %vm9233_vm7, %v4121_v40  ;;  %v3750_v5 = vpop.permute.xlu1 %3749  ;;  %v3762_v47 = vpop.permute.xlu0 %3761  ;;  %vm9248_vm7 = vmmov %vm9030_vm0 }
 0x68a   :  { %v4120_v56 = vmul.f32 %v4781_v0, %v3750_v5  ;;  %v4123_v4 = vmul.f32 %v4782_v22, %v3762_v47  ;;  %v4802_v5 = vld [vmem:[%s8921_s0 + $0x790] sm:$0xff]  ;;  %v4803_v22 = vld [vmem:[%s8921_s0 + $0x788] sm:$0xff] }
 0x68c   :  { %4376 = vst.msk [vmem:[%s8926_s5 + $0x6d8] sm:$0xff] %vm9234_vm8, %v4120_v56  ;;  %vm9249_vm8 = vmmov %vm9030_vm0 }
 0x68d   :  { %4379 = vst.msk [vmem:[%s8926_s5 + $0x6f0] sm:$0xff] %vm9235_vm9, %v4123_v4  ;;  %v3758_v35 = vpop.permute.xlu1 %3757  ;;  %v3773_v36 = vpop.permute.xlu0 %3772  ;;  %vm9250_vm9 = vmmov %vm9030_vm0 }
 0x68e   :  { %v4122_v39 = vmul.f32 %v4783_v15, %v3758_v35  ;;  %v4125_v51 = vmul.f32 %v4784_v13, %v3773_v36  ;;  %v4804_v35 = vld [vmem:[%s8921_s0 + $0x7a0] sm:$0xff]  ;;  %v4805_v13 = vld [vmem:[%s8921_s0 + $0x798] sm:$0xff] }
 0x690   :  { %4378 = vst.msk [vmem:[%s8926_s5 + $0x6e8] sm:$0xff] %vm9236_vm11, %v4122_v39  ;;  %vm9251_vm11 = vmmov %vm9030_vm0 }
 0x691   :  { %4381 = vst.msk [vmem:[%s8926_s5 + $0x700] sm:$0xff] %vm9237_vm10, %v4125_v51  ;;  %v3766_v23 = vpop.permute.xlu1 %3765  ;;  %v3781_v10 = vpop.permute.xlu0 %3780  ;;  %vm9252_vm10 = vmmov %vm9030_vm0 }
 0x692   :  { %v4124_v20 = vmul.f32 %v4785_v2, %v3766_v23  ;;  %v4127_v24 = vmul.f32 %v4786_v63, %v3781_v10  ;;  %v4806_v23 = vld [vmem:[%s8921_s0 + $0x7b0] sm:$0xff]  ;;  %v4807_v63 = vld [vmem:[%s8921_s0 + $0x7a8] sm:$0xff] }
 0x694   :  { %4380 = vst.msk [vmem:[%s8926_s5 + $0x6f8] sm:$0xff] %vm9238_vm13, %v4124_v20  ;;  %vm9253_vm13 = vmmov %vm9030_vm0 }
 0x695   :  { %4383 = vst.msk [vmem:[%s8926_s5 + $0x710] sm:$0xff] %vm9239_vm14, %v4127_v24  ;;  %v3777_v30 = vpop.permute.xlu1 %3776  ;;  %v3789_v55 = vpop.permute.xlu0 %3788  ;;  %vm9254_vm14 = vmmov %vm9030_vm0 }
 0x696   :  { %v4126_v49 = vmul.f32 %v4787_v37, %v3777_v30  ;;  %v4129_v1 = vmul.f32 %v4788_v26, %v3789_v55  ;;  %v4808_v30 = vld [vmem:[%s8921_s0 + $0x7c0] sm:$0xff]  ;;  %v4809_v26 = vld [vmem:[%s8921_s0 + $0x7b8] sm:$0xff] }
 0x698   :  { %4382 = vst.msk [vmem:[%s8926_s5 + $0x708] sm:$0xff] %vm9240_vm15, %v4126_v49  ;;  %vm9255_vm15 = vmmov %vm9030_vm0 }
 0x699   :  { %4385 = vst.msk [vmem:[%s8926_s5 + $0x720] sm:$0xff] %vm9030_vm0, %v4129_v1  ;;  %v3785_v31 = vpop.permute.xlu1 %3784  ;;  %v3797_v34 = vpop.permute.xlu0 %3796 }
 0x69a   :  { %v4128_v19 = vmul.f32 %v4789_v18, %v3785_v31  ;;  %v4131_v33 = vmul.f32 %v4790_v17, %v3797_v34  ;;  %v4810_v31 = vld [vmem:[%s8921_s0 + $0x7d0] sm:$0xff]  ;;  %v4811_v17 = vld [vmem:[%s8921_s0 + $0x7c8] sm:$0xff] }
 0x69c   :  { %4384 = vst.msk [vmem:[%s8926_s5 + $0x718] sm:$0xff] %vm9241_vm12, %v4128_v19  ;;  %vm9256_vm12 = vmmov %vm9030_vm0 }
 0x69d   :  { %4387 = vst.msk [vmem:[%s8926_s5 + $0x730] sm:$0xff] %vm9242_vm1, %v4131_v33  ;;  %v3793_v29 = vpop.permute.xlu1 %3792  ;;  %v3805_v27 = vpop.permute.xlu0 %3804  ;;  %vm9257_vm1 = vmmov %vm9030_vm0 }
 0x69e   :  { %v4130_v62 = vmul.f32 %v4791_v32, %v3793_v29  ;;  %v4133_v14 = vmul.f32 %v4792_v43, %v3805_v27  ;;  %v4812_v29 = vld [vmem:[%s8921_s0 + $0x7e0] sm:$0xff]  ;;  %v4813_v43 = vld [vmem:[%s8921_s0 + $0x7d8] sm:$0xff] }
 0x6a0   :  { %4386 = vst.msk [vmem:[%s8926_s5 + $0x728] sm:$0xff] %vm9243_vm2, %v4130_v62  ;;  %vm9258_vm2 = vmmov %vm9030_vm0 }
 0x6a1   :  { %4389 = vst.msk [vmem:[%s8926_s5 + $0x740] sm:$0xff] %vm9244_vm3, %v4133_v14  ;;  %v3801_v48 = vpop.permute.xlu1 %3800  ;;  %v3813_v38 = vpop.permute.xlu0 %3812  ;;  %vm9259_vm3 = vmmov %vm9030_vm0 }
 0x6a2   :  { %v4132_v59 = vmul.f32 %v4793_v44, %v3801_v48  ;;  %v4135_v42 = vmul.f32 %v4794_v53, %v3813_v38  ;;  %v4814_v48 = vld [vmem:[%s8921_s0 + $0x7f0] sm:$0xff] }
 0x6a4   :  { %4388 = vst.msk [vmem:[%s8926_s5 + $0x738] sm:$0xff] %vm9245_vm4, %v4132_v59  ;;  %vm9260_vm4 = vmmov %vm9030_vm0  ;;  %v4815_v59 = vld [vmem:[%s8921_s0 + $0x7e8] sm:$0xff] }
 0x6a5   :  { %4391 = vst.msk [vmem:[%s8926_s5 + $0x750] sm:$0xff] %vm9246_vm5, %v4135_v42  ;;  %v3809_v8 = vpop.permute.xlu1 %3808  ;;  %v3821_v12 = vpop.permute.xlu0 %3820  ;;  %vm9261_vm5 = vmmov %vm9030_vm0 }
 0x6a6   :  { %v4134_v7 = vmul.f32 %v4795_v60, %v3809_v8  ;;  %v4137_v45 = vmul.f32 %v4796_v3, %v3821_v12  ;;  %v4816_v8 = vld [vmem:[%s8921_s0 + $0x7f8] sm:$0xff] }
 0x6a8   :  { %4390 = vst.msk [vmem:[%s8926_s5 + $0x748] sm:$0xff] %vm9247_vm6, %v4134_v7  ;;  %vm9262_vm6 = vmmov %vm9030_vm0 }
 0x6a9   :  { %4393 = vst.msk [vmem:[%s8926_s5 + $0x760] sm:$0xff] %vm9248_vm7, %v4137_v45  ;;  %v3817_v25 = vpop.permute.xlu1 %3816  ;;  %v3829_v11 = vpop.permute.xlu0 %3828  ;;  %vm9263_vm7 = vmmov %vm9030_vm0 }
 0x6aa   :  { %v4136_v52 = vmul.f32 %v4797_v16, %v3817_v25  ;;  %v4139_v9 = vmul.f32 %v4798_v57, %v3829_v11 }
 0x6ac   :  { %4392 = vst.msk [vmem:[%s8926_s5 + $0x758] sm:$0xff] %vm9249_vm8, %v4136_v52  ;;  %vm9264_vm8 = vmmov %vm9030_vm0 }
 0x6ad   :  { %4395 = vst.msk [vmem:[%s8926_s5 + $0x770] sm:$0xff] %vm9250_vm9, %v4139_v9  ;;  %v3825_v21 = vpop.permute.xlu1 %3824  ;;  %v3840_v46 = vpop.permute.xlu0 %3839  ;;  %vm9265_vm9 = vmmov %vm9030_vm0 }
 0x6ae   :  { %v4138_v58 = vmul.f32 %v4799_v28, %v3825_v21  ;;  %v4141_v61 = vmul.f32 %v4800_v6, %v3840_v46 }
 0x6b0   :  { %4394 = vst.msk [vmem:[%s8926_s5 + $0x768] sm:$0xff] %vm9251_vm11, %v4138_v58  ;;  %vm9266_vm11 = vmmov %vm9030_vm0 }
 0x6b1   :  { %4397 = vst.msk [vmem:[%s8926_s5 + $0x780] sm:$0xff] %vm9252_vm10, %v4141_v61  ;;  %v3833_v54 = vpop.permute.xlu1 %3832  ;;  %v3848_v41 = vpop.permute.xlu0 %3847  ;;  %vm9267_vm10 = vmmov %vm9030_vm0 }
 0x6b2   :  { %v4140_v40 = vmul.f32 %v4801_v50, %v3833_v54  ;;  %v4143_v47 = vmul.f32 %v4802_v5, %v3848_v41 }
 0x6b4   :  { %4396 = vst.msk [vmem:[%s8926_s5 + $0x778] sm:$0xff] %vm9253_vm13, %v4140_v40 }
 0x6b5   :  { %4399 = vst.msk [vmem:[%s8926_s5 + $0x790] sm:$0xff] %vm9254_vm14, %v4143_v47  ;;  %v3844_v0 = vpop.permute.xlu1 %3843  ;;  %v3856_v56 = vpop.permute.xlu0 %3855 }
 0x6b6   :  { %v4142_v4 = vmul.f32 %v4803_v22, %v3844_v0  ;;  %v4145_v36 = vmul.f32 %v4804_v35, %v3856_v56 }
 0x6b8   :  { %4398 = vst.msk [vmem:[%s8926_s5 + $0x788] sm:$0xff] %vm9255_vm15, %v4142_v4 }
 0x6b9   :  { %4401 = vst.msk [vmem:[%s8926_s5 + $0x7a0] sm:$0xff] %vm9030_vm0, %v4145_v36  ;;  %v3852_v15 = vpop.permute.xlu1 %3851  ;;  %v3864_v39 = vpop.permute.xlu0 %3863 }
 0x6ba   :  { %v4144_v51 = vmul.f32 %v4805_v13, %v3852_v15  ;;  %v4147_v10 = vmul.f32 %v4806_v23, %v3864_v39 }
 0x6bc   :  { %4400 = vst.msk [vmem:[%s8926_s5 + $0x798] sm:$0xff] %vm9256_vm12, %v4144_v51 }
 0x6bd   :  { %4403 = vst.msk [vmem:[%s8926_s5 + $0x7b0] sm:$0xff] %vm9257_vm1, %v4147_v10  ;;  %v3860_v2 = vpop.permute.xlu1 %3859  ;;  %v3872_v20 = vpop.permute.xlu0 %3871 }
 0x6be   :  { %v4146_v24 = vmul.f32 %v4807_v63, %v3860_v2  ;;  %v4149_v55 = vmul.f32 %v4808_v30, %v3872_v20 }
 0x6c0   :  { %4402 = vst.msk [vmem:[%s8926_s5 + $0x7a8] sm:$0xff] %vm9258_vm2, %v4146_v24 }
 0x6c1   :  { %4405 = vst.msk [vmem:[%s8926_s5 + $0x7c0] sm:$0xff] %vm9259_vm3, %v4149_v55  ;;  %v3868_v37 = vpop.permute.xlu1 %3867  ;;  %v3880_v49 = vpop.permute.xlu0 %3879 }
 0x6c2   :  { %v4148_v1 = vmul.f32 %v4809_v26, %v3868_v37  ;;  %v4151_v34 = vmul.f32 %v4810_v31, %v3880_v49 }
 0x6c4   :  { %4404 = vst.msk [vmem:[%s8926_s5 + $0x7b8] sm:$0xff] %vm9260_vm4, %v4148_v1 }
 0x6c5   :  { %4407 = vst.msk [vmem:[%s8926_s5 + $0x7d0] sm:$0xff] %vm9261_vm5, %v4151_v34  ;;  %v3876_v18 = vpop.permute.xlu1 %3875  ;;  %v3888_v19 = vpop.permute.xlu0 %3887 }
 0x6c6   :  { %v4150_v33 = vmul.f32 %v4811_v17, %v3876_v18  ;;  %v4153_v27 = vmul.f32 %v4812_v29, %v3888_v19 }
 0x6c8   :  { %4406 = vst.msk [vmem:[%s8926_s5 + $0x7c8] sm:$0xff] %vm9262_vm6, %v4150_v33 }
 0x6c9   :  { %4409 = vst.msk [vmem:[%s8926_s5 + $0x7e0] sm:$0xff] %vm9263_vm7, %v4153_v27  ;;  %v3884_v32 = vpop.permute.xlu1 %3883  ;;  %v3896_v62 = vpop.permute.xlu0 %3895 }
 0x6ca   :  { %v4152_v14 = vmul.f32 %v4813_v43, %v3884_v32  ;;  %v4155_v38 = vmul.f32 %v4814_v48, %v3896_v62 }
 0x6cc   :  { %4408 = vst.msk [vmem:[%s8926_s5 + $0x7d8] sm:$0xff] %vm9264_vm8, %v4152_v14 }
 0x6cd   :  { %4411 = vst.msk [vmem:[%s8926_s5 + $0x7f0] sm:$0xff] %vm9265_vm9, %v4155_v38  ;;  %v3892_v44 = vpop.permute.xlu1 %3891 }
 0x6ce   :  { %v4154_v53 = vmul.f32 %v4815_v59, %v3892_v44 }
 0x6d0   :  { %4410 = vst.msk [vmem:[%s8926_s5 + $0x7e8] sm:$0xff] %vm9266_vm11, %v4154_v53 }
 0x6d1   :  { %v3900_v42 = vpop.permute.xlu1 %3899 }
 0x6d2   :  { %v4156_v12 = vmul.f32 %v4816_v8, %v3900_v42 }
 0x6d4   :  { %4412 = vst.msk [vmem:[%s8926_s5 + $0x7f8] sm:$0xff] %vm9267_vm10, %v4156_v12 }

</bundles_post_ra>
